<compile_context>
chip_gen: v5e
topology: v5e:2x2
jax: 0.10.0
libtpu: 0.0.40
codegen_flags: <defaults>
</compile_context>

<pallas_src>
import math

import jax
import jax.numpy as jnp
from jax.experimental import pallas as pl
from jax.experimental.pallas import tpu as pltpu

# --- model hyper-parameters (small, consistent with the PyTorch module) ---
EMBED = 32
HEADS = 4
HEAD_DIM = EMBED // HEADS
FF = 4 * EMBED          # forward_expansion = 4
NUM_LAYERS = 2
SRC_VOCAB = 50
TRG_VOCAB = 60
MAX_LEN = 16
SRC_PAD = 0
TRG_PAD = 0
VPAD = 128              # lane-dense padded vocab width for the final linear
NEG_INF = -1e20
SCALE = 1.0 / math.sqrt(EMBED)   # model uses 1/sqrt(embed_size)

# fixed order in which the packed weight arrays are passed to the kernel
PARAM_ORDER = (
    # encoder blocks, stacked over NUM_LAYERS
    'e_wq', 'e_wk', 'e_wv', 'e_wo', 'e_bo',
    'e_ln1g', 'e_ln1b', 'e_ln2g', 'e_ln2b',
    'e_w1', 'e_b1', 'e_w2', 'e_b2',
    # decoder masked self-attention + its LayerNorm, stacked over NUM_LAYERS
    'd_wq', 'd_wk', 'd_wv', 'd_wo', 'd_bo', 'd_lng', 'd_lnb',
    # decoder cross transformer block, stacked over NUM_LAYERS
    'c_wq', 'c_wk', 'c_wv', 'c_wo', 'c_bo',
    'c_ln1g', 'c_ln1b', 'c_ln2g', 'c_ln2b',
    'c_w1', 'c_b1', 'c_w2', 'c_b2',
    # final vocab projection (padded to VPAD lanes)
    'fc_w', 'fc_b',
)


# ----------------------- in-kernel helper functions -------------------------

def _attention(q, k, v, mask, wq, wk, wv, wo_t, bo):
    """Multi-head attention for one batch element.
    q:(Lq,E) k,v:(Lk,E); wq/wk/wv are block-diagonal kron(I_heads, W.T) (E,E);
    wo_t is the output projection stored transposed (E,E); bo is (1,E).
    mask is a bool array broadcastable to (Lq,Lk) (True = keep)."""
    Q = jnp.dot(q, wq, preferred_element_type=jnp.float32)   # (Lq, E)
    K = jnp.dot(k, wk, preferred_element_type=jnp.float32)   # (Lk, E)
    V = jnp.dot(v, wv, preferred_element_type=jnp.float32)   # (Lk, E)
    ctx = []
    for h in range(HEADS):
        lo, hi = h * HEAD_DIM, (h + 1) * HEAD_DIM
        e = jnp.dot(Q[:, lo:hi], K[:, lo:hi].T,
                    preferred_element_type=jnp.float32)      # (Lq, Lk)
        e = jnp.where(mask, e, NEG_INF) * SCALE               # masked_fill + /sqrt(E)
        e = e - jnp.max(e, axis=-1, keepdims=True)
        p = jnp.exp(e)
        a = p * pl.reciprocal(jnp.sum(p, axis=-1, keepdims=True), approx=True)
        ctx.append(jnp.dot(a, V[:, lo:hi], preferred_element_type=jnp.float32))
    cat = jnp.concatenate(ctx, axis=-1)                       # (Lq, E), stays in vregs
    return jnp.dot(cat, wo_t, preferred_element_type=jnp.float32) + bo


def _add_layernorm(x, resid, g, b):
    """LayerNorm(x + residual) over the last dim (eps=1e-5, biased variance)."""
    s = x + resid
    mean = jnp.mean(s, axis=-1, keepdims=True)
    var = jnp.mean((s - mean) ** 2, axis=-1, keepdims=True)
    return (s - mean) * jax.lax.rsqrt(var + 1e-5) * g + b


def _ffn(x, w1_t, b1, w2_t, b2):
    """Linear(E,4E) -> ReLU -> Linear(4E,E); weights pre-transposed."""
    h = jnp.maximum(jnp.dot(x, w1_t, preferred_element_type=jnp.float32) + b1, 0.0)
    return jnp.dot(h, w2_t, preferred_element_type=jnp.float32) + b2


def _tblock(v, k, q, mask, l,
            wq, wk, wv, wo, bo, ln1g, ln1b, ln2g, ln2b, w1, b1, w2, b2):
    """TransformerBlock.forward(value, key, query, mask) for layer l."""
    attn = _attention(q, k, v, mask, wq[l], wk[l], wv[l], wo[l], bo[l])
    x = _add_layernorm(attn, q, ln1g[l], ln1b[l])
    f = _ffn(x, w1[l], b1[l], w2[l], b2[l])
    return _add_layernorm(f, x, ln2g[l], ln2b[l])


# ------------------------------ fused kernel --------------------------------

def _transformer_kernel(x_ref, y_ref, srcv_ref, *refs):
    out_ref = refs[-1]
    w = dict(zip(PARAM_ORDER, refs[:-1]))

    Ls = x_ref.shape[1]
    Lt = y_ref.shape[1]

    # masks generated in-kernel (no broadcast HBM mask traffic)
    src_mask = srcv_ref[0] != 0.0                                   # (1, Ls)
    row = jax.lax.broadcasted_iota(jnp.int32, (Lt, Lt), 0)
    col = jax.lax.broadcasted_iota(jnp.int32, (Lt, Lt), 1)
    causal_mask = col <= row                                        # (Lt, Lt)

    # ---------------- encoder ----------------
    x = x_ref[0]                                                    # (Ls, E)
    for l in range(NUM_LAYERS):
        x = _tblock(x, x, x, src_mask, l,
                    w['e_wq'], w['e_wk'], w['e_wv'], w['e_wo'], w['e_bo'],
                    w['e_ln1g'], w['e_ln1b'], w['e_ln2g'], w['e_ln2b'],
                    w['e_w1'], w['e_b1'], w['e_w2'], w['e_b2'])
    enc_out = x

    # ---------------- decoder ----------------
    y = y_ref[0]                                                    # (Lt, E)
    for l in range(NUM_LAYERS):
        attn = _attention(y, y, y, causal_mask,
                          w['d_wq'][l], w['d_wk'][l], w['d_wv'][l],
                          w['d_wo'][l], w['d_bo'][l])
        q = _add_layernorm(attn, y, w['d_lng'][l], w['d_lnb'][l])
        y = _tblock(enc_out, enc_out, q, src_mask, l,
                    w['c_wq'], w['c_wk'], w['c_wv'], w['c_wo'], w['c_bo'],
                    w['c_ln1g'], w['c_ln1b'], w['c_ln2g'], w['c_ln2b'],
                    w['c_w1'], w['c_b1'], w['c_w2'], w['c_b2'])

    # final vocab projection, lane-dense (VPAD = 128)
    out_ref[0] = (jnp.dot(y, w['fc_w'][...], preferred_element_type=jnp.float32)
                  + w['fc_b'][...])


# ------------------------------ forward wrapper ------------------------------

def transformer_forward(packed, src, trg):
    N, Ls = src.shape
    _, Lt = trg.shape

    # TODO(synk): embedding gather (data-dependent lookup) stays in plain JAX glue.
    x0 = packed['enc_word'][src] + packed['enc_pos'][jnp.arange(Ls)][None, :, :]
    y0 = packed['dec_word'][trg] + packed['dec_pos'][jnp.arange(Lt)][None, :, :]
    src_valid = (src != SRC_PAD).astype(jnp.float32)[:, None, :]    # (N, 1, Ls)

    weights = [packed[name] for name in PARAM_ORDER]
    weight_spec = pl.BlockSpec(memory_space=pltpu.MemorySpace.VMEM)  # full, resident

    out = pl.pallas_call(
        _transformer_kernel,
        out_shape=jax.ShapeDtypeStruct((N, Lt, VPAD), jnp.float32),
        grid=(N,),
        in_specs=[
            pl.BlockSpec((1, Ls, EMBED), lambda n: (n, 0, 0)),
            pl.BlockSpec((1, Lt, EMBED), lambda n: (n, 0, 0)),
            pl.BlockSpec((1, 1, Ls), lambda n: (n, 0, 0)),
        ] + [weight_spec] * len(PARAM_ORDER),
        out_specs=pl.BlockSpec((1, Lt, VPAD), lambda n: (n, 0, 0)),
        compiler_params=pltpu.CompilerParams(
            dimension_semantics=("parallel",)),
    )(x0, y0, src_valid, *weights)

    return out[:, :, :TRG_VOCAB]


# ----------------------------- parameter init -------------------------------

def _mat(key, shape, scale=0.1):
    return jax.random.normal(key, shape, jnp.float32) * scale


def init_attention(key):
    k = jax.random.split(key, 5)
    return dict(
        wq=_mat(k[0], (HEAD_DIM, HEAD_DIM)),
        wk=_mat(k[1], (HEAD_DIM, HEAD_DIM)),
        wv=_mat(k[2], (HEAD_DIM, HEAD_DIM)),
        wo=_mat(k[3], (EMBED, EMBED)),
        bo=_mat(k[4], (EMBED,)),
    )


def init_tblock(key):
    k = jax.random.split(key, 5)
    return dict(
        attn=init_attention(k[0]),
        ln1_g=jnp.ones((EMBED,), jnp.float32),
        ln1_b=jnp.zeros((EMBED,), jnp.float32),
        ln2_g=jnp.ones((EMBED,), jnp.float32),
        ln2_b=jnp.zeros((EMBED,), jnp.float32),
        w1=_mat(k[1], (FF, EMBED)),
        b1=_mat(k[2], (FF,)),
        w2=_mat(k[3], (EMBED, FF)),
        b2=_mat(k[4], (EMBED,)),
    )


def init_decoder_block(key):
    k = jax.random.split(key, 2)
    return dict(
        attn=init_attention(k[0]),
        ln_g=jnp.ones((EMBED,), jnp.float32),
        ln_b=jnp.zeros((EMBED,), jnp.float32),
        tb=init_tblock(k[1]),
    )


def init_params(key):
    keys = jax.random.split(key, 6 + 2 * NUM_LAYERS)
    params = dict(
        enc_word=_mat(keys[0], (SRC_VOCAB, EMBED), 1.0),
        enc_pos=_mat(keys[1], (MAX_LEN, EMBED), 1.0),
        dec_word=_mat(keys[2], (TRG_VOCAB, EMBED), 1.0),
        dec_pos=_mat(keys[3], (MAX_LEN, EMBED), 1.0),
        fc_w=_mat(keys[4], (TRG_VOCAB, EMBED)),
        fc_b=_mat(keys[5], (TRG_VOCAB,)),
    )
    params['enc_layers'] = [init_tblock(keys[6 + i]) for i in range(NUM_LAYERS)]
    params['dec_layers'] = [init_decoder_block(keys[6 + NUM_LAYERS + i])
                            for i in range(NUM_LAYERS)]
    return params


def pack_params(params):
    """Re-layout torch-shaped params for the fused kernel:
       - per-head (hd,hd) Q/K/V weights -> block-diagonal kron(I_heads, W.T) (E,E)
       - all Linear weights stored transposed (so the kernel does x @ W)
       - per-layer params stacked along a leading NUM_LAYERS axis
       - final projection zero-padded to a lane-dense VPAD-wide output."""
    eye = jnp.eye(HEADS, dtype=jnp.float32)

    def qkv(wt):                       # torch (hd,hd) weight, y = x @ w.T per head
        return jnp.kron(eye, wt.T)     # -> (E,E) block-diagonal

    def row(v, width):                 # 1-D bias / LN vector -> (1, width)
        return v.reshape(1, width)

    def stack_tblocks(blocks, prefix):
        out = {}
        out[prefix + '_wq'] = jnp.stack([qkv(b['attn']['wq']) for b in blocks])
        out[prefix + '_wk'] = jnp.stack([qkv(b['attn']['wk']) for b in blocks])
        out[prefix + '_wv'] = jnp.stack([qkv(b['attn']['wv']) for b in blocks])
        out[prefix + '_wo'] = jnp.stack([b['attn']['wo'].T for b in blocks])
        out[prefix + '_bo'] = jnp.stack([row(b['attn']['bo'], EMBED) for b in blocks])
        out[prefix + '_ln1g'] = jnp.stack([row(b['ln1_g'], EMBED) for b in blocks])
        out[prefix + '_ln1b'] = jnp.stack([row(b['ln1_b'], EMBED) for b in blocks])
        out[prefix + '_ln2g'] = jnp.stack([row(b['ln2_g'], EMBED) for b in blocks])
        out[prefix + '_ln2b'] = jnp.stack([row(b['ln2_b'], EMBED) for b in blocks])
        out[prefix + '_w1'] = jnp.stack([b['w1'].T for b in blocks])   # (E, FF)
        out[prefix + '_b1'] = jnp.stack([row(b['b1'], FF) for b in blocks])
        out[prefix + '_w2'] = jnp.stack([b['w2'].T for b in blocks])   # (FF, E)
        out[prefix + '_b2'] = jnp.stack([row(b['b2'], EMBED) for b in blocks])
        return out

    packed = dict(
        enc_word=params['enc_word'], enc_pos=params['enc_pos'],
        dec_word=params['dec_word'], dec_pos=params['dec_pos'],
    )
    packed.update(stack_tblocks(params['enc_layers'], 'e'))

    dec = params['dec_layers']
    packed['d_wq'] = jnp.stack([qkv(b['attn']['wq']) for b in dec])
    packed['d_wk'] = jnp.stack([qkv(b['attn']['wk']) for b in dec])
    packed['d_wv'] = jnp.stack([qkv(b['attn']['wv']) for b in dec])
    packed['d_wo'] = jnp.stack([b['attn']['wo'].T for b in dec])
    packed['d_bo'] = jnp.stack([row(b['attn']['bo'], EMBED) for b in dec])
    packed['d_lng'] = jnp.stack([row(b['ln_g'], EMBED) for b in dec])
    packed['d_lnb'] = jnp.stack([row(b['ln_b'], EMBED) for b in dec])
    packed.update(stack_tblocks([b['tb'] for b in dec], 'c'))

    packed['fc_w'] = (jnp.zeros((EMBED, VPAD), jnp.float32)
                      .at[:, :TRG_VOCAB].set(params['fc_w'].T))
    packed['fc_b'] = (jnp.zeros((1, VPAD), jnp.float32)
                      .at[:, :TRG_VOCAB].set(params['fc_b']))
    return packed


# --------------------------------- main --------------------------------------

if __name__ == "__main__":
    root = jax.random.PRNGKey(0)
    kp, ks, kt = jax.random.split(root, 3)

    params = init_params(kp)
    packed = pack_params(params)

    N, Ls, Lt = 2, 8, 8
    src = jax.random.randint(ks, (N, Ls), 0, SRC_VOCAB, dtype=jnp.int32)
    trg = jax.random.randint(kt, (N, Lt), 0, TRG_VOCAB, dtype=jnp.int32)

    fwd = jax.jit(transformer_forward)
    out = fwd(packed, src, trg)
    out = jax.block_until_ready(out)

    assert out.shape == (N, Lt, TRG_VOCAB)
    assert bool(jnp.all(jnp.isfinite(out)))
    print("KERNEL_OK")
</pallas_src>

<mosaic_0001>
module attributes {stable_mosaic.version = 11 : i64} {
  func.func @_transformer_kernel(%arg0: i32, %arg1: memref<1x8x32xf32, #tpu.memory_space<vmem>>, %arg2: memref<1x8x32xf32, #tpu.memory_space<vmem>>, %arg3: memref<1x1x8xf32, #tpu.memory_space<vmem>>, %arg4: memref<2x32x32xf32, #tpu.memory_space<vmem>>, %arg5: memref<2x32x32xf32, #tpu.memory_space<vmem>>, %arg6: memref<2x32x32xf32, #tpu.memory_space<vmem>>, %arg7: memref<2x32x32xf32, #tpu.memory_space<vmem>>, %arg8: memref<2x1x32xf32, #tpu.memory_space<vmem>>, %arg9: memref<2x1x32xf32, #tpu.memory_space<vmem>>, %arg10: memref<2x1x32xf32, #tpu.memory_space<vmem>>, %arg11: memref<2x1x32xf32, #tpu.memory_space<vmem>>, %arg12: memref<2x1x32xf32, #tpu.memory_space<vmem>>, %arg13: memref<2x32x128xf32, #tpu.memory_space<vmem>>, %arg14: memref<2x1x128xf32, #tpu.memory_space<vmem>>, %arg15: memref<2x128x32xf32, #tpu.memory_space<vmem>>, %arg16: memref<2x1x32xf32, #tpu.memory_space<vmem>>, %arg17: memref<2x32x32xf32, #tpu.memory_space<vmem>>, %arg18: memref<2x32x32xf32, #tpu.memory_space<vmem>>, %arg19: memref<2x32x32xf32, #tpu.memory_space<vmem>>, %arg20: memref<2x32x32xf32, #tpu.memory_space<vmem>>, %arg21: memref<2x1x32xf32, #tpu.memory_space<vmem>>, %arg22: memref<2x1x32xf32, #tpu.memory_space<vmem>>, %arg23: memref<2x1x32xf32, #tpu.memory_space<vmem>>, %arg24: memref<2x32x32xf32, #tpu.memory_space<vmem>>, %arg25: memref<2x32x32xf32, #tpu.memory_space<vmem>>, %arg26: memref<2x32x32xf32, #tpu.memory_space<vmem>>, %arg27: memref<2x32x32xf32, #tpu.memory_space<vmem>>, %arg28: memref<2x1x32xf32, #tpu.memory_space<vmem>>, %arg29: memref<2x1x32xf32, #tpu.memory_space<vmem>>, %arg30: memref<2x1x32xf32, #tpu.memory_space<vmem>>, %arg31: memref<2x1x32xf32, #tpu.memory_space<vmem>>, %arg32: memref<2x1x32xf32, #tpu.memory_space<vmem>>, %arg33: memref<2x32x128xf32, #tpu.memory_space<vmem>>, %arg34: memref<2x1x128xf32, #tpu.memory_space<vmem>>, %arg35: memref<2x128x32xf32, #tpu.memory_space<vmem>>, %arg36: memref<2x1x32xf32, #tpu.memory_space<vmem>>, %arg37: memref<32x128xf32, #tpu.memory_space<vmem>>, %arg38: memref<1x128xf32, #tpu.memory_space<vmem>>, %arg39: memref<1x8x128xf32, #tpu.memory_space<vmem>>) attributes {dimension_semantics = [#tpu.dimension_semantics<parallel>], iteration_bounds = array<i64: 2>, scalar_prefetch = 0 : i64, scratch_operands = 0 : i64, tpu.core_type = #tpu.core_type<tc>, window_params = [{transform_indices = @transform_0, window_bounds = array<i64: 1, 8, 32>}, {transform_indices = @transform_1, window_bounds = array<i64: 1, 8, 32>}, {transform_indices = @transform_2, window_bounds = array<i64: 1, 1, 8>}, {pipeline_mode = #tpu.pipeline_mode<synchronous>, transform_indices = @transform_3, window_bounds = array<i64: 2, 32, 32>}, {pipeline_mode = #tpu.pipeline_mode<synchronous>, transform_indices = @transform_4, window_bounds = array<i64: 2, 32, 32>}, {pipeline_mode = #tpu.pipeline_mode<synchronous>, transform_indices = @transform_5, window_bounds = array<i64: 2, 32, 32>}, {pipeline_mode = #tpu.pipeline_mode<synchronous>, transform_indices = @transform_6, window_bounds = array<i64: 2, 32, 32>}, {pipeline_mode = #tpu.pipeline_mode<synchronous>, transform_indices = @transform_7, window_bounds = array<i64: 2, 1, 32>}, {pipeline_mode = #tpu.pipeline_mode<synchronous>, transform_indices = @transform_8, window_bounds = array<i64: 2, 1, 32>}, {pipeline_mode = #tpu.pipeline_mode<synchronous>, transform_indices = @transform_9, window_bounds = array<i64: 2, 1, 32>}, {pipeline_mode = #tpu.pipeline_mode<synchronous>, transform_indices = @transform_10, window_bounds = array<i64: 2, 1, 32>}, {pipeline_mode = #tpu.pipeline_mode<synchronous>, transform_indices = @transform_11, window_bounds = array<i64: 2, 1, 32>}, {pipeline_mode = #tpu.pipeline_mode<synchronous>, transform_indices = @transform_12, window_bounds = array<i64: 2, 32, 128>}, {pipeline_mode = #tpu.pipeline_mode<synchronous>, transform_indices = @transform_13, window_bounds = array<i64: 2, 1, 128>}, {pipeline_mode = #tpu.pipeline_mode<synchronous>, transform_indices = @transform_14, window_bounds = array<i64: 2, 128, 32>}, {pipeline_mode = #tpu.pipeline_mode<synchronous>, transform_indices = @transform_15, window_bounds = array<i64: 2, 1, 32>}, {pipeline_mode = #tpu.pipeline_mode<synchronous>, transform_indices = @transform_16, window_bounds = array<i64: 2, 32, 32>}, {pipeline_mode = #tpu.pipeline_mode<synchronous>, transform_indices = @transform_17, window_bounds = array<i64: 2, 32, 32>}, {pipeline_mode = #tpu.pipeline_mode<synchronous>, transform_indices = @transform_18, window_bounds = array<i64: 2, 32, 32>}, {pipeline_mode = #tpu.pipeline_mode<synchronous>, transform_indices = @transform_19, window_bounds = array<i64: 2, 32, 32>}, {pipeline_mode = #tpu.pipeline_mode<synchronous>, transform_indices = @transform_20, window_bounds = array<i64: 2, 1, 32>}, {pipeline_mode = #tpu.pipeline_mode<synchronous>, transform_indices = @transform_21, window_bounds = array<i64: 2, 1, 32>}, {pipeline_mode = #tpu.pipeline_mode<synchronous>, transform_indices = @transform_22, window_bounds = array<i64: 2, 1, 32>}, {pipeline_mode = #tpu.pipeline_mode<synchronous>, transform_indices = @transform_23, window_bounds = array<i64: 2, 32, 32>}, {pipeline_mode = #tpu.pipeline_mode<synchronous>, transform_indices = @transform_24, window_bounds = array<i64: 2, 32, 32>}, {pipeline_mode = #tpu.pipeline_mode<synchronous>, transform_indices = @transform_25, window_bounds = array<i64: 2, 32, 32>}, {pipeline_mode = #tpu.pipeline_mode<synchronous>, transform_indices = @transform_26, window_bounds = array<i64: 2, 32, 32>}, {pipeline_mode = #tpu.pipeline_mode<synchronous>, transform_indices = @transform_27, window_bounds = array<i64: 2, 1, 32>}, {pipeline_mode = #tpu.pipeline_mode<synchronous>, transform_indices = @transform_28, window_bounds = array<i64: 2, 1, 32>}, {pipeline_mode = #tpu.pipeline_mode<synchronous>, transform_indices = @transform_29, window_bounds = array<i64: 2, 1, 32>}, {pipeline_mode = #tpu.pipeline_mode<synchronous>, transform_indices = @transform_30, window_bounds = array<i64: 2, 1, 32>}, {pipeline_mode = #tpu.pipeline_mode<synchronous>, transform_indices = @transform_31, window_bounds = array<i64: 2, 1, 32>}, {pipeline_mode = #tpu.pipeline_mode<synchronous>, transform_indices = @transform_32, window_bounds = array<i64: 2, 32, 128>}, {pipeline_mode = #tpu.pipeline_mode<synchronous>, transform_indices = @transform_33, window_bounds = array<i64: 2, 1, 128>}, {pipeline_mode = #tpu.pipeline_mode<synchronous>, transform_indices = @transform_34, window_bounds = array<i64: 2, 128, 32>}, {pipeline_mode = #tpu.pipeline_mode<synchronous>, transform_indices = @transform_35, window_bounds = array<i64: 2, 1, 32>}, {pipeline_mode = #tpu.pipeline_mode<synchronous>, transform_indices = @transform_36, window_bounds = array<i64: 32, 128>}, {pipeline_mode = #tpu.pipeline_mode<synchronous>, transform_indices = @transform_37, window_bounds = array<i64: 1, 128>}, {transform_indices = @transform_38, window_bounds = array<i64: 1, 8, 128>}]} {
    %c0 = arith.constant 0 : index
    %c0_0 = arith.constant 0 : index
    %c0_1 = arith.constant 0 : index
    %0 = vector.load %arg3[%c0, %c0_0, %c0_1] : memref<1x1x8xf32, #tpu.memory_space<vmem>>, vector<1x1x8xf32>
    %1 = vector.shape_cast %0 : vector<1x1x8xf32> to vector<1x8xf32>
    %cst = arith.constant 0.000000e+00 : f32
    %2 = vector.broadcast %cst : f32 to vector<1x8xf32>
    %3 = arith.cmpf one, %1, %2 : vector<1x8xf32>
    %4 = tpu.iota {dimensions = array<i32: 0>} : vector<8x8xi32>
    %5 = tpu.iota {dimensions = array<i32: 1>} : vector<8x8xi32>
    %6 = arith.cmpi sle, %5, %4 : vector<8x8xi32>
    %c0_2 = arith.constant 0 : index
    %c0_3 = arith.constant 0 : index
    %c0_4 = arith.constant 0 : index
    %7 = vector.load %arg1[%c0_2, %c0_3, %c0_4] : memref<1x8x32xf32, #tpu.memory_space<vmem>>, vector<1x8x32xf32>
    %8 = vector.shape_cast %7 : vector<1x8x32xf32> to vector<8x32xf32>
    %c0_5 = arith.constant 0 : index
    %c0_6 = arith.constant 0 : index
    %c0_7 = arith.constant 0 : index
    %9 = vector.load %arg4[%c0_5, %c0_6, %c0_7] : memref<2x32x32xf32, #tpu.memory_space<vmem>>, vector<1x32x32xf32>
    %10 = vector.shape_cast %9 : vector<1x32x32xf32> to vector<32x32xf32>
    %c0_8 = arith.constant 0 : index
    %c0_9 = arith.constant 0 : index
    %c0_10 = arith.constant 0 : index
    %11 = vector.load %arg5[%c0_8, %c0_9, %c0_10] : memref<2x32x32xf32, #tpu.memory_space<vmem>>, vector<1x32x32xf32>
    %12 = vector.shape_cast %11 : vector<1x32x32xf32> to vector<32x32xf32>
    %c0_11 = arith.constant 0 : index
    %c0_12 = arith.constant 0 : index
    %c0_13 = arith.constant 0 : index
    %13 = vector.load %arg6[%c0_11, %c0_12, %c0_13] : memref<2x32x32xf32, #tpu.memory_space<vmem>>, vector<1x32x32xf32>
    %14 = vector.shape_cast %13 : vector<1x32x32xf32> to vector<32x32xf32>
    %c0_14 = arith.constant 0 : index
    %c0_15 = arith.constant 0 : index
    %c0_16 = arith.constant 0 : index
    %15 = vector.load %arg7[%c0_14, %c0_15, %c0_16] : memref<2x32x32xf32, #tpu.memory_space<vmem>>, vector<1x32x32xf32>
    %16 = vector.shape_cast %15 : vector<1x32x32xf32> to vector<32x32xf32>
    %c0_17 = arith.constant 0 : index
    %c0_18 = arith.constant 0 : index
    %c0_19 = arith.constant 0 : index
    %17 = vector.load %arg8[%c0_17, %c0_18, %c0_19] : memref<2x1x32xf32, #tpu.memory_space<vmem>>, vector<1x1x32xf32>
    %18 = vector.shape_cast %17 : vector<1x1x32xf32> to vector<1x32xf32>
    %cst_20 = arith.constant dense<0.000000e+00> : vector<8x32xf32>
    %19 = tpu.matmul %8, %10, %cst_20 {dimension_numbers = #tpu.dot_dimension_numbers<[1], [0], [0], [1], [0, 0, 1, 1], [], []>} : vector<8x32xf32>, vector<32x32xf32>, vector<8x32xf32> -> vector<8x32xf32>
    %cst_21 = arith.constant dense<0.000000e+00> : vector<8x32xf32>
    %20 = tpu.matmul %8, %12, %cst_21 {dimension_numbers = #tpu.dot_dimension_numbers<[1], [0], [0], [1], [0, 0, 1, 1], [], []>} : vector<8x32xf32>, vector<32x32xf32>, vector<8x32xf32> -> vector<8x32xf32>
    %cst_22 = arith.constant dense<0.000000e+00> : vector<8x32xf32>
    %21 = tpu.matmul %8, %14, %cst_22 {dimension_numbers = #tpu.dot_dimension_numbers<[1], [0], [0], [1], [0, 0, 1, 1], [], []>} : vector<8x32xf32>, vector<32x32xf32>, vector<8x32xf32> -> vector<8x32xf32>
    %22 = vector.extract_strided_slice %19 {offsets = [0, 0], sizes = [8, 8], strides = [1, 1]} : vector<8x32xf32> to vector<8x8xf32>
    %23 = vector.extract_strided_slice %20 {offsets = [0, 0], sizes = [8, 8], strides = [1, 1]} : vector<8x32xf32> to vector<8x8xf32>
    %24 = tpu.transpose %23, [1, 0] : vector<8x8xf32> -> vector<8x8xf32>
    %cst_23 = arith.constant dense<0.000000e+00> : vector<8x8xf32>
    %25 = tpu.matmul %22, %24, %cst_23 {dimension_numbers = #tpu.dot_dimension_numbers<[1], [0], [0], [1], [0, 0, 1, 1], [], []>} : vector<8x8xf32>, vector<8x8xf32>, vector<8x8xf32> -> vector<8x8xf32>
    %cst_24 = arith.constant -1.000000e+20 : f32
    %26 = vector.shape_cast %3 : vector<1x8xi1> to vector<1x8xi1>
    %27 = vector.broadcast %26 : vector<1x8xi1> to vector<8x8xi1>
    %28 = vector.broadcast %cst_24 : f32 to vector<8x8xf32>
    %29 = arith.select %27, %25, %28 : vector<8x8xi1>, vector<8x8xf32>
    %cst_25 = arith.constant 0.176776692 : f32
    %30 = vector.broadcast %cst_25 : f32 to vector<8x8xf32>
    %31 = arith.mulf %29, %30 : vector<8x8xf32>
    %cst_26 = arith.constant dense<0xFF800000> : vector<8xf32>
    %32 = vector.multi_reduction <maximumf>, %31, %cst_26 [1] : vector<8x8xf32> to vector<8xf32>
    %33 = vector.shape_cast %32 : vector<8xf32> to vector<8x1xf32>
    %34 = vector.broadcast %33 : vector<8x1xf32> to vector<8x8xf32>
    %35 = arith.subf %31, %34 : vector<8x8xf32>
    %36 = math.exp %35 : vector<8x8xf32>
    %cst_27 = arith.constant dense<0.000000e+00> : vector<8xf32>
    %37 = vector.multi_reduction <add>, %36, %cst_27 [1] : vector<8x8xf32> to vector<8xf32>
    %38 = vector.shape_cast %37 : vector<8xf32> to vector<8x1xf32>
    %39 = tpu.reciprocal %38 {approx = true} : vector<8x1xf32> -> vector<8x1xf32>
    %40 = vector.broadcast %39 : vector<8x1xf32> to vector<8x8xf32>
    %41 = arith.mulf %36, %40 : vector<8x8xf32>
    %42 = vector.extract_strided_slice %21 {offsets = [0, 0], sizes = [8, 8], strides = [1, 1]} : vector<8x32xf32> to vector<8x8xf32>
    %cst_28 = arith.constant dense<0.000000e+00> : vector<8x8xf32>
    %43 = tpu.matmul %41, %42, %cst_28 {dimension_numbers = #tpu.dot_dimension_numbers<[1], [0], [0], [1], [0, 0, 1, 1], [], []>} : vector<8x8xf32>, vector<8x8xf32>, vector<8x8xf32> -> vector<8x8xf32>
    %44 = vector.extract_strided_slice %19 {offsets = [0, 8], sizes = [8, 8], strides = [1, 1]} : vector<8x32xf32> to vector<8x8xf32>
    %45 = vector.extract_strided_slice %20 {offsets = [0, 8], sizes = [8, 8], strides = [1, 1]} : vector<8x32xf32> to vector<8x8xf32>
    %46 = tpu.transpose %45, [1, 0] : vector<8x8xf32> -> vector<8x8xf32>
    %cst_29 = arith.constant dense<0.000000e+00> : vector<8x8xf32>
    %47 = tpu.matmul %44, %46, %cst_29 {dimension_numbers = #tpu.dot_dimension_numbers<[1], [0], [0], [1], [0, 0, 1, 1], [], []>} : vector<8x8xf32>, vector<8x8xf32>, vector<8x8xf32> -> vector<8x8xf32>
    %cst_30 = arith.constant -1.000000e+20 : f32
    %48 = vector.shape_cast %3 : vector<1x8xi1> to vector<1x8xi1>
    %49 = vector.broadcast %48 : vector<1x8xi1> to vector<8x8xi1>
    %50 = vector.broadcast %cst_30 : f32 to vector<8x8xf32>
    %51 = arith.select %49, %47, %50 : vector<8x8xi1>, vector<8x8xf32>
    %cst_31 = arith.constant 0.176776692 : f32
    %52 = vector.broadcast %cst_31 : f32 to vector<8x8xf32>
    %53 = arith.mulf %51, %52 : vector<8x8xf32>
    %cst_32 = arith.constant dense<0xFF800000> : vector<8xf32>
    %54 = vector.multi_reduction <maximumf>, %53, %cst_32 [1] : vector<8x8xf32> to vector<8xf32>
    %55 = vector.shape_cast %54 : vector<8xf32> to vector<8x1xf32>
    %56 = vector.broadcast %55 : vector<8x1xf32> to vector<8x8xf32>
    %57 = arith.subf %53, %56 : vector<8x8xf32>
    %58 = math.exp %57 : vector<8x8xf32>
    %cst_33 = arith.constant dense<0.000000e+00> : vector<8xf32>
    %59 = vector.multi_reduction <add>, %58, %cst_33 [1] : vector<8x8xf32> to vector<8xf32>
    %60 = vector.shape_cast %59 : vector<8xf32> to vector<8x1xf32>
    %61 = tpu.reciprocal %60 {approx = true} : vector<8x1xf32> -> vector<8x1xf32>
    %62 = vector.broadcast %61 : vector<8x1xf32> to vector<8x8xf32>
    %63 = arith.mulf %58, %62 : vector<8x8xf32>
    %64 = vector.extract_strided_slice %21 {offsets = [0, 8], sizes = [8, 8], strides = [1, 1]} : vector<8x32xf32> to vector<8x8xf32>
    %cst_34 = arith.constant dense<0.000000e+00> : vector<8x8xf32>
    %65 = tpu.matmul %63, %64, %cst_34 {dimension_numbers = #tpu.dot_dimension_numbers<[1], [0], [0], [1], [0, 0, 1, 1], [], []>} : vector<8x8xf32>, vector<8x8xf32>, vector<8x8xf32> -> vector<8x8xf32>
    %66 = vector.extract_strided_slice %19 {offsets = [0, 16], sizes = [8, 8], strides = [1, 1]} : vector<8x32xf32> to vector<8x8xf32>
    %67 = vector.extract_strided_slice %20 {offsets = [0, 16], sizes = [8, 8], strides = [1, 1]} : vector<8x32xf32> to vector<8x8xf32>
    %68 = tpu.transpose %67, [1, 0] : vector<8x8xf32> -> vector<8x8xf32>
    %cst_35 = arith.constant dense<0.000000e+00> : vector<8x8xf32>
    %69 = tpu.matmul %66, %68, %cst_35 {dimension_numbers = #tpu.dot_dimension_numbers<[1], [0], [0], [1], [0, 0, 1, 1], [], []>} : vector<8x8xf32>, vector<8x8xf32>, vector<8x8xf32> -> vector<8x8xf32>
    %cst_36 = arith.constant -1.000000e+20 : f32
    %70 = vector.shape_cast %3 : vector<1x8xi1> to vector<1x8xi1>
    %71 = vector.broadcast %70 : vector<1x8xi1> to vector<8x8xi1>
    %72 = vector.broadcast %cst_36 : f32 to vector<8x8xf32>
    %73 = arith.select %71, %69, %72 : vector<8x8xi1>, vector<8x8xf32>
    %cst_37 = arith.constant 0.176776692 : f32
    %74 = vector.broadcast %cst_37 : f32 to vector<8x8xf32>
    %75 = arith.mulf %73, %74 : vector<8x8xf32>
    %cst_38 = arith.constant dense<0xFF800000> : vector<8xf32>
    %76 = vector.multi_reduction <maximumf>, %75, %cst_38 [1] : vector<8x8xf32> to vector<8xf32>
    %77 = vector.shape_cast %76 : vector<8xf32> to vector<8x1xf32>
    %78 = vector.broadcast %77 : vector<8x1xf32> to vector<8x8xf32>
    %79 = arith.subf %75, %78 : vector<8x8xf32>
    %80 = math.exp %79 : vector<8x8xf32>
    %cst_39 = arith.constant dense<0.000000e+00> : vector<8xf32>
    %81 = vector.multi_reduction <add>, %80, %cst_39 [1] : vector<8x8xf32> to vector<8xf32>
    %82 = vector.shape_cast %81 : vector<8xf32> to vector<8x1xf32>
    %83 = tpu.reciprocal %82 {approx = true} : vector<8x1xf32> -> vector<8x1xf32>
    %84 = vector.broadcast %83 : vector<8x1xf32> to vector<8x8xf32>
    %85 = arith.mulf %80, %84 : vector<8x8xf32>
    %86 = vector.extract_strided_slice %21 {offsets = [0, 16], sizes = [8, 8], strides = [1, 1]} : vector<8x32xf32> to vector<8x8xf32>
    %cst_40 = arith.constant dense<0.000000e+00> : vector<8x8xf32>
    %87 = tpu.matmul %85, %86, %cst_40 {dimension_numbers = #tpu.dot_dimension_numbers<[1], [0], [0], [1], [0, 0, 1, 1], [], []>} : vector<8x8xf32>, vector<8x8xf32>, vector<8x8xf32> -> vector<8x8xf32>
    %88 = vector.extract_strided_slice %19 {offsets = [0, 24], sizes = [8, 8], strides = [1, 1]} : vector<8x32xf32> to vector<8x8xf32>
    %89 = vector.extract_strided_slice %20 {offsets = [0, 24], sizes = [8, 8], strides = [1, 1]} : vector<8x32xf32> to vector<8x8xf32>
    %90 = tpu.transpose %89, [1, 0] : vector<8x8xf32> -> vector<8x8xf32>
    %cst_41 = arith.constant dense<0.000000e+00> : vector<8x8xf32>
    %91 = tpu.matmul %88, %90, %cst_41 {dimension_numbers = #tpu.dot_dimension_numbers<[1], [0], [0], [1], [0, 0, 1, 1], [], []>} : vector<8x8xf32>, vector<8x8xf32>, vector<8x8xf32> -> vector<8x8xf32>
    %cst_42 = arith.constant -1.000000e+20 : f32
    %92 = vector.shape_cast %3 : vector<1x8xi1> to vector<1x8xi1>
    %93 = vector.broadcast %92 : vector<1x8xi1> to vector<8x8xi1>
    %94 = vector.broadcast %cst_42 : f32 to vector<8x8xf32>
    %95 = arith.select %93, %91, %94 : vector<8x8xi1>, vector<8x8xf32>
    %cst_43 = arith.constant 0.176776692 : f32
    %96 = vector.broadcast %cst_43 : f32 to vector<8x8xf32>
    %97 = arith.mulf %95, %96 : vector<8x8xf32>
    %cst_44 = arith.constant dense<0xFF800000> : vector<8xf32>
    %98 = vector.multi_reduction <maximumf>, %97, %cst_44 [1] : vector<8x8xf32> to vector<8xf32>
    %99 = vector.shape_cast %98 : vector<8xf32> to vector<8x1xf32>
    %100 = vector.broadcast %99 : vector<8x1xf32> to vector<8x8xf32>
    %101 = arith.subf %97, %100 : vector<8x8xf32>
    %102 = math.exp %101 : vector<8x8xf32>
    %cst_45 = arith.constant dense<0.000000e+00> : vector<8xf32>
    %103 = vector.multi_reduction <add>, %102, %cst_45 [1] : vector<8x8xf32> to vector<8xf32>
    %104 = vector.shape_cast %103 : vector<8xf32> to vector<8x1xf32>
    %105 = tpu.reciprocal %104 {approx = true} : vector<8x1xf32> -> vector<8x1xf32>
    %106 = vector.broadcast %105 : vector<8x1xf32> to vector<8x8xf32>
    %107 = arith.mulf %102, %106 : vector<8x8xf32>
    %108 = vector.extract_strided_slice %21 {offsets = [0, 24], sizes = [8, 8], strides = [1, 1]} : vector<8x32xf32> to vector<8x8xf32>
    %cst_46 = arith.constant dense<0.000000e+00> : vector<8x8xf32>
    %109 = tpu.matmul %107, %108, %cst_46 {dimension_numbers = #tpu.dot_dimension_numbers<[1], [0], [0], [1], [0, 0, 1, 1], [], []>} : vector<8x8xf32>, vector<8x8xf32>, vector<8x8xf32> -> vector<8x8xf32>
    %110 = tpu.concatenate %43, %65, %87, %109 in 1 : vector<8x8xf32>, vector<8x8xf32>, vector<8x8xf32>, vector<8x8xf32> -> vector<8x32xf32>
    %cst_47 = arith.constant dense<0.000000e+00> : vector<8x32xf32>
    %111 = tpu.matmul %110, %16, %cst_47 {dimension_numbers = #tpu.dot_dimension_numbers<[1], [0], [0], [1], [0, 0, 1, 1], [], []>} : vector<8x32xf32>, vector<32x32xf32>, vector<8x32xf32> -> vector<8x32xf32>
    %112 = vector.broadcast %18 : vector<1x32xf32> to vector<8x32xf32>
    %113 = arith.addf %111, %112 : vector<8x32xf32>
    %c0_48 = arith.constant 0 : index
    %c0_49 = arith.constant 0 : index
    %c0_50 = arith.constant 0 : index
    %114 = vector.load %arg9[%c0_48, %c0_49, %c0_50] : memref<2x1x32xf32, #tpu.memory_space<vmem>>, vector<1x1x32xf32>
    %115 = vector.shape_cast %114 : vector<1x1x32xf32> to vector<1x32xf32>
    %c0_51 = arith.constant 0 : index
    %c0_52 = arith.constant 0 : index
    %c0_53 = arith.constant 0 : index
    %116 = vector.load %arg10[%c0_51, %c0_52, %c0_53] : memref<2x1x32xf32, #tpu.memory_space<vmem>>, vector<1x1x32xf32>
    %117 = vector.shape_cast %116 : vector<1x1x32xf32> to vector<1x32xf32>
    %118 = arith.addf %113, %8 : vector<8x32xf32>
    %cst_54 = arith.constant dense<0.000000e+00> : vector<8xf32>
    %119 = vector.multi_reduction <add>, %118, %cst_54 [1] : vector<8x32xf32> to vector<8xf32>
    %120 = vector.shape_cast %119 : vector<8xf32> to vector<8x1xf32>
    %cst_55 = arith.constant 3.200000e+01 : f32
    %121 = vector.broadcast %cst_55 : f32 to vector<8x1xf32>
    %122 = arith.divf %120, %121 : vector<8x1xf32>
    %123 = vector.broadcast %122 : vector<8x1xf32> to vector<8x32xf32>
    %124 = arith.subf %118, %123 : vector<8x32xf32>
    %125 = arith.mulf %124, %124 : vector<8x32xf32>
    %cst_56 = arith.constant dense<0.000000e+00> : vector<8xf32>
    %126 = vector.multi_reduction <add>, %125, %cst_56 [1] : vector<8x32xf32> to vector<8xf32>
    %127 = vector.shape_cast %126 : vector<8xf32> to vector<8x1xf32>
    %cst_57 = arith.constant 3.200000e+01 : f32
    %128 = vector.broadcast %cst_57 : f32 to vector<8x1xf32>
    %129 = arith.divf %127, %128 : vector<8x1xf32>
    %130 = vector.broadcast %122 : vector<8x1xf32> to vector<8x32xf32>
    %131 = arith.subf %118, %130 : vector<8x32xf32>
    %cst_58 = arith.constant 9.99999974E-6 : f32
    %132 = vector.broadcast %cst_58 : f32 to vector<8x1xf32>
    %133 = arith.addf %129, %132 : vector<8x1xf32>
    %134 = math.rsqrt %133 : vector<8x1xf32>
    %135 = vector.broadcast %134 : vector<8x1xf32> to vector<8x32xf32>
    %136 = arith.mulf %131, %135 : vector<8x32xf32>
    %137 = vector.broadcast %115 : vector<1x32xf32> to vector<8x32xf32>
    %138 = arith.mulf %136, %137 : vector<8x32xf32>
    %139 = vector.broadcast %117 : vector<1x32xf32> to vector<8x32xf32>
    %140 = arith.addf %138, %139 : vector<8x32xf32>
    %c0_59 = arith.constant 0 : index
    %c0_60 = arith.constant 0 : index
    %c0_61 = arith.constant 0 : index
    %141 = vector.load %arg13[%c0_59, %c0_60, %c0_61] : memref<2x32x128xf32, #tpu.memory_space<vmem>>, vector<1x32x128xf32>
    %142 = vector.shape_cast %141 : vector<1x32x128xf32> to vector<32x128xf32>
    %c0_62 = arith.constant 0 : index
    %c0_63 = arith.constant 0 : index
    %c0_64 = arith.constant 0 : index
    %143 = vector.load %arg14[%c0_62, %c0_63, %c0_64] : memref<2x1x128xf32, #tpu.memory_space<vmem>>, vector<1x1x128xf32>
    %144 = vector.shape_cast %143 : vector<1x1x128xf32> to vector<1x128xf32>
    %c0_65 = arith.constant 0 : index
    %c0_66 = arith.constant 0 : index
    %c0_67 = arith.constant 0 : index
    %145 = vector.load %arg15[%c0_65, %c0_66, %c0_67] : memref<2x128x32xf32, #tpu.memory_space<vmem>>, vector<1x128x32xf32>
    %146 = vector.shape_cast %145 : vector<1x128x32xf32> to vector<128x32xf32>
    %c0_68 = arith.constant 0 : index
    %c0_69 = arith.constant 0 : index
    %c0_70 = arith.constant 0 : index
    %147 = vector.load %arg16[%c0_68, %c0_69, %c0_70] : memref<2x1x32xf32, #tpu.memory_space<vmem>>, vector<1x1x32xf32>
    %148 = vector.shape_cast %147 : vector<1x1x32xf32> to vector<1x32xf32>
    %cst_71 = arith.constant dense<0.000000e+00> : vector<8x128xf32>
    %149 = tpu.matmul %140, %142, %cst_71 {dimension_numbers = #tpu.dot_dimension_numbers<[1], [0], [0], [1], [0, 0, 1, 1], [], []>} : vector<8x32xf32>, vector<32x128xf32>, vector<8x128xf32> -> vector<8x128xf32>
    %150 = vector.broadcast %144 : vector<1x128xf32> to vector<8x128xf32>
    %151 = arith.addf %149, %150 : vector<8x128xf32>
    %cst_72 = arith.constant 0.000000e+00 : f32
    %152 = vector.broadcast %cst_72 : f32 to vector<8x128xf32>
    %153 = arith.maximumf %151, %152 : vector<8x128xf32>
    %cst_73 = arith.constant dense<0.000000e+00> : vector<8x32xf32>
    %154 = tpu.matmul %153, %146, %cst_73 {dimension_numbers = #tpu.dot_dimension_numbers<[1], [0], [0], [1], [0, 0, 1, 1], [], []>} : vector<8x128xf32>, vector<128x32xf32>, vector<8x32xf32> -> vector<8x32xf32>
    %155 = vector.broadcast %148 : vector<1x32xf32> to vector<8x32xf32>
    %156 = arith.addf %154, %155 : vector<8x32xf32>
    %c0_74 = arith.constant 0 : index
    %c0_75 = arith.constant 0 : index
    %c0_76 = arith.constant 0 : index
    %157 = vector.load %arg11[%c0_74, %c0_75, %c0_76] : memref<2x1x32xf32, #tpu.memory_space<vmem>>, vector<1x1x32xf32>
    %158 = vector.shape_cast %157 : vector<1x1x32xf32> to vector<1x32xf32>
    %c0_77 = arith.constant 0 : index
    %c0_78 = arith.constant 0 : index
    %c0_79 = arith.constant 0 : index
    %159 = vector.load %arg12[%c0_77, %c0_78, %c0_79] : memref<2x1x32xf32, #tpu.memory_space<vmem>>, vector<1x1x32xf32>
    %160 = vector.shape_cast %159 : vector<1x1x32xf32> to vector<1x32xf32>
    %161 = arith.addf %156, %140 : vector<8x32xf32>
    %cst_80 = arith.constant dense<0.000000e+00> : vector<8xf32>
    %162 = vector.multi_reduction <add>, %161, %cst_80 [1] : vector<8x32xf32> to vector<8xf32>
    %163 = vector.shape_cast %162 : vector<8xf32> to vector<8x1xf32>
    %cst_81 = arith.constant 3.200000e+01 : f32
    %164 = vector.broadcast %cst_81 : f32 to vector<8x1xf32>
    %165 = arith.divf %163, %164 : vector<8x1xf32>
    %166 = vector.broadcast %165 : vector<8x1xf32> to vector<8x32xf32>
    %167 = arith.subf %161, %166 : vector<8x32xf32>
    %168 = arith.mulf %167, %167 : vector<8x32xf32>
    %cst_82 = arith.constant dense<0.000000e+00> : vector<8xf32>
    %169 = vector.multi_reduction <add>, %168, %cst_82 [1] : vector<8x32xf32> to vector<8xf32>
    %170 = vector.shape_cast %169 : vector<8xf32> to vector<8x1xf32>
    %cst_83 = arith.constant 3.200000e+01 : f32
    %171 = vector.broadcast %cst_83 : f32 to vector<8x1xf32>
    %172 = arith.divf %170, %171 : vector<8x1xf32>
    %173 = vector.broadcast %165 : vector<8x1xf32> to vector<8x32xf32>
    %174 = arith.subf %161, %173 : vector<8x32xf32>
    %cst_84 = arith.constant 9.99999974E-6 : f32
    %175 = vector.broadcast %cst_84 : f32 to vector<8x1xf32>
    %176 = arith.addf %172, %175 : vector<8x1xf32>
    %177 = math.rsqrt %176 : vector<8x1xf32>
    %178 = vector.broadcast %177 : vector<8x1xf32> to vector<8x32xf32>
    %179 = arith.mulf %174, %178 : vector<8x32xf32>
    %180 = vector.broadcast %158 : vector<1x32xf32> to vector<8x32xf32>
    %181 = arith.mulf %179, %180 : vector<8x32xf32>
    %182 = vector.broadcast %160 : vector<1x32xf32> to vector<8x32xf32>
    %183 = arith.addf %181, %182 : vector<8x32xf32>
    %c1 = arith.constant 1 : index
    %c0_85 = arith.constant 0 : index
    %c0_86 = arith.constant 0 : index
    %184 = vector.load %arg4[%c1, %c0_85, %c0_86] : memref<2x32x32xf32, #tpu.memory_space<vmem>>, vector<1x32x32xf32>
    %185 = vector.shape_cast %184 : vector<1x32x32xf32> to vector<32x32xf32>
    %c1_87 = arith.constant 1 : index
    %c0_88 = arith.constant 0 : index
    %c0_89 = arith.constant 0 : index
    %186 = vector.load %arg5[%c1_87, %c0_88, %c0_89] : memref<2x32x32xf32, #tpu.memory_space<vmem>>, vector<1x32x32xf32>
    %187 = vector.shape_cast %186 : vector<1x32x32xf32> to vector<32x32xf32>
    %c1_90 = arith.constant 1 : index
    %c0_91 = arith.constant 0 : index
    %c0_92 = arith.constant 0 : index
    %188 = vector.load %arg6[%c1_90, %c0_91, %c0_92] : memref<2x32x32xf32, #tpu.memory_space<vmem>>, vector<1x32x32xf32>
    %189 = vector.shape_cast %188 : vector<1x32x32xf32> to vector<32x32xf32>
    %c1_93 = arith.constant 1 : index
    %c0_94 = arith.constant 0 : index
    %c0_95 = arith.constant 0 : index
    %190 = vector.load %arg7[%c1_93, %c0_94, %c0_95] : memref<2x32x32xf32, #tpu.memory_space<vmem>>, vector<1x32x32xf32>
    %191 = vector.shape_cast %190 : vector<1x32x32xf32> to vector<32x32xf32>
    %c1_96 = arith.constant 1 : index
    %c0_97 = arith.constant 0 : index
    %c0_98 = arith.constant 0 : index
    %192 = vector.load %arg8[%c1_96, %c0_97, %c0_98] : memref<2x1x32xf32, #tpu.memory_space<vmem>>, vector<1x1x32xf32>
    %193 = vector.shape_cast %192 : vector<1x1x32xf32> to vector<1x32xf32>
    %cst_99 = arith.constant dense<0.000000e+00> : vector<8x32xf32>
    %194 = tpu.matmul %183, %185, %cst_99 {dimension_numbers = #tpu.dot_dimension_numbers<[1], [0], [0], [1], [0, 0, 1, 1], [], []>} : vector<8x32xf32>, vector<32x32xf32>, vector<8x32xf32> -> vector<8x32xf32>
    %cst_100 = arith.constant dense<0.000000e+00> : vector<8x32xf32>
    %195 = tpu.matmul %183, %187, %cst_100 {dimension_numbers = #tpu.dot_dimension_numbers<[1], [0], [0], [1], [0, 0, 1, 1], [], []>} : vector<8x32xf32>, vector<32x32xf32>, vector<8x32xf32> -> vector<8x32xf32>
    %cst_101 = arith.constant dense<0.000000e+00> : vector<8x32xf32>
    %196 = tpu.matmul %183, %189, %cst_101 {dimension_numbers = #tpu.dot_dimension_numbers<[1], [0], [0], [1], [0, 0, 1, 1], [], []>} : vector<8x32xf32>, vector<32x32xf32>, vector<8x32xf32> -> vector<8x32xf32>
    %197 = vector.extract_strided_slice %194 {offsets = [0, 0], sizes = [8, 8], strides = [1, 1]} : vector<8x32xf32> to vector<8x8xf32>
    %198 = vector.extract_strided_slice %195 {offsets = [0, 0], sizes = [8, 8], strides = [1, 1]} : vector<8x32xf32> to vector<8x8xf32>
    %199 = tpu.transpose %198, [1, 0] : vector<8x8xf32> -> vector<8x8xf32>
    %cst_102 = arith.constant dense<0.000000e+00> : vector<8x8xf32>
    %200 = tpu.matmul %197, %199, %cst_102 {dimension_numbers = #tpu.dot_dimension_numbers<[1], [0], [0], [1], [0, 0, 1, 1], [], []>} : vector<8x8xf32>, vector<8x8xf32>, vector<8x8xf32> -> vector<8x8xf32>
    %cst_103 = arith.constant -1.000000e+20 : f32
    %201 = vector.shape_cast %3 : vector<1x8xi1> to vector<1x8xi1>
    %202 = vector.broadcast %201 : vector<1x8xi1> to vector<8x8xi1>
    %203 = vector.broadcast %cst_103 : f32 to vector<8x8xf32>
    %204 = arith.select %202, %200, %203 : vector<8x8xi1>, vector<8x8xf32>
    %cst_104 = arith.constant 0.176776692 : f32
    %205 = vector.broadcast %cst_104 : f32 to vector<8x8xf32>
    %206 = arith.mulf %204, %205 : vector<8x8xf32>
    %cst_105 = arith.constant dense<0xFF800000> : vector<8xf32>
    %207 = vector.multi_reduction <maximumf>, %206, %cst_105 [1] : vector<8x8xf32> to vector<8xf32>
    %208 = vector.shape_cast %207 : vector<8xf32> to vector<8x1xf32>
    %209 = vector.broadcast %208 : vector<8x1xf32> to vector<8x8xf32>
    %210 = arith.subf %206, %209 : vector<8x8xf32>
    %211 = math.exp %210 : vector<8x8xf32>
    %cst_106 = arith.constant dense<0.000000e+00> : vector<8xf32>
    %212 = vector.multi_reduction <add>, %211, %cst_106 [1] : vector<8x8xf32> to vector<8xf32>
    %213 = vector.shape_cast %212 : vector<8xf32> to vector<8x1xf32>
    %214 = tpu.reciprocal %213 {approx = true} : vector<8x1xf32> -> vector<8x1xf32>
    %215 = vector.broadcast %214 : vector<8x1xf32> to vector<8x8xf32>
    %216 = arith.mulf %211, %215 : vector<8x8xf32>
    %217 = vector.extract_strided_slice %196 {offsets = [0, 0], sizes = [8, 8], strides = [1, 1]} : vector<8x32xf32> to vector<8x8xf32>
    %cst_107 = arith.constant dense<0.000000e+00> : vector<8x8xf32>
    %218 = tpu.matmul %216, %217, %cst_107 {dimension_numbers = #tpu.dot_dimension_numbers<[1], [0], [0], [1], [0, 0, 1, 1], [], []>} : vector<8x8xf32>, vector<8x8xf32>, vector<8x8xf32> -> vector<8x8xf32>
    %219 = vector.extract_strided_slice %194 {offsets = [0, 8], sizes = [8, 8], strides = [1, 1]} : vector<8x32xf32> to vector<8x8xf32>
    %220 = vector.extract_strided_slice %195 {offsets = [0, 8], sizes = [8, 8], strides = [1, 1]} : vector<8x32xf32> to vector<8x8xf32>
    %221 = tpu.transpose %220, [1, 0] : vector<8x8xf32> -> vector<8x8xf32>
    %cst_108 = arith.constant dense<0.000000e+00> : vector<8x8xf32>
    %222 = tpu.matmul %219, %221, %cst_108 {dimension_numbers = #tpu.dot_dimension_numbers<[1], [0], [0], [1], [0, 0, 1, 1], [], []>} : vector<8x8xf32>, vector<8x8xf32>, vector<8x8xf32> -> vector<8x8xf32>
    %cst_109 = arith.constant -1.000000e+20 : f32
    %223 = vector.shape_cast %3 : vector<1x8xi1> to vector<1x8xi1>
    %224 = vector.broadcast %223 : vector<1x8xi1> to vector<8x8xi1>
    %225 = vector.broadcast %cst_109 : f32 to vector<8x8xf32>
    %226 = arith.select %224, %222, %225 : vector<8x8xi1>, vector<8x8xf32>
    %cst_110 = arith.constant 0.176776692 : f32
    %227 = vector.broadcast %cst_110 : f32 to vector<8x8xf32>
    %228 = arith.mulf %226, %227 : vector<8x8xf32>
    %cst_111 = arith.constant dense<0xFF800000> : vector<8xf32>
    %229 = vector.multi_reduction <maximumf>, %228, %cst_111 [1] : vector<8x8xf32> to vector<8xf32>
    %230 = vector.shape_cast %229 : vector<8xf32> to vector<8x1xf32>
    %231 = vector.broadcast %230 : vector<8x1xf32> to vector<8x8xf32>
    %232 = arith.subf %228, %231 : vector<8x8xf32>
    %233 = math.exp %232 : vector<8x8xf32>
    %cst_112 = arith.constant dense<0.000000e+00> : vector<8xf32>
    %234 = vector.multi_reduction <add>, %233, %cst_112 [1] : vector<8x8xf32> to vector<8xf32>
    %235 = vector.shape_cast %234 : vector<8xf32> to vector<8x1xf32>
    %236 = tpu.reciprocal %235 {approx = true} : vector<8x1xf32> -> vector<8x1xf32>
    %237 = vector.broadcast %236 : vector<8x1xf32> to vector<8x8xf32>
    %238 = arith.mulf %233, %237 : vector<8x8xf32>
    %239 = vector.extract_strided_slice %196 {offsets = [0, 8], sizes = [8, 8], strides = [1, 1]} : vector<8x32xf32> to vector<8x8xf32>
    %cst_113 = arith.constant dense<0.000000e+00> : vector<8x8xf32>
    %240 = tpu.matmul %238, %239, %cst_113 {dimension_numbers = #tpu.dot_dimension_numbers<[1], [0], [0], [1], [0, 0, 1, 1], [], []>} : vector<8x8xf32>, vector<8x8xf32>, vector<8x8xf32> -> vector<8x8xf32>
    %241 = vector.extract_strided_slice %194 {offsets = [0, 16], sizes = [8, 8], strides = [1, 1]} : vector<8x32xf32> to vector<8x8xf32>
    %242 = vector.extract_strided_slice %195 {offsets = [0, 16], sizes = [8, 8], strides = [1, 1]} : vector<8x32xf32> to vector<8x8xf32>
    %243 = tpu.transpose %242, [1, 0] : vector<8x8xf32> -> vector<8x8xf32>
    %cst_114 = arith.constant dense<0.000000e+00> : vector<8x8xf32>
    %244 = tpu.matmul %241, %243, %cst_114 {dimension_numbers = #tpu.dot_dimension_numbers<[1], [0], [0], [1], [0, 0, 1, 1], [], []>} : vector<8x8xf32>, vector<8x8xf32>, vector<8x8xf32> -> vector<8x8xf32>
    %cst_115 = arith.constant -1.000000e+20 : f32
    %245 = vector.shape_cast %3 : vector<1x8xi1> to vector<1x8xi1>
    %246 = vector.broadcast %245 : vector<1x8xi1> to vector<8x8xi1>
    %247 = vector.broadcast %cst_115 : f32 to vector<8x8xf32>
    %248 = arith.select %246, %244, %247 : vector<8x8xi1>, vector<8x8xf32>
    %cst_116 = arith.constant 0.176776692 : f32
    %249 = vector.broadcast %cst_116 : f32 to vector<8x8xf32>
    %250 = arith.mulf %248, %249 : vector<8x8xf32>
    %cst_117 = arith.constant dense<0xFF800000> : vector<8xf32>
    %251 = vector.multi_reduction <maximumf>, %250, %cst_117 [1] : vector<8x8xf32> to vector<8xf32>
    %252 = vector.shape_cast %251 : vector<8xf32> to vector<8x1xf32>
    %253 = vector.broadcast %252 : vector<8x1xf32> to vector<8x8xf32>
    %254 = arith.subf %250, %253 : vector<8x8xf32>
    %255 = math.exp %254 : vector<8x8xf32>
    %cst_118 = arith.constant dense<0.000000e+00> : vector<8xf32>
    %256 = vector.multi_reduction <add>, %255, %cst_118 [1] : vector<8x8xf32> to vector<8xf32>
    %257 = vector.shape_cast %256 : vector<8xf32> to vector<8x1xf32>
    %258 = tpu.reciprocal %257 {approx = true} : vector<8x1xf32> -> vector<8x1xf32>
    %259 = vector.broadcast %258 : vector<8x1xf32> to vector<8x8xf32>
    %260 = arith.mulf %255, %259 : vector<8x8xf32>
    %261 = vector.extract_strided_slice %196 {offsets = [0, 16], sizes = [8, 8], strides = [1, 1]} : vector<8x32xf32> to vector<8x8xf32>
    %cst_119 = arith.constant dense<0.000000e+00> : vector<8x8xf32>
    %262 = tpu.matmul %260, %261, %cst_119 {dimension_numbers = #tpu.dot_dimension_numbers<[1], [0], [0], [1], [0, 0, 1, 1], [], []>} : vector<8x8xf32>, vector<8x8xf32>, vector<8x8xf32> -> vector<8x8xf32>
    %263 = vector.extract_strided_slice %194 {offsets = [0, 24], sizes = [8, 8], strides = [1, 1]} : vector<8x32xf32> to vector<8x8xf32>
    %264 = vector.extract_strided_slice %195 {offsets = [0, 24], sizes = [8, 8], strides = [1, 1]} : vector<8x32xf32> to vector<8x8xf32>
    %265 = tpu.transpose %264, [1, 0] : vector<8x8xf32> -> vector<8x8xf32>
    %cst_120 = arith.constant dense<0.000000e+00> : vector<8x8xf32>
    %266 = tpu.matmul %263, %265, %cst_120 {dimension_numbers = #tpu.dot_dimension_numbers<[1], [0], [0], [1], [0, 0, 1, 1], [], []>} : vector<8x8xf32>, vector<8x8xf32>, vector<8x8xf32> -> vector<8x8xf32>
    %cst_121 = arith.constant -1.000000e+20 : f32
    %267 = vector.shape_cast %3 : vector<1x8xi1> to vector<1x8xi1>
    %268 = vector.broadcast %267 : vector<1x8xi1> to vector<8x8xi1>
    %269 = vector.broadcast %cst_121 : f32 to vector<8x8xf32>
    %270 = arith.select %268, %266, %269 : vector<8x8xi1>, vector<8x8xf32>
    %cst_122 = arith.constant 0.176776692 : f32
    %271 = vector.broadcast %cst_122 : f32 to vector<8x8xf32>
    %272 = arith.mulf %270, %271 : vector<8x8xf32>
    %cst_123 = arith.constant dense<0xFF800000> : vector<8xf32>
    %273 = vector.multi_reduction <maximumf>, %272, %cst_123 [1] : vector<8x8xf32> to vector<8xf32>
    %274 = vector.shape_cast %273 : vector<8xf32> to vector<8x1xf32>
    %275 = vector.broadcast %274 : vector<8x1xf32> to vector<8x8xf32>
    %276 = arith.subf %272, %275 : vector<8x8xf32>
    %277 = math.exp %276 : vector<8x8xf32>
    %cst_124 = arith.constant dense<0.000000e+00> : vector<8xf32>
    %278 = vector.multi_reduction <add>, %277, %cst_124 [1] : vector<8x8xf32> to vector<8xf32>
    %279 = vector.shape_cast %278 : vector<8xf32> to vector<8x1xf32>
    %280 = tpu.reciprocal %279 {approx = true} : vector<8x1xf32> -> vector<8x1xf32>
    %281 = vector.broadcast %280 : vector<8x1xf32> to vector<8x8xf32>
    %282 = arith.mulf %277, %281 : vector<8x8xf32>
    %283 = vector.extract_strided_slice %196 {offsets = [0, 24], sizes = [8, 8], strides = [1, 1]} : vector<8x32xf32> to vector<8x8xf32>
    %cst_125 = arith.constant dense<0.000000e+00> : vector<8x8xf32>
    %284 = tpu.matmul %282, %283, %cst_125 {dimension_numbers = #tpu.dot_dimension_numbers<[1], [0], [0], [1], [0, 0, 1, 1], [], []>} : vector<8x8xf32>, vector<8x8xf32>, vector<8x8xf32> -> vector<8x8xf32>
    %285 = tpu.concatenate %218, %240, %262, %284 in 1 : vector<8x8xf32>, vector<8x8xf32>, vector<8x8xf32>, vector<8x8xf32> -> vector<8x32xf32>
    %cst_126 = arith.constant dense<0.000000e+00> : vector<8x32xf32>
    %286 = tpu.matmul %285, %191, %cst_126 {dimension_numbers = #tpu.dot_dimension_numbers<[1], [0], [0], [1], [0, 0, 1, 1], [], []>} : vector<8x32xf32>, vector<32x32xf32>, vector<8x32xf32> -> vector<8x32xf32>
    %287 = vector.broadcast %193 : vector<1x32xf32> to vector<8x32xf32>
    %288 = arith.addf %286, %287 : vector<8x32xf32>
    %c1_127 = arith.constant 1 : index
    %c0_128 = arith.constant 0 : index
    %c0_129 = arith.constant 0 : index
    %289 = vector.load %arg9[%c1_127, %c0_128, %c0_129] : memref<2x1x32xf32, #tpu.memory_space<vmem>>, vector<1x1x32xf32>
    %290 = vector.shape_cast %289 : vector<1x1x32xf32> to vector<1x32xf32>
    %c1_130 = arith.constant 1 : index
    %c0_131 = arith.constant 0 : index
    %c0_132 = arith.constant 0 : index
    %291 = vector.load %arg10[%c1_130, %c0_131, %c0_132] : memref<2x1x32xf32, #tpu.memory_space<vmem>>, vector<1x1x32xf32>
    %292 = vector.shape_cast %291 : vector<1x1x32xf32> to vector<1x32xf32>
    %293 = arith.addf %288, %183 : vector<8x32xf32>
    %cst_133 = arith.constant dense<0.000000e+00> : vector<8xf32>
    %294 = vector.multi_reduction <add>, %293, %cst_133 [1] : vector<8x32xf32> to vector<8xf32>
    %295 = vector.shape_cast %294 : vector<8xf32> to vector<8x1xf32>
    %cst_134 = arith.constant 3.200000e+01 : f32
    %296 = vector.broadcast %cst_134 : f32 to vector<8x1xf32>
    %297 = arith.divf %295, %296 : vector<8x1xf32>
    %298 = vector.broadcast %297 : vector<8x1xf32> to vector<8x32xf32>
    %299 = arith.subf %293, %298 : vector<8x32xf32>
    %300 = arith.mulf %299, %299 : vector<8x32xf32>
    %cst_135 = arith.constant dense<0.000000e+00> : vector<8xf32>
    %301 = vector.multi_reduction <add>, %300, %cst_135 [1] : vector<8x32xf32> to vector<8xf32>
    %302 = vector.shape_cast %301 : vector<8xf32> to vector<8x1xf32>
    %cst_136 = arith.constant 3.200000e+01 : f32
    %303 = vector.broadcast %cst_136 : f32 to vector<8x1xf32>
    %304 = arith.divf %302, %303 : vector<8x1xf32>
    %305 = vector.broadcast %297 : vector<8x1xf32> to vector<8x32xf32>
    %306 = arith.subf %293, %305 : vector<8x32xf32>
    %cst_137 = arith.constant 9.99999974E-6 : f32
    %307 = vector.broadcast %cst_137 : f32 to vector<8x1xf32>
    %308 = arith.addf %304, %307 : vector<8x1xf32>
    %309 = math.rsqrt %308 : vector<8x1xf32>
    %310 = vector.broadcast %309 : vector<8x1xf32> to vector<8x32xf32>
    %311 = arith.mulf %306, %310 : vector<8x32xf32>
    %312 = vector.broadcast %290 : vector<1x32xf32> to vector<8x32xf32>
    %313 = arith.mulf %311, %312 : vector<8x32xf32>
    %314 = vector.broadcast %292 : vector<1x32xf32> to vector<8x32xf32>
    %315 = arith.addf %313, %314 : vector<8x32xf32>
    %c1_138 = arith.constant 1 : index
    %c0_139 = arith.constant 0 : index
    %c0_140 = arith.constant 0 : index
    %316 = vector.load %arg13[%c1_138, %c0_139, %c0_140] : memref<2x32x128xf32, #tpu.memory_space<vmem>>, vector<1x32x128xf32>
    %317 = vector.shape_cast %316 : vector<1x32x128xf32> to vector<32x128xf32>
    %c1_141 = arith.constant 1 : index
    %c0_142 = arith.constant 0 : index
    %c0_143 = arith.constant 0 : index
    %318 = vector.load %arg14[%c1_141, %c0_142, %c0_143] : memref<2x1x128xf32, #tpu.memory_space<vmem>>, vector<1x1x128xf32>
    %319 = vector.shape_cast %318 : vector<1x1x128xf32> to vector<1x128xf32>
    %c1_144 = arith.constant 1 : index
    %c0_145 = arith.constant 0 : index
    %c0_146 = arith.constant 0 : index
    %320 = vector.load %arg15[%c1_144, %c0_145, %c0_146] : memref<2x128x32xf32, #tpu.memory_space<vmem>>, vector<1x128x32xf32>
    %321 = vector.shape_cast %320 : vector<1x128x32xf32> to vector<128x32xf32>
    %c1_147 = arith.constant 1 : index
    %c0_148 = arith.constant 0 : index
    %c0_149 = arith.constant 0 : index
    %322 = vector.load %arg16[%c1_147, %c0_148, %c0_149] : memref<2x1x32xf32, #tpu.memory_space<vmem>>, vector<1x1x32xf32>
    %323 = vector.shape_cast %322 : vector<1x1x32xf32> to vector<1x32xf32>
    %cst_150 = arith.constant dense<0.000000e+00> : vector<8x128xf32>
    %324 = tpu.matmul %315, %317, %cst_150 {dimension_numbers = #tpu.dot_dimension_numbers<[1], [0], [0], [1], [0, 0, 1, 1], [], []>} : vector<8x32xf32>, vector<32x128xf32>, vector<8x128xf32> -> vector<8x128xf32>
    %325 = vector.broadcast %319 : vector<1x128xf32> to vector<8x128xf32>
    %326 = arith.addf %324, %325 : vector<8x128xf32>
    %cst_151 = arith.constant 0.000000e+00 : f32
    %327 = vector.broadcast %cst_151 : f32 to vector<8x128xf32>
    %328 = arith.maximumf %326, %327 : vector<8x128xf32>
    %cst_152 = arith.constant dense<0.000000e+00> : vector<8x32xf32>
    %329 = tpu.matmul %328, %321, %cst_152 {dimension_numbers = #tpu.dot_dimension_numbers<[1], [0], [0], [1], [0, 0, 1, 1], [], []>} : vector<8x128xf32>, vector<128x32xf32>, vector<8x32xf32> -> vector<8x32xf32>
    %330 = vector.broadcast %323 : vector<1x32xf32> to vector<8x32xf32>
    %331 = arith.addf %329, %330 : vector<8x32xf32>
    %c1_153 = arith.constant 1 : index
    %c0_154 = arith.constant 0 : index
    %c0_155 = arith.constant 0 : index
    %332 = vector.load %arg11[%c1_153, %c0_154, %c0_155] : memref<2x1x32xf32, #tpu.memory_space<vmem>>, vector<1x1x32xf32>
    %333 = vector.shape_cast %332 : vector<1x1x32xf32> to vector<1x32xf32>
    %c1_156 = arith.constant 1 : index
    %c0_157 = arith.constant 0 : index
    %c0_158 = arith.constant 0 : index
    %334 = vector.load %arg12[%c1_156, %c0_157, %c0_158] : memref<2x1x32xf32, #tpu.memory_space<vmem>>, vector<1x1x32xf32>
    %335 = vector.shape_cast %334 : vector<1x1x32xf32> to vector<1x32xf32>
    %336 = arith.addf %331, %315 : vector<8x32xf32>
    %cst_159 = arith.constant dense<0.000000e+00> : vector<8xf32>
    %337 = vector.multi_reduction <add>, %336, %cst_159 [1] : vector<8x32xf32> to vector<8xf32>
    %338 = vector.shape_cast %337 : vector<8xf32> to vector<8x1xf32>
    %cst_160 = arith.constant 3.200000e+01 : f32
    %339 = vector.broadcast %cst_160 : f32 to vector<8x1xf32>
    %340 = arith.divf %338, %339 : vector<8x1xf32>
    %341 = vector.broadcast %340 : vector<8x1xf32> to vector<8x32xf32>
    %342 = arith.subf %336, %341 : vector<8x32xf32>
    %343 = arith.mulf %342, %342 : vector<8x32xf32>
    %cst_161 = arith.constant dense<0.000000e+00> : vector<8xf32>
    %344 = vector.multi_reduction <add>, %343, %cst_161 [1] : vector<8x32xf32> to vector<8xf32>
    %345 = vector.shape_cast %344 : vector<8xf32> to vector<8x1xf32>
    %cst_162 = arith.constant 3.200000e+01 : f32
    %346 = vector.broadcast %cst_162 : f32 to vector<8x1xf32>
    %347 = arith.divf %345, %346 : vector<8x1xf32>
    %348 = vector.broadcast %340 : vector<8x1xf32> to vector<8x32xf32>
    %349 = arith.subf %336, %348 : vector<8x32xf32>
    %cst_163 = arith.constant 9.99999974E-6 : f32
    %350 = vector.broadcast %cst_163 : f32 to vector<8x1xf32>
    %351 = arith.addf %347, %350 : vector<8x1xf32>
    %352 = math.rsqrt %351 : vector<8x1xf32>
    %353 = vector.broadcast %352 : vector<8x1xf32> to vector<8x32xf32>
    %354 = arith.mulf %349, %353 : vector<8x32xf32>
    %355 = vector.broadcast %333 : vector<1x32xf32> to vector<8x32xf32>
    %356 = arith.mulf %354, %355 : vector<8x32xf32>
    %357 = vector.broadcast %335 : vector<1x32xf32> to vector<8x32xf32>
    %358 = arith.addf %356, %357 : vector<8x32xf32>
    %c0_164 = arith.constant 0 : index
    %c0_165 = arith.constant 0 : index
    %c0_166 = arith.constant 0 : index
    %359 = vector.load %arg2[%c0_164, %c0_165, %c0_166] : memref<1x8x32xf32, #tpu.memory_space<vmem>>, vector<1x8x32xf32>
    %360 = vector.shape_cast %359 : vector<1x8x32xf32> to vector<8x32xf32>
    %c0_167 = arith.constant 0 : index
    %c0_168 = arith.constant 0 : index
    %c0_169 = arith.constant 0 : index
    %361 = vector.load %arg17[%c0_167, %c0_168, %c0_169] : memref<2x32x32xf32, #tpu.memory_space<vmem>>, vector<1x32x32xf32>
    %362 = vector.shape_cast %361 : vector<1x32x32xf32> to vector<32x32xf32>
    %c0_170 = arith.constant 0 : index
    %c0_171 = arith.constant 0 : index
    %c0_172 = arith.constant 0 : index
    %363 = vector.load %arg18[%c0_170, %c0_171, %c0_172] : memref<2x32x32xf32, #tpu.memory_space<vmem>>, vector<1x32x32xf32>
    %364 = vector.shape_cast %363 : vector<1x32x32xf32> to vector<32x32xf32>
    %c0_173 = arith.constant 0 : index
    %c0_174 = arith.constant 0 : index
    %c0_175 = arith.constant 0 : index
    %365 = vector.load %arg19[%c0_173, %c0_174, %c0_175] : memref<2x32x32xf32, #tpu.memory_space<vmem>>, vector<1x32x32xf32>
    %366 = vector.shape_cast %365 : vector<1x32x32xf32> to vector<32x32xf32>
    %c0_176 = arith.constant 0 : index
    %c0_177 = arith.constant 0 : index
    %c0_178 = arith.constant 0 : index
    %367 = vector.load %arg20[%c0_176, %c0_177, %c0_178] : memref<2x32x32xf32, #tpu.memory_space<vmem>>, vector<1x32x32xf32>
    %368 = vector.shape_cast %367 : vector<1x32x32xf32> to vector<32x32xf32>
    %c0_179 = arith.constant 0 : index
    %c0_180 = arith.constant 0 : index
    %c0_181 = arith.constant 0 : index
    %369 = vector.load %arg21[%c0_179, %c0_180, %c0_181] : memref<2x1x32xf32, #tpu.memory_space<vmem>>, vector<1x1x32xf32>
    %370 = vector.shape_cast %369 : vector<1x1x32xf32> to vector<1x32xf32>
    %cst_182 = arith.constant dense<0.000000e+00> : vector<8x32xf32>
    %371 = tpu.matmul %360, %362, %cst_182 {dimension_numbers = #tpu.dot_dimension_numbers<[1], [0], [0], [1], [0, 0, 1, 1], [], []>} : vector<8x32xf32>, vector<32x32xf32>, vector<8x32xf32> -> vector<8x32xf32>
    %cst_183 = arith.constant dense<0.000000e+00> : vector<8x32xf32>
    %372 = tpu.matmul %360, %364, %cst_183 {dimension_numbers = #tpu.dot_dimension_numbers<[1], [0], [0], [1], [0, 0, 1, 1], [], []>} : vector<8x32xf32>, vector<32x32xf32>, vector<8x32xf32> -> vector<8x32xf32>
    %cst_184 = arith.constant dense<0.000000e+00> : vector<8x32xf32>
    %373 = tpu.matmul %360, %366, %cst_184 {dimension_numbers = #tpu.dot_dimension_numbers<[1], [0], [0], [1], [0, 0, 1, 1], [], []>} : vector<8x32xf32>, vector<32x32xf32>, vector<8x32xf32> -> vector<8x32xf32>
    %374 = vector.extract_strided_slice %371 {offsets = [0, 0], sizes = [8, 8], strides = [1, 1]} : vector<8x32xf32> to vector<8x8xf32>
    %375 = vector.extract_strided_slice %372 {offsets = [0, 0], sizes = [8, 8], strides = [1, 1]} : vector<8x32xf32> to vector<8x8xf32>
    %376 = tpu.transpose %375, [1, 0] : vector<8x8xf32> -> vector<8x8xf32>
    %cst_185 = arith.constant dense<0.000000e+00> : vector<8x8xf32>
    %377 = tpu.matmul %374, %376, %cst_185 {dimension_numbers = #tpu.dot_dimension_numbers<[1], [0], [0], [1], [0, 0, 1, 1], [], []>} : vector<8x8xf32>, vector<8x8xf32>, vector<8x8xf32> -> vector<8x8xf32>
    %cst_186 = arith.constant -1.000000e+20 : f32
    %378 = vector.broadcast %cst_186 : f32 to vector<8x8xf32>
    %379 = arith.select %6, %377, %378 : vector<8x8xi1>, vector<8x8xf32>
    %cst_187 = arith.constant 0.176776692 : f32
    %380 = vector.broadcast %cst_187 : f32 to vector<8x8xf32>
    %381 = arith.mulf %379, %380 : vector<8x8xf32>
    %cst_188 = arith.constant dense<0xFF800000> : vector<8xf32>
    %382 = vector.multi_reduction <maximumf>, %381, %cst_188 [1] : vector<8x8xf32> to vector<8xf32>
    %383 = vector.shape_cast %382 : vector<8xf32> to vector<8x1xf32>
    %384 = vector.broadcast %383 : vector<8x1xf32> to vector<8x8xf32>
    %385 = arith.subf %381, %384 : vector<8x8xf32>
    %386 = math.exp %385 : vector<8x8xf32>
    %cst_189 = arith.constant dense<0.000000e+00> : vector<8xf32>
    %387 = vector.multi_reduction <add>, %386, %cst_189 [1] : vector<8x8xf32> to vector<8xf32>
    %388 = vector.shape_cast %387 : vector<8xf32> to vector<8x1xf32>
    %389 = tpu.reciprocal %388 {approx = true} : vector<8x1xf32> -> vector<8x1xf32>
    %390 = vector.broadcast %389 : vector<8x1xf32> to vector<8x8xf32>
    %391 = arith.mulf %386, %390 : vector<8x8xf32>
    %392 = vector.extract_strided_slice %373 {offsets = [0, 0], sizes = [8, 8], strides = [1, 1]} : vector<8x32xf32> to vector<8x8xf32>
    %cst_190 = arith.constant dense<0.000000e+00> : vector<8x8xf32>
    %393 = tpu.matmul %391, %392, %cst_190 {dimension_numbers = #tpu.dot_dimension_numbers<[1], [0], [0], [1], [0, 0, 1, 1], [], []>} : vector<8x8xf32>, vector<8x8xf32>, vector<8x8xf32> -> vector<8x8xf32>
    %394 = vector.extract_strided_slice %371 {offsets = [0, 8], sizes = [8, 8], strides = [1, 1]} : vector<8x32xf32> to vector<8x8xf32>
    %395 = vector.extract_strided_slice %372 {offsets = [0, 8], sizes = [8, 8], strides = [1, 1]} : vector<8x32xf32> to vector<8x8xf32>
    %396 = tpu.transpose %395, [1, 0] : vector<8x8xf32> -> vector<8x8xf32>
    %cst_191 = arith.constant dense<0.000000e+00> : vector<8x8xf32>
    %397 = tpu.matmul %394, %396, %cst_191 {dimension_numbers = #tpu.dot_dimension_numbers<[1], [0], [0], [1], [0, 0, 1, 1], [], []>} : vector<8x8xf32>, vector<8x8xf32>, vector<8x8xf32> -> vector<8x8xf32>
    %cst_192 = arith.constant -1.000000e+20 : f32
    %398 = vector.broadcast %cst_192 : f32 to vector<8x8xf32>
    %399 = arith.select %6, %397, %398 : vector<8x8xi1>, vector<8x8xf32>
    %cst_193 = arith.constant 0.176776692 : f32
    %400 = vector.broadcast %cst_193 : f32 to vector<8x8xf32>
    %401 = arith.mulf %399, %400 : vector<8x8xf32>
    %cst_194 = arith.constant dense<0xFF800000> : vector<8xf32>
    %402 = vector.multi_reduction <maximumf>, %401, %cst_194 [1] : vector<8x8xf32> to vector<8xf32>
    %403 = vector.shape_cast %402 : vector<8xf32> to vector<8x1xf32>
    %404 = vector.broadcast %403 : vector<8x1xf32> to vector<8x8xf32>
    %405 = arith.subf %401, %404 : vector<8x8xf32>
    %406 = math.exp %405 : vector<8x8xf32>
    %cst_195 = arith.constant dense<0.000000e+00> : vector<8xf32>
    %407 = vector.multi_reduction <add>, %406, %cst_195 [1] : vector<8x8xf32> to vector<8xf32>
    %408 = vector.shape_cast %407 : vector<8xf32> to vector<8x1xf32>
    %409 = tpu.reciprocal %408 {approx = true} : vector<8x1xf32> -> vector<8x1xf32>
    %410 = vector.broadcast %409 : vector<8x1xf32> to vector<8x8xf32>
    %411 = arith.mulf %406, %410 : vector<8x8xf32>
    %412 = vector.extract_strided_slice %373 {offsets = [0, 8], sizes = [8, 8], strides = [1, 1]} : vector<8x32xf32> to vector<8x8xf32>
    %cst_196 = arith.constant dense<0.000000e+00> : vector<8x8xf32>
    %413 = tpu.matmul %411, %412, %cst_196 {dimension_numbers = #tpu.dot_dimension_numbers<[1], [0], [0], [1], [0, 0, 1, 1], [], []>} : vector<8x8xf32>, vector<8x8xf32>, vector<8x8xf32> -> vector<8x8xf32>
    %414 = vector.extract_strided_slice %371 {offsets = [0, 16], sizes = [8, 8], strides = [1, 1]} : vector<8x32xf32> to vector<8x8xf32>
    %415 = vector.extract_strided_slice %372 {offsets = [0, 16], sizes = [8, 8], strides = [1, 1]} : vector<8x32xf32> to vector<8x8xf32>
    %416 = tpu.transpose %415, [1, 0] : vector<8x8xf32> -> vector<8x8xf32>
    %cst_197 = arith.constant dense<0.000000e+00> : vector<8x8xf32>
    %417 = tpu.matmul %414, %416, %cst_197 {dimension_numbers = #tpu.dot_dimension_numbers<[1], [0], [0], [1], [0, 0, 1, 1], [], []>} : vector<8x8xf32>, vector<8x8xf32>, vector<8x8xf32> -> vector<8x8xf32>
    %cst_198 = arith.constant -1.000000e+20 : f32
    %418 = vector.broadcast %cst_198 : f32 to vector<8x8xf32>
    %419 = arith.select %6, %417, %418 : vector<8x8xi1>, vector<8x8xf32>
    %cst_199 = arith.constant 0.176776692 : f32
    %420 = vector.broadcast %cst_199 : f32 to vector<8x8xf32>
    %421 = arith.mulf %419, %420 : vector<8x8xf32>
    %cst_200 = arith.constant dense<0xFF800000> : vector<8xf32>
    %422 = vector.multi_reduction <maximumf>, %421, %cst_200 [1] : vector<8x8xf32> to vector<8xf32>
    %423 = vector.shape_cast %422 : vector<8xf32> to vector<8x1xf32>
    %424 = vector.broadcast %423 : vector<8x1xf32> to vector<8x8xf32>
    %425 = arith.subf %421, %424 : vector<8x8xf32>
    %426 = math.exp %425 : vector<8x8xf32>
    %cst_201 = arith.constant dense<0.000000e+00> : vector<8xf32>
    %427 = vector.multi_reduction <add>, %426, %cst_201 [1] : vector<8x8xf32> to vector<8xf32>
    %428 = vector.shape_cast %427 : vector<8xf32> to vector<8x1xf32>
    %429 = tpu.reciprocal %428 {approx = true} : vector<8x1xf32> -> vector<8x1xf32>
    %430 = vector.broadcast %429 : vector<8x1xf32> to vector<8x8xf32>
    %431 = arith.mulf %426, %430 : vector<8x8xf32>
    %432 = vector.extract_strided_slice %373 {offsets = [0, 16], sizes = [8, 8], strides = [1, 1]} : vector<8x32xf32> to vector<8x8xf32>
    %cst_202 = arith.constant dense<0.000000e+00> : vector<8x8xf32>
    %433 = tpu.matmul %431, %432, %cst_202 {dimension_numbers = #tpu.dot_dimension_numbers<[1], [0], [0], [1], [0, 0, 1, 1], [], []>} : vector<8x8xf32>, vector<8x8xf32>, vector<8x8xf32> -> vector<8x8xf32>
    %434 = vector.extract_strided_slice %371 {offsets = [0, 24], sizes = [8, 8], strides = [1, 1]} : vector<8x32xf32> to vector<8x8xf32>
    %435 = vector.extract_strided_slice %372 {offsets = [0, 24], sizes = [8, 8], strides = [1, 1]} : vector<8x32xf32> to vector<8x8xf32>
    %436 = tpu.transpose %435, [1, 0] : vector<8x8xf32> -> vector<8x8xf32>
    %cst_203 = arith.constant dense<0.000000e+00> : vector<8x8xf32>
    %437 = tpu.matmul %434, %436, %cst_203 {dimension_numbers = #tpu.dot_dimension_numbers<[1], [0], [0], [1], [0, 0, 1, 1], [], []>} : vector<8x8xf32>, vector<8x8xf32>, vector<8x8xf32> -> vector<8x8xf32>
    %cst_204 = arith.constant -1.000000e+20 : f32
    %438 = vector.broadcast %cst_204 : f32 to vector<8x8xf32>
    %439 = arith.select %6, %437, %438 : vector<8x8xi1>, vector<8x8xf32>
    %cst_205 = arith.constant 0.176776692 : f32
    %440 = vector.broadcast %cst_205 : f32 to vector<8x8xf32>
    %441 = arith.mulf %439, %440 : vector<8x8xf32>
    %cst_206 = arith.constant dense<0xFF800000> : vector<8xf32>
    %442 = vector.multi_reduction <maximumf>, %441, %cst_206 [1] : vector<8x8xf32> to vector<8xf32>
    %443 = vector.shape_cast %442 : vector<8xf32> to vector<8x1xf32>
    %444 = vector.broadcast %443 : vector<8x1xf32> to vector<8x8xf32>
    %445 = arith.subf %441, %444 : vector<8x8xf32>
    %446 = math.exp %445 : vector<8x8xf32>
    %cst_207 = arith.constant dense<0.000000e+00> : vector<8xf32>
    %447 = vector.multi_reduction <add>, %446, %cst_207 [1] : vector<8x8xf32> to vector<8xf32>
    %448 = vector.shape_cast %447 : vector<8xf32> to vector<8x1xf32>
    %449 = tpu.reciprocal %448 {approx = true} : vector<8x1xf32> -> vector<8x1xf32>
    %450 = vector.broadcast %449 : vector<8x1xf32> to vector<8x8xf32>
    %451 = arith.mulf %446, %450 : vector<8x8xf32>
    %452 = vector.extract_strided_slice %373 {offsets = [0, 24], sizes = [8, 8], strides = [1, 1]} : vector<8x32xf32> to vector<8x8xf32>
    %cst_208 = arith.constant dense<0.000000e+00> : vector<8x8xf32>
    %453 = tpu.matmul %451, %452, %cst_208 {dimension_numbers = #tpu.dot_dimension_numbers<[1], [0], [0], [1], [0, 0, 1, 1], [], []>} : vector<8x8xf32>, vector<8x8xf32>, vector<8x8xf32> -> vector<8x8xf32>
    %454 = tpu.concatenate %393, %413, %433, %453 in 1 : vector<8x8xf32>, vector<8x8xf32>, vector<8x8xf32>, vector<8x8xf32> -> vector<8x32xf32>
    %cst_209 = arith.constant dense<0.000000e+00> : vector<8x32xf32>
    %455 = tpu.matmul %454, %368, %cst_209 {dimension_numbers = #tpu.dot_dimension_numbers<[1], [0], [0], [1], [0, 0, 1, 1], [], []>} : vector<8x32xf32>, vector<32x32xf32>, vector<8x32xf32> -> vector<8x32xf32>
    %456 = vector.broadcast %370 : vector<1x32xf32> to vector<8x32xf32>
    %457 = arith.addf %455, %456 : vector<8x32xf32>
    %c0_210 = arith.constant 0 : index
    %c0_211 = arith.constant 0 : index
    %c0_212 = arith.constant 0 : index
    %458 = vector.load %arg22[%c0_210, %c0_211, %c0_212] : memref<2x1x32xf32, #tpu.memory_space<vmem>>, vector<1x1x32xf32>
    %459 = vector.shape_cast %458 : vector<1x1x32xf32> to vector<1x32xf32>
    %c0_213 = arith.constant 0 : index
    %c0_214 = arith.constant 0 : index
    %c0_215 = arith.constant 0 : index
    %460 = vector.load %arg23[%c0_213, %c0_214, %c0_215] : memref<2x1x32xf32, #tpu.memory_space<vmem>>, vector<1x1x32xf32>
    %461 = vector.shape_cast %460 : vector<1x1x32xf32> to vector<1x32xf32>
    %462 = arith.addf %457, %360 : vector<8x32xf32>
    %cst_216 = arith.constant dense<0.000000e+00> : vector<8xf32>
    %463 = vector.multi_reduction <add>, %462, %cst_216 [1] : vector<8x32xf32> to vector<8xf32>
    %464 = vector.shape_cast %463 : vector<8xf32> to vector<8x1xf32>
    %cst_217 = arith.constant 3.200000e+01 : f32
    %465 = vector.broadcast %cst_217 : f32 to vector<8x1xf32>
    %466 = arith.divf %464, %465 : vector<8x1xf32>
    %467 = vector.broadcast %466 : vector<8x1xf32> to vector<8x32xf32>
    %468 = arith.subf %462, %467 : vector<8x32xf32>
    %469 = arith.mulf %468, %468 : vector<8x32xf32>
    %cst_218 = arith.constant dense<0.000000e+00> : vector<8xf32>
    %470 = vector.multi_reduction <add>, %469, %cst_218 [1] : vector<8x32xf32> to vector<8xf32>
    %471 = vector.shape_cast %470 : vector<8xf32> to vector<8x1xf32>
    %cst_219 = arith.constant 3.200000e+01 : f32
    %472 = vector.broadcast %cst_219 : f32 to vector<8x1xf32>
    %473 = arith.divf %471, %472 : vector<8x1xf32>
    %474 = vector.broadcast %466 : vector<8x1xf32> to vector<8x32xf32>
    %475 = arith.subf %462, %474 : vector<8x32xf32>
    %cst_220 = arith.constant 9.99999974E-6 : f32
    %476 = vector.broadcast %cst_220 : f32 to vector<8x1xf32>
    %477 = arith.addf %473, %476 : vector<8x1xf32>
    %478 = math.rsqrt %477 : vector<8x1xf32>
    %479 = vector.broadcast %478 : vector<8x1xf32> to vector<8x32xf32>
    %480 = arith.mulf %475, %479 : vector<8x32xf32>
    %481 = vector.broadcast %459 : vector<1x32xf32> to vector<8x32xf32>
    %482 = arith.mulf %480, %481 : vector<8x32xf32>
    %483 = vector.broadcast %461 : vector<1x32xf32> to vector<8x32xf32>
    %484 = arith.addf %482, %483 : vector<8x32xf32>
    %c0_221 = arith.constant 0 : index
    %c0_222 = arith.constant 0 : index
    %c0_223 = arith.constant 0 : index
    %485 = vector.load %arg24[%c0_221, %c0_222, %c0_223] : memref<2x32x32xf32, #tpu.memory_space<vmem>>, vector<1x32x32xf32>
    %486 = vector.shape_cast %485 : vector<1x32x32xf32> to vector<32x32xf32>
    %c0_224 = arith.constant 0 : index
    %c0_225 = arith.constant 0 : index
    %c0_226 = arith.constant 0 : index
    %487 = vector.load %arg25[%c0_224, %c0_225, %c0_226] : memref<2x32x32xf32, #tpu.memory_space<vmem>>, vector<1x32x32xf32>
    %488 = vector.shape_cast %487 : vector<1x32x32xf32> to vector<32x32xf32>
    %c0_227 = arith.constant 0 : index
    %c0_228 = arith.constant 0 : index
    %c0_229 = arith.constant 0 : index
    %489 = vector.load %arg26[%c0_227, %c0_228, %c0_229] : memref<2x32x32xf32, #tpu.memory_space<vmem>>, vector<1x32x32xf32>
    %490 = vector.shape_cast %489 : vector<1x32x32xf32> to vector<32x32xf32>
    %c0_230 = arith.constant 0 : index
    %c0_231 = arith.constant 0 : index
    %c0_232 = arith.constant 0 : index
    %491 = vector.load %arg27[%c0_230, %c0_231, %c0_232] : memref<2x32x32xf32, #tpu.memory_space<vmem>>, vector<1x32x32xf32>
    %492 = vector.shape_cast %491 : vector<1x32x32xf32> to vector<32x32xf32>
    %c0_233 = arith.constant 0 : index
    %c0_234 = arith.constant 0 : index
    %c0_235 = arith.constant 0 : index
    %493 = vector.load %arg28[%c0_233, %c0_234, %c0_235] : memref<2x1x32xf32, #tpu.memory_space<vmem>>, vector<1x1x32xf32>
    %494 = vector.shape_cast %493 : vector<1x1x32xf32> to vector<1x32xf32>
    %cst_236 = arith.constant dense<0.000000e+00> : vector<8x32xf32>
    %495 = tpu.matmul %484, %486, %cst_236 {dimension_numbers = #tpu.dot_dimension_numbers<[1], [0], [0], [1], [0, 0, 1, 1], [], []>} : vector<8x32xf32>, vector<32x32xf32>, vector<8x32xf32> -> vector<8x32xf32>
    %cst_237 = arith.constant dense<0.000000e+00> : vector<8x32xf32>
    %496 = tpu.matmul %358, %488, %cst_237 {dimension_numbers = #tpu.dot_dimension_numbers<[1], [0], [0], [1], [0, 0, 1, 1], [], []>} : vector<8x32xf32>, vector<32x32xf32>, vector<8x32xf32> -> vector<8x32xf32>
    %cst_238 = arith.constant dense<0.000000e+00> : vector<8x32xf32>
    %497 = tpu.matmul %358, %490, %cst_238 {dimension_numbers = #tpu.dot_dimension_numbers<[1], [0], [0], [1], [0, 0, 1, 1], [], []>} : vector<8x32xf32>, vector<32x32xf32>, vector<8x32xf32> -> vector<8x32xf32>
    %498 = vector.extract_strided_slice %495 {offsets = [0, 0], sizes = [8, 8], strides = [1, 1]} : vector<8x32xf32> to vector<8x8xf32>
    %499 = vector.extract_strided_slice %496 {offsets = [0, 0], sizes = [8, 8], strides = [1, 1]} : vector<8x32xf32> to vector<8x8xf32>
    %500 = tpu.transpose %499, [1, 0] : vector<8x8xf32> -> vector<8x8xf32>
    %cst_239 = arith.constant dense<0.000000e+00> : vector<8x8xf32>
    %501 = tpu.matmul %498, %500, %cst_239 {dimension_numbers = #tpu.dot_dimension_numbers<[1], [0], [0], [1], [0, 0, 1, 1], [], []>} : vector<8x8xf32>, vector<8x8xf32>, vector<8x8xf32> -> vector<8x8xf32>
    %cst_240 = arith.constant -1.000000e+20 : f32
    %502 = vector.shape_cast %3 : vector<1x8xi1> to vector<1x8xi1>
    %503 = vector.broadcast %502 : vector<1x8xi1> to vector<8x8xi1>
    %504 = vector.broadcast %cst_240 : f32 to vector<8x8xf32>
    %505 = arith.select %503, %501, %504 : vector<8x8xi1>, vector<8x8xf32>
    %cst_241 = arith.constant 0.176776692 : f32
    %506 = vector.broadcast %cst_241 : f32 to vector<8x8xf32>
    %507 = arith.mulf %505, %506 : vector<8x8xf32>
    %cst_242 = arith.constant dense<0xFF800000> : vector<8xf32>
    %508 = vector.multi_reduction <maximumf>, %507, %cst_242 [1] : vector<8x8xf32> to vector<8xf32>
    %509 = vector.shape_cast %508 : vector<8xf32> to vector<8x1xf32>
    %510 = vector.broadcast %509 : vector<8x1xf32> to vector<8x8xf32>
    %511 = arith.subf %507, %510 : vector<8x8xf32>
    %512 = math.exp %511 : vector<8x8xf32>
    %cst_243 = arith.constant dense<0.000000e+00> : vector<8xf32>
    %513 = vector.multi_reduction <add>, %512, %cst_243 [1] : vector<8x8xf32> to vector<8xf32>
    %514 = vector.shape_cast %513 : vector<8xf32> to vector<8x1xf32>
    %515 = tpu.reciprocal %514 {approx = true} : vector<8x1xf32> -> vector<8x1xf32>
    %516 = vector.broadcast %515 : vector<8x1xf32> to vector<8x8xf32>
    %517 = arith.mulf %512, %516 : vector<8x8xf32>
    %518 = vector.extract_strided_slice %497 {offsets = [0, 0], sizes = [8, 8], strides = [1, 1]} : vector<8x32xf32> to vector<8x8xf32>
    %cst_244 = arith.constant dense<0.000000e+00> : vector<8x8xf32>
    %519 = tpu.matmul %517, %518, %cst_244 {dimension_numbers = #tpu.dot_dimension_numbers<[1], [0], [0], [1], [0, 0, 1, 1], [], []>} : vector<8x8xf32>, vector<8x8xf32>, vector<8x8xf32> -> vector<8x8xf32>
    %520 = vector.extract_strided_slice %495 {offsets = [0, 8], sizes = [8, 8], strides = [1, 1]} : vector<8x32xf32> to vector<8x8xf32>
    %521 = vector.extract_strided_slice %496 {offsets = [0, 8], sizes = [8, 8], strides = [1, 1]} : vector<8x32xf32> to vector<8x8xf32>
    %522 = tpu.transpose %521, [1, 0] : vector<8x8xf32> -> vector<8x8xf32>
    %cst_245 = arith.constant dense<0.000000e+00> : vector<8x8xf32>
    %523 = tpu.matmul %520, %522, %cst_245 {dimension_numbers = #tpu.dot_dimension_numbers<[1], [0], [0], [1], [0, 0, 1, 1], [], []>} : vector<8x8xf32>, vector<8x8xf32>, vector<8x8xf32> -> vector<8x8xf32>
    %cst_246 = arith.constant -1.000000e+20 : f32
    %524 = vector.shape_cast %3 : vector<1x8xi1> to vector<1x8xi1>
    %525 = vector.broadcast %524 : vector<1x8xi1> to vector<8x8xi1>
    %526 = vector.broadcast %cst_246 : f32 to vector<8x8xf32>
    %527 = arith.select %525, %523, %526 : vector<8x8xi1>, vector<8x8xf32>
    %cst_247 = arith.constant 0.176776692 : f32
    %528 = vector.broadcast %cst_247 : f32 to vector<8x8xf32>
    %529 = arith.mulf %527, %528 : vector<8x8xf32>
    %cst_248 = arith.constant dense<0xFF800000> : vector<8xf32>
    %530 = vector.multi_reduction <maximumf>, %529, %cst_248 [1] : vector<8x8xf32> to vector<8xf32>
    %531 = vector.shape_cast %530 : vector<8xf32> to vector<8x1xf32>
    %532 = vector.broadcast %531 : vector<8x1xf32> to vector<8x8xf32>
    %533 = arith.subf %529, %532 : vector<8x8xf32>
    %534 = math.exp %533 : vector<8x8xf32>
    %cst_249 = arith.constant dense<0.000000e+00> : vector<8xf32>
    %535 = vector.multi_reduction <add>, %534, %cst_249 [1] : vector<8x8xf32> to vector<8xf32>
    %536 = vector.shape_cast %535 : vector<8xf32> to vector<8x1xf32>
    %537 = tpu.reciprocal %536 {approx = true} : vector<8x1xf32> -> vector<8x1xf32>
    %538 = vector.broadcast %537 : vector<8x1xf32> to vector<8x8xf32>
    %539 = arith.mulf %534, %538 : vector<8x8xf32>
    %540 = vector.extract_strided_slice %497 {offsets = [0, 8], sizes = [8, 8], strides = [1, 1]} : vector<8x32xf32> to vector<8x8xf32>
    %cst_250 = arith.constant dense<0.000000e+00> : vector<8x8xf32>
    %541 = tpu.matmul %539, %540, %cst_250 {dimension_numbers = #tpu.dot_dimension_numbers<[1], [0], [0], [1], [0, 0, 1, 1], [], []>} : vector<8x8xf32>, vector<8x8xf32>, vector<8x8xf32> -> vector<8x8xf32>
    %542 = vector.extract_strided_slice %495 {offsets = [0, 16], sizes = [8, 8], strides = [1, 1]} : vector<8x32xf32> to vector<8x8xf32>
    %543 = vector.extract_strided_slice %496 {offsets = [0, 16], sizes = [8, 8], strides = [1, 1]} : vector<8x32xf32> to vector<8x8xf32>
    %544 = tpu.transpose %543, [1, 0] : vector<8x8xf32> -> vector<8x8xf32>
    %cst_251 = arith.constant dense<0.000000e+00> : vector<8x8xf32>
    %545 = tpu.matmul %542, %544, %cst_251 {dimension_numbers = #tpu.dot_dimension_numbers<[1], [0], [0], [1], [0, 0, 1, 1], [], []>} : vector<8x8xf32>, vector<8x8xf32>, vector<8x8xf32> -> vector<8x8xf32>
    %cst_252 = arith.constant -1.000000e+20 : f32
    %546 = vector.shape_cast %3 : vector<1x8xi1> to vector<1x8xi1>
    %547 = vector.broadcast %546 : vector<1x8xi1> to vector<8x8xi1>
    %548 = vector.broadcast %cst_252 : f32 to vector<8x8xf32>
    %549 = arith.select %547, %545, %548 : vector<8x8xi1>, vector<8x8xf32>
    %cst_253 = arith.constant 0.176776692 : f32
    %550 = vector.broadcast %cst_253 : f32 to vector<8x8xf32>
    %551 = arith.mulf %549, %550 : vector<8x8xf32>
    %cst_254 = arith.constant dense<0xFF800000> : vector<8xf32>
    %552 = vector.multi_reduction <maximumf>, %551, %cst_254 [1] : vector<8x8xf32> to vector<8xf32>
    %553 = vector.shape_cast %552 : vector<8xf32> to vector<8x1xf32>
    %554 = vector.broadcast %553 : vector<8x1xf32> to vector<8x8xf32>
    %555 = arith.subf %551, %554 : vector<8x8xf32>
    %556 = math.exp %555 : vector<8x8xf32>
    %cst_255 = arith.constant dense<0.000000e+00> : vector<8xf32>
    %557 = vector.multi_reduction <add>, %556, %cst_255 [1] : vector<8x8xf32> to vector<8xf32>
    %558 = vector.shape_cast %557 : vector<8xf32> to vector<8x1xf32>
    %559 = tpu.reciprocal %558 {approx = true} : vector<8x1xf32> -> vector<8x1xf32>
    %560 = vector.broadcast %559 : vector<8x1xf32> to vector<8x8xf32>
    %561 = arith.mulf %556, %560 : vector<8x8xf32>
    %562 = vector.extract_strided_slice %497 {offsets = [0, 16], sizes = [8, 8], strides = [1, 1]} : vector<8x32xf32> to vector<8x8xf32>
    %cst_256 = arith.constant dense<0.000000e+00> : vector<8x8xf32>
    %563 = tpu.matmul %561, %562, %cst_256 {dimension_numbers = #tpu.dot_dimension_numbers<[1], [0], [0], [1], [0, 0, 1, 1], [], []>} : vector<8x8xf32>, vector<8x8xf32>, vector<8x8xf32> -> vector<8x8xf32>
    %564 = vector.extract_strided_slice %495 {offsets = [0, 24], sizes = [8, 8], strides = [1, 1]} : vector<8x32xf32> to vector<8x8xf32>
    %565 = vector.extract_strided_slice %496 {offsets = [0, 24], sizes = [8, 8], strides = [1, 1]} : vector<8x32xf32> to vector<8x8xf32>
    %566 = tpu.transpose %565, [1, 0] : vector<8x8xf32> -> vector<8x8xf32>
    %cst_257 = arith.constant dense<0.000000e+00> : vector<8x8xf32>
    %567 = tpu.matmul %564, %566, %cst_257 {dimension_numbers = #tpu.dot_dimension_numbers<[1], [0], [0], [1], [0, 0, 1, 1], [], []>} : vector<8x8xf32>, vector<8x8xf32>, vector<8x8xf32> -> vector<8x8xf32>
    %cst_258 = arith.constant -1.000000e+20 : f32
    %568 = vector.shape_cast %3 : vector<1x8xi1> to vector<1x8xi1>
    %569 = vector.broadcast %568 : vector<1x8xi1> to vector<8x8xi1>
    %570 = vector.broadcast %cst_258 : f32 to vector<8x8xf32>
    %571 = arith.select %569, %567, %570 : vector<8x8xi1>, vector<8x8xf32>
    %cst_259 = arith.constant 0.176776692 : f32
    %572 = vector.broadcast %cst_259 : f32 to vector<8x8xf32>
    %573 = arith.mulf %571, %572 : vector<8x8xf32>
    %cst_260 = arith.constant dense<0xFF800000> : vector<8xf32>
    %574 = vector.multi_reduction <maximumf>, %573, %cst_260 [1] : vector<8x8xf32> to vector<8xf32>
    %575 = vector.shape_cast %574 : vector<8xf32> to vector<8x1xf32>
    %576 = vector.broadcast %575 : vector<8x1xf32> to vector<8x8xf32>
    %577 = arith.subf %573, %576 : vector<8x8xf32>
    %578 = math.exp %577 : vector<8x8xf32>
    %cst_261 = arith.constant dense<0.000000e+00> : vector<8xf32>
    %579 = vector.multi_reduction <add>, %578, %cst_261 [1] : vector<8x8xf32> to vector<8xf32>
    %580 = vector.shape_cast %579 : vector<8xf32> to vector<8x1xf32>
    %581 = tpu.reciprocal %580 {approx = true} : vector<8x1xf32> -> vector<8x1xf32>
    %582 = vector.broadcast %581 : vector<8x1xf32> to vector<8x8xf32>
    %583 = arith.mulf %578, %582 : vector<8x8xf32>
    %584 = vector.extract_strided_slice %497 {offsets = [0, 24], sizes = [8, 8], strides = [1, 1]} : vector<8x32xf32> to vector<8x8xf32>
    %cst_262 = arith.constant dense<0.000000e+00> : vector<8x8xf32>
    %585 = tpu.matmul %583, %584, %cst_262 {dimension_numbers = #tpu.dot_dimension_numbers<[1], [0], [0], [1], [0, 0, 1, 1], [], []>} : vector<8x8xf32>, vector<8x8xf32>, vector<8x8xf32> -> vector<8x8xf32>
    %586 = tpu.concatenate %519, %541, %563, %585 in 1 : vector<8x8xf32>, vector<8x8xf32>, vector<8x8xf32>, vector<8x8xf32> -> vector<8x32xf32>
    %cst_263 = arith.constant dense<0.000000e+00> : vector<8x32xf32>
    %587 = tpu.matmul %586, %492, %cst_263 {dimension_numbers = #tpu.dot_dimension_numbers<[1], [0], [0], [1], [0, 0, 1, 1], [], []>} : vector<8x32xf32>, vector<32x32xf32>, vector<8x32xf32> -> vector<8x32xf32>
    %588 = vector.broadcast %494 : vector<1x32xf32> to vector<8x32xf32>
    %589 = arith.addf %587, %588 : vector<8x32xf32>
    %c0_264 = arith.constant 0 : index
    %c0_265 = arith.constant 0 : index
    %c0_266 = arith.constant 0 : index
    %590 = vector.load %arg29[%c0_264, %c0_265, %c0_266] : memref<2x1x32xf32, #tpu.memory_space<vmem>>, vector<1x1x32xf32>
    %591 = vector.shape_cast %590 : vector<1x1x32xf32> to vector<1x32xf32>
    %c0_267 = arith.constant 0 : index
    %c0_268 = arith.constant 0 : index
    %c0_269 = arith.constant 0 : index
    %592 = vector.load %arg30[%c0_267, %c0_268, %c0_269] : memref<2x1x32xf32, #tpu.memory_space<vmem>>, vector<1x1x32xf32>
    %593 = vector.shape_cast %592 : vector<1x1x32xf32> to vector<1x32xf32>
    %594 = arith.addf %589, %484 : vector<8x32xf32>
    %cst_270 = arith.constant dense<0.000000e+00> : vector<8xf32>
    %595 = vector.multi_reduction <add>, %594, %cst_270 [1] : vector<8x32xf32> to vector<8xf32>
    %596 = vector.shape_cast %595 : vector<8xf32> to vector<8x1xf32>
    %cst_271 = arith.constant 3.200000e+01 : f32
    %597 = vector.broadcast %cst_271 : f32 to vector<8x1xf32>
    %598 = arith.divf %596, %597 : vector<8x1xf32>
    %599 = vector.broadcast %598 : vector<8x1xf32> to vector<8x32xf32>
    %600 = arith.subf %594, %599 : vector<8x32xf32>
    %601 = arith.mulf %600, %600 : vector<8x32xf32>
    %cst_272 = arith.constant dense<0.000000e+00> : vector<8xf32>
    %602 = vector.multi_reduction <add>, %601, %cst_272 [1] : vector<8x32xf32> to vector<8xf32>
    %603 = vector.shape_cast %602 : vector<8xf32> to vector<8x1xf32>
    %cst_273 = arith.constant 3.200000e+01 : f32
    %604 = vector.broadcast %cst_273 : f32 to vector<8x1xf32>
    %605 = arith.divf %603, %604 : vector<8x1xf32>
    %606 = vector.broadcast %598 : vector<8x1xf32> to vector<8x32xf32>
    %607 = arith.subf %594, %606 : vector<8x32xf32>
    %cst_274 = arith.constant 9.99999974E-6 : f32
    %608 = vector.broadcast %cst_274 : f32 to vector<8x1xf32>
    %609 = arith.addf %605, %608 : vector<8x1xf32>
    %610 = math.rsqrt %609 : vector<8x1xf32>
    %611 = vector.broadcast %610 : vector<8x1xf32> to vector<8x32xf32>
    %612 = arith.mulf %607, %611 : vector<8x32xf32>
    %613 = vector.broadcast %591 : vector<1x32xf32> to vector<8x32xf32>
    %614 = arith.mulf %612, %613 : vector<8x32xf32>
    %615 = vector.broadcast %593 : vector<1x32xf32> to vector<8x32xf32>
    %616 = arith.addf %614, %615 : vector<8x32xf32>
    %c0_275 = arith.constant 0 : index
    %c0_276 = arith.constant 0 : index
    %c0_277 = arith.constant 0 : index
    %617 = vector.load %arg33[%c0_275, %c0_276, %c0_277] : memref<2x32x128xf32, #tpu.memory_space<vmem>>, vector<1x32x128xf32>
    %618 = vector.shape_cast %617 : vector<1x32x128xf32> to vector<32x128xf32>
    %c0_278 = arith.constant 0 : index
    %c0_279 = arith.constant 0 : index
    %c0_280 = arith.constant 0 : index
    %619 = vector.load %arg34[%c0_278, %c0_279, %c0_280] : memref<2x1x128xf32, #tpu.memory_space<vmem>>, vector<1x1x128xf32>
    %620 = vector.shape_cast %619 : vector<1x1x128xf32> to vector<1x128xf32>
    %c0_281 = arith.constant 0 : index
    %c0_282 = arith.constant 0 : index
    %c0_283 = arith.constant 0 : index
    %621 = vector.load %arg35[%c0_281, %c0_282, %c0_283] : memref<2x128x32xf32, #tpu.memory_space<vmem>>, vector<1x128x32xf32>
    %622 = vector.shape_cast %621 : vector<1x128x32xf32> to vector<128x32xf32>
    %c0_284 = arith.constant 0 : index
    %c0_285 = arith.constant 0 : index
    %c0_286 = arith.constant 0 : index
    %623 = vector.load %arg36[%c0_284, %c0_285, %c0_286] : memref<2x1x32xf32, #tpu.memory_space<vmem>>, vector<1x1x32xf32>
    %624 = vector.shape_cast %623 : vector<1x1x32xf32> to vector<1x32xf32>
    %cst_287 = arith.constant dense<0.000000e+00> : vector<8x128xf32>
    %625 = tpu.matmul %616, %618, %cst_287 {dimension_numbers = #tpu.dot_dimension_numbers<[1], [0], [0], [1], [0, 0, 1, 1], [], []>} : vector<8x32xf32>, vector<32x128xf32>, vector<8x128xf32> -> vector<8x128xf32>
    %626 = vector.broadcast %620 : vector<1x128xf32> to vector<8x128xf32>
    %627 = arith.addf %625, %626 : vector<8x128xf32>
    %cst_288 = arith.constant 0.000000e+00 : f32
    %628 = vector.broadcast %cst_288 : f32 to vector<8x128xf32>
    %629 = arith.maximumf %627, %628 : vector<8x128xf32>
    %cst_289 = arith.constant dense<0.000000e+00> : vector<8x32xf32>
    %630 = tpu.matmul %629, %622, %cst_289 {dimension_numbers = #tpu.dot_dimension_numbers<[1], [0], [0], [1], [0, 0, 1, 1], [], []>} : vector<8x128xf32>, vector<128x32xf32>, vector<8x32xf32> -> vector<8x32xf32>
    %631 = vector.broadcast %624 : vector<1x32xf32> to vector<8x32xf32>
    %632 = arith.addf %630, %631 : vector<8x32xf32>
    %c0_290 = arith.constant 0 : index
    %c0_291 = arith.constant 0 : index
    %c0_292 = arith.constant 0 : index
    %633 = vector.load %arg31[%c0_290, %c0_291, %c0_292] : memref<2x1x32xf32, #tpu.memory_space<vmem>>, vector<1x1x32xf32>
    %634 = vector.shape_cast %633 : vector<1x1x32xf32> to vector<1x32xf32>
    %c0_293 = arith.constant 0 : index
    %c0_294 = arith.constant 0 : index
    %c0_295 = arith.constant 0 : index
    %635 = vector.load %arg32[%c0_293, %c0_294, %c0_295] : memref<2x1x32xf32, #tpu.memory_space<vmem>>, vector<1x1x32xf32>
    %636 = vector.shape_cast %635 : vector<1x1x32xf32> to vector<1x32xf32>
    %637 = arith.addf %632, %616 : vector<8x32xf32>
    %cst_296 = arith.constant dense<0.000000e+00> : vector<8xf32>
    %638 = vector.multi_reduction <add>, %637, %cst_296 [1] : vector<8x32xf32> to vector<8xf32>
    %639 = vector.shape_cast %638 : vector<8xf32> to vector<8x1xf32>
    %cst_297 = arith.constant 3.200000e+01 : f32
    %640 = vector.broadcast %cst_297 : f32 to vector<8x1xf32>
    %641 = arith.divf %639, %640 : vector<8x1xf32>
    %642 = vector.broadcast %641 : vector<8x1xf32> to vector<8x32xf32>
    %643 = arith.subf %637, %642 : vector<8x32xf32>
    %644 = arith.mulf %643, %643 : vector<8x32xf32>
    %cst_298 = arith.constant dense<0.000000e+00> : vector<8xf32>
    %645 = vector.multi_reduction <add>, %644, %cst_298 [1] : vector<8x32xf32> to vector<8xf32>
    %646 = vector.shape_cast %645 : vector<8xf32> to vector<8x1xf32>
    %cst_299 = arith.constant 3.200000e+01 : f32
    %647 = vector.broadcast %cst_299 : f32 to vector<8x1xf32>
    %648 = arith.divf %646, %647 : vector<8x1xf32>
    %649 = vector.broadcast %641 : vector<8x1xf32> to vector<8x32xf32>
    %650 = arith.subf %637, %649 : vector<8x32xf32>
    %cst_300 = arith.constant 9.99999974E-6 : f32
    %651 = vector.broadcast %cst_300 : f32 to vector<8x1xf32>
    %652 = arith.addf %648, %651 : vector<8x1xf32>
    %653 = math.rsqrt %652 : vector<8x1xf32>
    %654 = vector.broadcast %653 : vector<8x1xf32> to vector<8x32xf32>
    %655 = arith.mulf %650, %654 : vector<8x32xf32>
    %656 = vector.broadcast %634 : vector<1x32xf32> to vector<8x32xf32>
    %657 = arith.mulf %655, %656 : vector<8x32xf32>
    %658 = vector.broadcast %636 : vector<1x32xf32> to vector<8x32xf32>
    %659 = arith.addf %657, %658 : vector<8x32xf32>
    %c1_301 = arith.constant 1 : index
    %c0_302 = arith.constant 0 : index
    %c0_303 = arith.constant 0 : index
    %660 = vector.load %arg17[%c1_301, %c0_302, %c0_303] : memref<2x32x32xf32, #tpu.memory_space<vmem>>, vector<1x32x32xf32>
    %661 = vector.shape_cast %660 : vector<1x32x32xf32> to vector<32x32xf32>
    %c1_304 = arith.constant 1 : index
    %c0_305 = arith.constant 0 : index
    %c0_306 = arith.constant 0 : index
    %662 = vector.load %arg18[%c1_304, %c0_305, %c0_306] : memref<2x32x32xf32, #tpu.memory_space<vmem>>, vector<1x32x32xf32>
    %663 = vector.shape_cast %662 : vector<1x32x32xf32> to vector<32x32xf32>
    %c1_307 = arith.constant 1 : index
    %c0_308 = arith.constant 0 : index
    %c0_309 = arith.constant 0 : index
    %664 = vector.load %arg19[%c1_307, %c0_308, %c0_309] : memref<2x32x32xf32, #tpu.memory_space<vmem>>, vector<1x32x32xf32>
    %665 = vector.shape_cast %664 : vector<1x32x32xf32> to vector<32x32xf32>
    %c1_310 = arith.constant 1 : index
    %c0_311 = arith.constant 0 : index
    %c0_312 = arith.constant 0 : index
    %666 = vector.load %arg20[%c1_310, %c0_311, %c0_312] : memref<2x32x32xf32, #tpu.memory_space<vmem>>, vector<1x32x32xf32>
    %667 = vector.shape_cast %666 : vector<1x32x32xf32> to vector<32x32xf32>
    %c1_313 = arith.constant 1 : index
    %c0_314 = arith.constant 0 : index
    %c0_315 = arith.constant 0 : index
    %668 = vector.load %arg21[%c1_313, %c0_314, %c0_315] : memref<2x1x32xf32, #tpu.memory_space<vmem>>, vector<1x1x32xf32>
    %669 = vector.shape_cast %668 : vector<1x1x32xf32> to vector<1x32xf32>
    %cst_316 = arith.constant dense<0.000000e+00> : vector<8x32xf32>
    %670 = tpu.matmul %659, %661, %cst_316 {dimension_numbers = #tpu.dot_dimension_numbers<[1], [0], [0], [1], [0, 0, 1, 1], [], []>} : vector<8x32xf32>, vector<32x32xf32>, vector<8x32xf32> -> vector<8x32xf32>
    %cst_317 = arith.constant dense<0.000000e+00> : vector<8x32xf32>
    %671 = tpu.matmul %659, %663, %cst_317 {dimension_numbers = #tpu.dot_dimension_numbers<[1], [0], [0], [1], [0, 0, 1, 1], [], []>} : vector<8x32xf32>, vector<32x32xf32>, vector<8x32xf32> -> vector<8x32xf32>
    %cst_318 = arith.constant dense<0.000000e+00> : vector<8x32xf32>
    %672 = tpu.matmul %659, %665, %cst_318 {dimension_numbers = #tpu.dot_dimension_numbers<[1], [0], [0], [1], [0, 0, 1, 1], [], []>} : vector<8x32xf32>, vector<32x32xf32>, vector<8x32xf32> -> vector<8x32xf32>
    %673 = vector.extract_strided_slice %670 {offsets = [0, 0], sizes = [8, 8], strides = [1, 1]} : vector<8x32xf32> to vector<8x8xf32>
    %674 = vector.extract_strided_slice %671 {offsets = [0, 0], sizes = [8, 8], strides = [1, 1]} : vector<8x32xf32> to vector<8x8xf32>
    %675 = tpu.transpose %674, [1, 0] : vector<8x8xf32> -> vector<8x8xf32>
    %cst_319 = arith.constant dense<0.000000e+00> : vector<8x8xf32>
    %676 = tpu.matmul %673, %675, %cst_319 {dimension_numbers = #tpu.dot_dimension_numbers<[1], [0], [0], [1], [0, 0, 1, 1], [], []>} : vector<8x8xf32>, vector<8x8xf32>, vector<8x8xf32> -> vector<8x8xf32>
    %cst_320 = arith.constant -1.000000e+20 : f32
    %677 = vector.broadcast %cst_320 : f32 to vector<8x8xf32>
    %678 = arith.select %6, %676, %677 : vector<8x8xi1>, vector<8x8xf32>
    %cst_321 = arith.constant 0.176776692 : f32
    %679 = vector.broadcast %cst_321 : f32 to vector<8x8xf32>
    %680 = arith.mulf %678, %679 : vector<8x8xf32>
    %cst_322 = arith.constant dense<0xFF800000> : vector<8xf32>
    %681 = vector.multi_reduction <maximumf>, %680, %cst_322 [1] : vector<8x8xf32> to vector<8xf32>
    %682 = vector.shape_cast %681 : vector<8xf32> to vector<8x1xf32>
    %683 = vector.broadcast %682 : vector<8x1xf32> to vector<8x8xf32>
    %684 = arith.subf %680, %683 : vector<8x8xf32>
    %685 = math.exp %684 : vector<8x8xf32>
    %cst_323 = arith.constant dense<0.000000e+00> : vector<8xf32>
    %686 = vector.multi_reduction <add>, %685, %cst_323 [1] : vector<8x8xf32> to vector<8xf32>
    %687 = vector.shape_cast %686 : vector<8xf32> to vector<8x1xf32>
    %688 = tpu.reciprocal %687 {approx = true} : vector<8x1xf32> -> vector<8x1xf32>
    %689 = vector.broadcast %688 : vector<8x1xf32> to vector<8x8xf32>
    %690 = arith.mulf %685, %689 : vector<8x8xf32>
    %691 = vector.extract_strided_slice %672 {offsets = [0, 0], sizes = [8, 8], strides = [1, 1]} : vector<8x32xf32> to vector<8x8xf32>
    %cst_324 = arith.constant dense<0.000000e+00> : vector<8x8xf32>
    %692 = tpu.matmul %690, %691, %cst_324 {dimension_numbers = #tpu.dot_dimension_numbers<[1], [0], [0], [1], [0, 0, 1, 1], [], []>} : vector<8x8xf32>, vector<8x8xf32>, vector<8x8xf32> -> vector<8x8xf32>
    %693 = vector.extract_strided_slice %670 {offsets = [0, 8], sizes = [8, 8], strides = [1, 1]} : vector<8x32xf32> to vector<8x8xf32>
    %694 = vector.extract_strided_slice %671 {offsets = [0, 8], sizes = [8, 8], strides = [1, 1]} : vector<8x32xf32> to vector<8x8xf32>
    %695 = tpu.transpose %694, [1, 0] : vector<8x8xf32> -> vector<8x8xf32>
    %cst_325 = arith.constant dense<0.000000e+00> : vector<8x8xf32>
    %696 = tpu.matmul %693, %695, %cst_325 {dimension_numbers = #tpu.dot_dimension_numbers<[1], [0], [0], [1], [0, 0, 1, 1], [], []>} : vector<8x8xf32>, vector<8x8xf32>, vector<8x8xf32> -> vector<8x8xf32>
    %cst_326 = arith.constant -1.000000e+20 : f32
    %697 = vector.broadcast %cst_326 : f32 to vector<8x8xf32>
    %698 = arith.select %6, %696, %697 : vector<8x8xi1>, vector<8x8xf32>
    %cst_327 = arith.constant 0.176776692 : f32
    %699 = vector.broadcast %cst_327 : f32 to vector<8x8xf32>
    %700 = arith.mulf %698, %699 : vector<8x8xf32>
    %cst_328 = arith.constant dense<0xFF800000> : vector<8xf32>
    %701 = vector.multi_reduction <maximumf>, %700, %cst_328 [1] : vector<8x8xf32> to vector<8xf32>
    %702 = vector.shape_cast %701 : vector<8xf32> to vector<8x1xf32>
    %703 = vector.broadcast %702 : vector<8x1xf32> to vector<8x8xf32>
    %704 = arith.subf %700, %703 : vector<8x8xf32>
    %705 = math.exp %704 : vector<8x8xf32>
    %cst_329 = arith.constant dense<0.000000e+00> : vector<8xf32>
    %706 = vector.multi_reduction <add>, %705, %cst_329 [1] : vector<8x8xf32> to vector<8xf32>
    %707 = vector.shape_cast %706 : vector<8xf32> to vector<8x1xf32>
    %708 = tpu.reciprocal %707 {approx = true} : vector<8x1xf32> -> vector<8x1xf32>
    %709 = vector.broadcast %708 : vector<8x1xf32> to vector<8x8xf32>
    %710 = arith.mulf %705, %709 : vector<8x8xf32>
    %711 = vector.extract_strided_slice %672 {offsets = [0, 8], sizes = [8, 8], strides = [1, 1]} : vector<8x32xf32> to vector<8x8xf32>
    %cst_330 = arith.constant dense<0.000000e+00> : vector<8x8xf32>
    %712 = tpu.matmul %710, %711, %cst_330 {dimension_numbers = #tpu.dot_dimension_numbers<[1], [0], [0], [1], [0, 0, 1, 1], [], []>} : vector<8x8xf32>, vector<8x8xf32>, vector<8x8xf32> -> vector<8x8xf32>
    %713 = vector.extract_strided_slice %670 {offsets = [0, 16], sizes = [8, 8], strides = [1, 1]} : vector<8x32xf32> to vector<8x8xf32>
    %714 = vector.extract_strided_slice %671 {offsets = [0, 16], sizes = [8, 8], strides = [1, 1]} : vector<8x32xf32> to vector<8x8xf32>
    %715 = tpu.transpose %714, [1, 0] : vector<8x8xf32> -> vector<8x8xf32>
    %cst_331 = arith.constant dense<0.000000e+00> : vector<8x8xf32>
    %716 = tpu.matmul %713, %715, %cst_331 {dimension_numbers = #tpu.dot_dimension_numbers<[1], [0], [0], [1], [0, 0, 1, 1], [], []>} : vector<8x8xf32>, vector<8x8xf32>, vector<8x8xf32> -> vector<8x8xf32>
    %cst_332 = arith.constant -1.000000e+20 : f32
    %717 = vector.broadcast %cst_332 : f32 to vector<8x8xf32>
    %718 = arith.select %6, %716, %717 : vector<8x8xi1>, vector<8x8xf32>
    %cst_333 = arith.constant 0.176776692 : f32
    %719 = vector.broadcast %cst_333 : f32 to vector<8x8xf32>
    %720 = arith.mulf %718, %719 : vector<8x8xf32>
    %cst_334 = arith.constant dense<0xFF800000> : vector<8xf32>
    %721 = vector.multi_reduction <maximumf>, %720, %cst_334 [1] : vector<8x8xf32> to vector<8xf32>
    %722 = vector.shape_cast %721 : vector<8xf32> to vector<8x1xf32>
    %723 = vector.broadcast %722 : vector<8x1xf32> to vector<8x8xf32>
    %724 = arith.subf %720, %723 : vector<8x8xf32>
    %725 = math.exp %724 : vector<8x8xf32>
    %cst_335 = arith.constant dense<0.000000e+00> : vector<8xf32>
    %726 = vector.multi_reduction <add>, %725, %cst_335 [1] : vector<8x8xf32> to vector<8xf32>
    %727 = vector.shape_cast %726 : vector<8xf32> to vector<8x1xf32>
    %728 = tpu.reciprocal %727 {approx = true} : vector<8x1xf32> -> vector<8x1xf32>
    %729 = vector.broadcast %728 : vector<8x1xf32> to vector<8x8xf32>
    %730 = arith.mulf %725, %729 : vector<8x8xf32>
    %731 = vector.extract_strided_slice %672 {offsets = [0, 16], sizes = [8, 8], strides = [1, 1]} : vector<8x32xf32> to vector<8x8xf32>
    %cst_336 = arith.constant dense<0.000000e+00> : vector<8x8xf32>
    %732 = tpu.matmul %730, %731, %cst_336 {dimension_numbers = #tpu.dot_dimension_numbers<[1], [0], [0], [1], [0, 0, 1, 1], [], []>} : vector<8x8xf32>, vector<8x8xf32>, vector<8x8xf32> -> vector<8x8xf32>
    %733 = vector.extract_strided_slice %670 {offsets = [0, 24], sizes = [8, 8], strides = [1, 1]} : vector<8x32xf32> to vector<8x8xf32>
    %734 = vector.extract_strided_slice %671 {offsets = [0, 24], sizes = [8, 8], strides = [1, 1]} : vector<8x32xf32> to vector<8x8xf32>
    %735 = tpu.transpose %734, [1, 0] : vector<8x8xf32> -> vector<8x8xf32>
    %cst_337 = arith.constant dense<0.000000e+00> : vector<8x8xf32>
    %736 = tpu.matmul %733, %735, %cst_337 {dimension_numbers = #tpu.dot_dimension_numbers<[1], [0], [0], [1], [0, 0, 1, 1], [], []>} : vector<8x8xf32>, vector<8x8xf32>, vector<8x8xf32> -> vector<8x8xf32>
    %cst_338 = arith.constant -1.000000e+20 : f32
    %737 = vector.broadcast %cst_338 : f32 to vector<8x8xf32>
    %738 = arith.select %6, %736, %737 : vector<8x8xi1>, vector<8x8xf32>
    %cst_339 = arith.constant 0.176776692 : f32
    %739 = vector.broadcast %cst_339 : f32 to vector<8x8xf32>
    %740 = arith.mulf %738, %739 : vector<8x8xf32>
    %cst_340 = arith.constant dense<0xFF800000> : vector<8xf32>
    %741 = vector.multi_reduction <maximumf>, %740, %cst_340 [1] : vector<8x8xf32> to vector<8xf32>
    %742 = vector.shape_cast %741 : vector<8xf32> to vector<8x1xf32>
    %743 = vector.broadcast %742 : vector<8x1xf32> to vector<8x8xf32>
    %744 = arith.subf %740, %743 : vector<8x8xf32>
    %745 = math.exp %744 : vector<8x8xf32>
    %cst_341 = arith.constant dense<0.000000e+00> : vector<8xf32>
    %746 = vector.multi_reduction <add>, %745, %cst_341 [1] : vector<8x8xf32> to vector<8xf32>
    %747 = vector.shape_cast %746 : vector<8xf32> to vector<8x1xf32>
    %748 = tpu.reciprocal %747 {approx = true} : vector<8x1xf32> -> vector<8x1xf32>
    %749 = vector.broadcast %748 : vector<8x1xf32> to vector<8x8xf32>
    %750 = arith.mulf %745, %749 : vector<8x8xf32>
    %751 = vector.extract_strided_slice %672 {offsets = [0, 24], sizes = [8, 8], strides = [1, 1]} : vector<8x32xf32> to vector<8x8xf32>
    %cst_342 = arith.constant dense<0.000000e+00> : vector<8x8xf32>
    %752 = tpu.matmul %750, %751, %cst_342 {dimension_numbers = #tpu.dot_dimension_numbers<[1], [0], [0], [1], [0, 0, 1, 1], [], []>} : vector<8x8xf32>, vector<8x8xf32>, vector<8x8xf32> -> vector<8x8xf32>
    %753 = tpu.concatenate %692, %712, %732, %752 in 1 : vector<8x8xf32>, vector<8x8xf32>, vector<8x8xf32>, vector<8x8xf32> -> vector<8x32xf32>
    %cst_343 = arith.constant dense<0.000000e+00> : vector<8x32xf32>
    %754 = tpu.matmul %753, %667, %cst_343 {dimension_numbers = #tpu.dot_dimension_numbers<[1], [0], [0], [1], [0, 0, 1, 1], [], []>} : vector<8x32xf32>, vector<32x32xf32>, vector<8x32xf32> -> vector<8x32xf32>
    %755 = vector.broadcast %669 : vector<1x32xf32> to vector<8x32xf32>
    %756 = arith.addf %754, %755 : vector<8x32xf32>
    %c1_344 = arith.constant 1 : index
    %c0_345 = arith.constant 0 : index
    %c0_346 = arith.constant 0 : index
    %757 = vector.load %arg22[%c1_344, %c0_345, %c0_346] : memref<2x1x32xf32, #tpu.memory_space<vmem>>, vector<1x1x32xf32>
    %758 = vector.shape_cast %757 : vector<1x1x32xf32> to vector<1x32xf32>
    %c1_347 = arith.constant 1 : index
    %c0_348 = arith.constant 0 : index
    %c0_349 = arith.constant 0 : index
    %759 = vector.load %arg23[%c1_347, %c0_348, %c0_349] : memref<2x1x32xf32, #tpu.memory_space<vmem>>, vector<1x1x32xf32>
    %760 = vector.shape_cast %759 : vector<1x1x32xf32> to vector<1x32xf32>
    %761 = arith.addf %756, %659 : vector<8x32xf32>
    %cst_350 = arith.constant dense<0.000000e+00> : vector<8xf32>
    %762 = vector.multi_reduction <add>, %761, %cst_350 [1] : vector<8x32xf32> to vector<8xf32>
    %763 = vector.shape_cast %762 : vector<8xf32> to vector<8x1xf32>
    %cst_351 = arith.constant 3.200000e+01 : f32
    %764 = vector.broadcast %cst_351 : f32 to vector<8x1xf32>
    %765 = arith.divf %763, %764 : vector<8x1xf32>
    %766 = vector.broadcast %765 : vector<8x1xf32> to vector<8x32xf32>
    %767 = arith.subf %761, %766 : vector<8x32xf32>
    %768 = arith.mulf %767, %767 : vector<8x32xf32>
    %cst_352 = arith.constant dense<0.000000e+00> : vector<8xf32>
    %769 = vector.multi_reduction <add>, %768, %cst_352 [1] : vector<8x32xf32> to vector<8xf32>
    %770 = vector.shape_cast %769 : vector<8xf32> to vector<8x1xf32>
    %cst_353 = arith.constant 3.200000e+01 : f32
    %771 = vector.broadcast %cst_353 : f32 to vector<8x1xf32>
    %772 = arith.divf %770, %771 : vector<8x1xf32>
    %773 = vector.broadcast %765 : vector<8x1xf32> to vector<8x32xf32>
    %774 = arith.subf %761, %773 : vector<8x32xf32>
    %cst_354 = arith.constant 9.99999974E-6 : f32
    %775 = vector.broadcast %cst_354 : f32 to vector<8x1xf32>
    %776 = arith.addf %772, %775 : vector<8x1xf32>
    %777 = math.rsqrt %776 : vector<8x1xf32>
    %778 = vector.broadcast %777 : vector<8x1xf32> to vector<8x32xf32>
    %779 = arith.mulf %774, %778 : vector<8x32xf32>
    %780 = vector.broadcast %758 : vector<1x32xf32> to vector<8x32xf32>
    %781 = arith.mulf %779, %780 : vector<8x32xf32>
    %782 = vector.broadcast %760 : vector<1x32xf32> to vector<8x32xf32>
    %783 = arith.addf %781, %782 : vector<8x32xf32>
    %c1_355 = arith.constant 1 : index
    %c0_356 = arith.constant 0 : index
    %c0_357 = arith.constant 0 : index
    %784 = vector.load %arg24[%c1_355, %c0_356, %c0_357] : memref<2x32x32xf32, #tpu.memory_space<vmem>>, vector<1x32x32xf32>
    %785 = vector.shape_cast %784 : vector<1x32x32xf32> to vector<32x32xf32>
    %c1_358 = arith.constant 1 : index
    %c0_359 = arith.constant 0 : index
    %c0_360 = arith.constant 0 : index
    %786 = vector.load %arg25[%c1_358, %c0_359, %c0_360] : memref<2x32x32xf32, #tpu.memory_space<vmem>>, vector<1x32x32xf32>
    %787 = vector.shape_cast %786 : vector<1x32x32xf32> to vector<32x32xf32>
    %c1_361 = arith.constant 1 : index
    %c0_362 = arith.constant 0 : index
    %c0_363 = arith.constant 0 : index
    %788 = vector.load %arg26[%c1_361, %c0_362, %c0_363] : memref<2x32x32xf32, #tpu.memory_space<vmem>>, vector<1x32x32xf32>
    %789 = vector.shape_cast %788 : vector<1x32x32xf32> to vector<32x32xf32>
    %c1_364 = arith.constant 1 : index
    %c0_365 = arith.constant 0 : index
    %c0_366 = arith.constant 0 : index
    %790 = vector.load %arg27[%c1_364, %c0_365, %c0_366] : memref<2x32x32xf32, #tpu.memory_space<vmem>>, vector<1x32x32xf32>
    %791 = vector.shape_cast %790 : vector<1x32x32xf32> to vector<32x32xf32>
    %c1_367 = arith.constant 1 : index
    %c0_368 = arith.constant 0 : index
    %c0_369 = arith.constant 0 : index
    %792 = vector.load %arg28[%c1_367, %c0_368, %c0_369] : memref<2x1x32xf32, #tpu.memory_space<vmem>>, vector<1x1x32xf32>
    %793 = vector.shape_cast %792 : vector<1x1x32xf32> to vector<1x32xf32>
    %cst_370 = arith.constant dense<0.000000e+00> : vector<8x32xf32>
    %794 = tpu.matmul %783, %785, %cst_370 {dimension_numbers = #tpu.dot_dimension_numbers<[1], [0], [0], [1], [0, 0, 1, 1], [], []>} : vector<8x32xf32>, vector<32x32xf32>, vector<8x32xf32> -> vector<8x32xf32>
    %cst_371 = arith.constant dense<0.000000e+00> : vector<8x32xf32>
    %795 = tpu.matmul %358, %787, %cst_371 {dimension_numbers = #tpu.dot_dimension_numbers<[1], [0], [0], [1], [0, 0, 1, 1], [], []>} : vector<8x32xf32>, vector<32x32xf32>, vector<8x32xf32> -> vector<8x32xf32>
    %cst_372 = arith.constant dense<0.000000e+00> : vector<8x32xf32>
    %796 = tpu.matmul %358, %789, %cst_372 {dimension_numbers = #tpu.dot_dimension_numbers<[1], [0], [0], [1], [0, 0, 1, 1], [], []>} : vector<8x32xf32>, vector<32x32xf32>, vector<8x32xf32> -> vector<8x32xf32>
    %797 = vector.extract_strided_slice %794 {offsets = [0, 0], sizes = [8, 8], strides = [1, 1]} : vector<8x32xf32> to vector<8x8xf32>
    %798 = vector.extract_strided_slice %795 {offsets = [0, 0], sizes = [8, 8], strides = [1, 1]} : vector<8x32xf32> to vector<8x8xf32>
    %799 = tpu.transpose %798, [1, 0] : vector<8x8xf32> -> vector<8x8xf32>
    %cst_373 = arith.constant dense<0.000000e+00> : vector<8x8xf32>
    %800 = tpu.matmul %797, %799, %cst_373 {dimension_numbers = #tpu.dot_dimension_numbers<[1], [0], [0], [1], [0, 0, 1, 1], [], []>} : vector<8x8xf32>, vector<8x8xf32>, vector<8x8xf32> -> vector<8x8xf32>
    %cst_374 = arith.constant -1.000000e+20 : f32
    %801 = vector.shape_cast %3 : vector<1x8xi1> to vector<1x8xi1>
    %802 = vector.broadcast %801 : vector<1x8xi1> to vector<8x8xi1>
    %803 = vector.broadcast %cst_374 : f32 to vector<8x8xf32>
    %804 = arith.select %802, %800, %803 : vector<8x8xi1>, vector<8x8xf32>
    %cst_375 = arith.constant 0.176776692 : f32
    %805 = vector.broadcast %cst_375 : f32 to vector<8x8xf32>
    %806 = arith.mulf %804, %805 : vector<8x8xf32>
    %cst_376 = arith.constant dense<0xFF800000> : vector<8xf32>
    %807 = vector.multi_reduction <maximumf>, %806, %cst_376 [1] : vector<8x8xf32> to vector<8xf32>
    %808 = vector.shape_cast %807 : vector<8xf32> to vector<8x1xf32>
    %809 = vector.broadcast %808 : vector<8x1xf32> to vector<8x8xf32>
    %810 = arith.subf %806, %809 : vector<8x8xf32>
    %811 = math.exp %810 : vector<8x8xf32>
    %cst_377 = arith.constant dense<0.000000e+00> : vector<8xf32>
    %812 = vector.multi_reduction <add>, %811, %cst_377 [1] : vector<8x8xf32> to vector<8xf32>
    %813 = vector.shape_cast %812 : vector<8xf32> to vector<8x1xf32>
    %814 = tpu.reciprocal %813 {approx = true} : vector<8x1xf32> -> vector<8x1xf32>
    %815 = vector.broadcast %814 : vector<8x1xf32> to vector<8x8xf32>
    %816 = arith.mulf %811, %815 : vector<8x8xf32>
    %817 = vector.extract_strided_slice %796 {offsets = [0, 0], sizes = [8, 8], strides = [1, 1]} : vector<8x32xf32> to vector<8x8xf32>
    %cst_378 = arith.constant dense<0.000000e+00> : vector<8x8xf32>
    %818 = tpu.matmul %816, %817, %cst_378 {dimension_numbers = #tpu.dot_dimension_numbers<[1], [0], [0], [1], [0, 0, 1, 1], [], []>} : vector<8x8xf32>, vector<8x8xf32>, vector<8x8xf32> -> vector<8x8xf32>
    %819 = vector.extract_strided_slice %794 {offsets = [0, 8], sizes = [8, 8], strides = [1, 1]} : vector<8x32xf32> to vector<8x8xf32>
    %820 = vector.extract_strided_slice %795 {offsets = [0, 8], sizes = [8, 8], strides = [1, 1]} : vector<8x32xf32> to vector<8x8xf32>
    %821 = tpu.transpose %820, [1, 0] : vector<8x8xf32> -> vector<8x8xf32>
    %cst_379 = arith.constant dense<0.000000e+00> : vector<8x8xf32>
    %822 = tpu.matmul %819, %821, %cst_379 {dimension_numbers = #tpu.dot_dimension_numbers<[1], [0], [0], [1], [0, 0, 1, 1], [], []>} : vector<8x8xf32>, vector<8x8xf32>, vector<8x8xf32> -> vector<8x8xf32>
    %cst_380 = arith.constant -1.000000e+20 : f32
    %823 = vector.shape_cast %3 : vector<1x8xi1> to vector<1x8xi1>
    %824 = vector.broadcast %823 : vector<1x8xi1> to vector<8x8xi1>
    %825 = vector.broadcast %cst_380 : f32 to vector<8x8xf32>
    %826 = arith.select %824, %822, %825 : vector<8x8xi1>, vector<8x8xf32>
    %cst_381 = arith.constant 0.176776692 : f32
    %827 = vector.broadcast %cst_381 : f32 to vector<8x8xf32>
    %828 = arith.mulf %826, %827 : vector<8x8xf32>
    %cst_382 = arith.constant dense<0xFF800000> : vector<8xf32>
    %829 = vector.multi_reduction <maximumf>, %828, %cst_382 [1] : vector<8x8xf32> to vector<8xf32>
    %830 = vector.shape_cast %829 : vector<8xf32> to vector<8x1xf32>
    %831 = vector.broadcast %830 : vector<8x1xf32> to vector<8x8xf32>
    %832 = arith.subf %828, %831 : vector<8x8xf32>
    %833 = math.exp %832 : vector<8x8xf32>
    %cst_383 = arith.constant dense<0.000000e+00> : vector<8xf32>
    %834 = vector.multi_reduction <add>, %833, %cst_383 [1] : vector<8x8xf32> to vector<8xf32>
    %835 = vector.shape_cast %834 : vector<8xf32> to vector<8x1xf32>
    %836 = tpu.reciprocal %835 {approx = true} : vector<8x1xf32> -> vector<8x1xf32>
    %837 = vector.broadcast %836 : vector<8x1xf32> to vector<8x8xf32>
    %838 = arith.mulf %833, %837 : vector<8x8xf32>
    %839 = vector.extract_strided_slice %796 {offsets = [0, 8], sizes = [8, 8], strides = [1, 1]} : vector<8x32xf32> to vector<8x8xf32>
    %cst_384 = arith.constant dense<0.000000e+00> : vector<8x8xf32>
    %840 = tpu.matmul %838, %839, %cst_384 {dimension_numbers = #tpu.dot_dimension_numbers<[1], [0], [0], [1], [0, 0, 1, 1], [], []>} : vector<8x8xf32>, vector<8x8xf32>, vector<8x8xf32> -> vector<8x8xf32>
    %841 = vector.extract_strided_slice %794 {offsets = [0, 16], sizes = [8, 8], strides = [1, 1]} : vector<8x32xf32> to vector<8x8xf32>
    %842 = vector.extract_strided_slice %795 {offsets = [0, 16], sizes = [8, 8], strides = [1, 1]} : vector<8x32xf32> to vector<8x8xf32>
    %843 = tpu.transpose %842, [1, 0] : vector<8x8xf32> -> vector<8x8xf32>
    %cst_385 = arith.constant dense<0.000000e+00> : vector<8x8xf32>
    %844 = tpu.matmul %841, %843, %cst_385 {dimension_numbers = #tpu.dot_dimension_numbers<[1], [0], [0], [1], [0, 0, 1, 1], [], []>} : vector<8x8xf32>, vector<8x8xf32>, vector<8x8xf32> -> vector<8x8xf32>
    %cst_386 = arith.constant -1.000000e+20 : f32
    %845 = vector.shape_cast %3 : vector<1x8xi1> to vector<1x8xi1>
    %846 = vector.broadcast %845 : vector<1x8xi1> to vector<8x8xi1>
    %847 = vector.broadcast %cst_386 : f32 to vector<8x8xf32>
    %848 = arith.select %846, %844, %847 : vector<8x8xi1>, vector<8x8xf32>
    %cst_387 = arith.constant 0.176776692 : f32
    %849 = vector.broadcast %cst_387 : f32 to vector<8x8xf32>
    %850 = arith.mulf %848, %849 : vector<8x8xf32>
    %cst_388 = arith.constant dense<0xFF800000> : vector<8xf32>
    %851 = vector.multi_reduction <maximumf>, %850, %cst_388 [1] : vector<8x8xf32> to vector<8xf32>
    %852 = vector.shape_cast %851 : vector<8xf32> to vector<8x1xf32>
    %853 = vector.broadcast %852 : vector<8x1xf32> to vector<8x8xf32>
    %854 = arith.subf %850, %853 : vector<8x8xf32>
    %855 = math.exp %854 : vector<8x8xf32>
    %cst_389 = arith.constant dense<0.000000e+00> : vector<8xf32>
    %856 = vector.multi_reduction <add>, %855, %cst_389 [1] : vector<8x8xf32> to vector<8xf32>
    %857 = vector.shape_cast %856 : vector<8xf32> to vector<8x1xf32>
    %858 = tpu.reciprocal %857 {approx = true} : vector<8x1xf32> -> vector<8x1xf32>
    %859 = vector.broadcast %858 : vector<8x1xf32> to vector<8x8xf32>
    %860 = arith.mulf %855, %859 : vector<8x8xf32>
    %861 = vector.extract_strided_slice %796 {offsets = [0, 16], sizes = [8, 8], strides = [1, 1]} : vector<8x32xf32> to vector<8x8xf32>
    %cst_390 = arith.constant dense<0.000000e+00> : vector<8x8xf32>
    %862 = tpu.matmul %860, %861, %cst_390 {dimension_numbers = #tpu.dot_dimension_numbers<[1], [0], [0], [1], [0, 0, 1, 1], [], []>} : vector<8x8xf32>, vector<8x8xf32>, vector<8x8xf32> -> vector<8x8xf32>
    %863 = vector.extract_strided_slice %794 {offsets = [0, 24], sizes = [8, 8], strides = [1, 1]} : vector<8x32xf32> to vector<8x8xf32>
    %864 = vector.extract_strided_slice %795 {offsets = [0, 24], sizes = [8, 8], strides = [1, 1]} : vector<8x32xf32> to vector<8x8xf32>
    %865 = tpu.transpose %864, [1, 0] : vector<8x8xf32> -> vector<8x8xf32>
    %cst_391 = arith.constant dense<0.000000e+00> : vector<8x8xf32>
    %866 = tpu.matmul %863, %865, %cst_391 {dimension_numbers = #tpu.dot_dimension_numbers<[1], [0], [0], [1], [0, 0, 1, 1], [], []>} : vector<8x8xf32>, vector<8x8xf32>, vector<8x8xf32> -> vector<8x8xf32>
    %cst_392 = arith.constant -1.000000e+20 : f32
    %867 = vector.shape_cast %3 : vector<1x8xi1> to vector<1x8xi1>
    %868 = vector.broadcast %867 : vector<1x8xi1> to vector<8x8xi1>
    %869 = vector.broadcast %cst_392 : f32 to vector<8x8xf32>
    %870 = arith.select %868, %866, %869 : vector<8x8xi1>, vector<8x8xf32>
    %cst_393 = arith.constant 0.176776692 : f32
    %871 = vector.broadcast %cst_393 : f32 to vector<8x8xf32>
    %872 = arith.mulf %870, %871 : vector<8x8xf32>
    %cst_394 = arith.constant dense<0xFF800000> : vector<8xf32>
    %873 = vector.multi_reduction <maximumf>, %872, %cst_394 [1] : vector<8x8xf32> to vector<8xf32>
    %874 = vector.shape_cast %873 : vector<8xf32> to vector<8x1xf32>
    %875 = vector.broadcast %874 : vector<8x1xf32> to vector<8x8xf32>
    %876 = arith.subf %872, %875 : vector<8x8xf32>
    %877 = math.exp %876 : vector<8x8xf32>
    %cst_395 = arith.constant dense<0.000000e+00> : vector<8xf32>
    %878 = vector.multi_reduction <add>, %877, %cst_395 [1] : vector<8x8xf32> to vector<8xf32>
    %879 = vector.shape_cast %878 : vector<8xf32> to vector<8x1xf32>
    %880 = tpu.reciprocal %879 {approx = true} : vector<8x1xf32> -> vector<8x1xf32>
    %881 = vector.broadcast %880 : vector<8x1xf32> to vector<8x8xf32>
    %882 = arith.mulf %877, %881 : vector<8x8xf32>
    %883 = vector.extract_strided_slice %796 {offsets = [0, 24], sizes = [8, 8], strides = [1, 1]} : vector<8x32xf32> to vector<8x8xf32>
    %cst_396 = arith.constant dense<0.000000e+00> : vector<8x8xf32>
    %884 = tpu.matmul %882, %883, %cst_396 {dimension_numbers = #tpu.dot_dimension_numbers<[1], [0], [0], [1], [0, 0, 1, 1], [], []>} : vector<8x8xf32>, vector<8x8xf32>, vector<8x8xf32> -> vector<8x8xf32>
    %885 = tpu.concatenate %818, %840, %862, %884 in 1 : vector<8x8xf32>, vector<8x8xf32>, vector<8x8xf32>, vector<8x8xf32> -> vector<8x32xf32>
    %cst_397 = arith.constant dense<0.000000e+00> : vector<8x32xf32>
    %886 = tpu.matmul %885, %791, %cst_397 {dimension_numbers = #tpu.dot_dimension_numbers<[1], [0], [0], [1], [0, 0, 1, 1], [], []>} : vector<8x32xf32>, vector<32x32xf32>, vector<8x32xf32> -> vector<8x32xf32>
    %887 = vector.broadcast %793 : vector<1x32xf32> to vector<8x32xf32>
    %888 = arith.addf %886, %887 : vector<8x32xf32>
    %c1_398 = arith.constant 1 : index
    %c0_399 = arith.constant 0 : index
    %c0_400 = arith.constant 0 : index
    %889 = vector.load %arg29[%c1_398, %c0_399, %c0_400] : memref<2x1x32xf32, #tpu.memory_space<vmem>>, vector<1x1x32xf32>
    %890 = vector.shape_cast %889 : vector<1x1x32xf32> to vector<1x32xf32>
    %c1_401 = arith.constant 1 : index
    %c0_402 = arith.constant 0 : index
    %c0_403 = arith.constant 0 : index
    %891 = vector.load %arg30[%c1_401, %c0_402, %c0_403] : memref<2x1x32xf32, #tpu.memory_space<vmem>>, vector<1x1x32xf32>
    %892 = vector.shape_cast %891 : vector<1x1x32xf32> to vector<1x32xf32>
    %893 = arith.addf %888, %783 : vector<8x32xf32>
    %cst_404 = arith.constant dense<0.000000e+00> : vector<8xf32>
    %894 = vector.multi_reduction <add>, %893, %cst_404 [1] : vector<8x32xf32> to vector<8xf32>
    %895 = vector.shape_cast %894 : vector<8xf32> to vector<8x1xf32>
    %cst_405 = arith.constant 3.200000e+01 : f32
    %896 = vector.broadcast %cst_405 : f32 to vector<8x1xf32>
    %897 = arith.divf %895, %896 : vector<8x1xf32>
    %898 = vector.broadcast %897 : vector<8x1xf32> to vector<8x32xf32>
    %899 = arith.subf %893, %898 : vector<8x32xf32>
    %900 = arith.mulf %899, %899 : vector<8x32xf32>
    %cst_406 = arith.constant dense<0.000000e+00> : vector<8xf32>
    %901 = vector.multi_reduction <add>, %900, %cst_406 [1] : vector<8x32xf32> to vector<8xf32>
    %902 = vector.shape_cast %901 : vector<8xf32> to vector<8x1xf32>
    %cst_407 = arith.constant 3.200000e+01 : f32
    %903 = vector.broadcast %cst_407 : f32 to vector<8x1xf32>
    %904 = arith.divf %902, %903 : vector<8x1xf32>
    %905 = vector.broadcast %897 : vector<8x1xf32> to vector<8x32xf32>
    %906 = arith.subf %893, %905 : vector<8x32xf32>
    %cst_408 = arith.constant 9.99999974E-6 : f32
    %907 = vector.broadcast %cst_408 : f32 to vector<8x1xf32>
    %908 = arith.addf %904, %907 : vector<8x1xf32>
    %909 = math.rsqrt %908 : vector<8x1xf32>
    %910 = vector.broadcast %909 : vector<8x1xf32> to vector<8x32xf32>
    %911 = arith.mulf %906, %910 : vector<8x32xf32>
    %912 = vector.broadcast %890 : vector<1x32xf32> to vector<8x32xf32>
    %913 = arith.mulf %911, %912 : vector<8x32xf32>
    %914 = vector.broadcast %892 : vector<1x32xf32> to vector<8x32xf32>
    %915 = arith.addf %913, %914 : vector<8x32xf32>
    %c1_409 = arith.constant 1 : index
    %c0_410 = arith.constant 0 : index
    %c0_411 = arith.constant 0 : index
    %916 = vector.load %arg33[%c1_409, %c0_410, %c0_411] : memref<2x32x128xf32, #tpu.memory_space<vmem>>, vector<1x32x128xf32>
    %917 = vector.shape_cast %916 : vector<1x32x128xf32> to vector<32x128xf32>
    %c1_412 = arith.constant 1 : index
    %c0_413 = arith.constant 0 : index
    %c0_414 = arith.constant 0 : index
    %918 = vector.load %arg34[%c1_412, %c0_413, %c0_414] : memref<2x1x128xf32, #tpu.memory_space<vmem>>, vector<1x1x128xf32>
    %919 = vector.shape_cast %918 : vector<1x1x128xf32> to vector<1x128xf32>
    %c1_415 = arith.constant 1 : index
    %c0_416 = arith.constant 0 : index
    %c0_417 = arith.constant 0 : index
    %920 = vector.load %arg35[%c1_415, %c0_416, %c0_417] : memref<2x128x32xf32, #tpu.memory_space<vmem>>, vector<1x128x32xf32>
    %921 = vector.shape_cast %920 : vector<1x128x32xf32> to vector<128x32xf32>
    %c1_418 = arith.constant 1 : index
    %c0_419 = arith.constant 0 : index
    %c0_420 = arith.constant 0 : index
    %922 = vector.load %arg36[%c1_418, %c0_419, %c0_420] : memref<2x1x32xf32, #tpu.memory_space<vmem>>, vector<1x1x32xf32>
    %923 = vector.shape_cast %922 : vector<1x1x32xf32> to vector<1x32xf32>
    %cst_421 = arith.constant dense<0.000000e+00> : vector<8x128xf32>
    %924 = tpu.matmul %915, %917, %cst_421 {dimension_numbers = #tpu.dot_dimension_numbers<[1], [0], [0], [1], [0, 0, 1, 1], [], []>} : vector<8x32xf32>, vector<32x128xf32>, vector<8x128xf32> -> vector<8x128xf32>
    %925 = vector.broadcast %919 : vector<1x128xf32> to vector<8x128xf32>
    %926 = arith.addf %924, %925 : vector<8x128xf32>
    %cst_422 = arith.constant 0.000000e+00 : f32
    %927 = vector.broadcast %cst_422 : f32 to vector<8x128xf32>
    %928 = arith.maximumf %926, %927 : vector<8x128xf32>
    %cst_423 = arith.constant dense<0.000000e+00> : vector<8x32xf32>
    %929 = tpu.matmul %928, %921, %cst_423 {dimension_numbers = #tpu.dot_dimension_numbers<[1], [0], [0], [1], [0, 0, 1, 1], [], []>} : vector<8x128xf32>, vector<128x32xf32>, vector<8x32xf32> -> vector<8x32xf32>
    %930 = vector.broadcast %923 : vector<1x32xf32> to vector<8x32xf32>
    %931 = arith.addf %929, %930 : vector<8x32xf32>
    %c1_424 = arith.constant 1 : index
    %c0_425 = arith.constant 0 : index
    %c0_426 = arith.constant 0 : index
    %932 = vector.load %arg31[%c1_424, %c0_425, %c0_426] : memref<2x1x32xf32, #tpu.memory_space<vmem>>, vector<1x1x32xf32>
    %933 = vector.shape_cast %932 : vector<1x1x32xf32> to vector<1x32xf32>
    %c1_427 = arith.constant 1 : index
    %c0_428 = arith.constant 0 : index
    %c0_429 = arith.constant 0 : index
    %934 = vector.load %arg32[%c1_427, %c0_428, %c0_429] : memref<2x1x32xf32, #tpu.memory_space<vmem>>, vector<1x1x32xf32>
    %935 = vector.shape_cast %934 : vector<1x1x32xf32> to vector<1x32xf32>
    %936 = arith.addf %931, %915 : vector<8x32xf32>
    %cst_430 = arith.constant dense<0.000000e+00> : vector<8xf32>
    %937 = vector.multi_reduction <add>, %936, %cst_430 [1] : vector<8x32xf32> to vector<8xf32>
    %938 = vector.shape_cast %937 : vector<8xf32> to vector<8x1xf32>
    %cst_431 = arith.constant 3.200000e+01 : f32
    %939 = vector.broadcast %cst_431 : f32 to vector<8x1xf32>
    %940 = arith.divf %938, %939 : vector<8x1xf32>
    %941 = vector.broadcast %940 : vector<8x1xf32> to vector<8x32xf32>
    %942 = arith.subf %936, %941 : vector<8x32xf32>
    %943 = arith.mulf %942, %942 : vector<8x32xf32>
    %cst_432 = arith.constant dense<0.000000e+00> : vector<8xf32>
    %944 = vector.multi_reduction <add>, %943, %cst_432 [1] : vector<8x32xf32> to vector<8xf32>
    %945 = vector.shape_cast %944 : vector<8xf32> to vector<8x1xf32>
    %cst_433 = arith.constant 3.200000e+01 : f32
    %946 = vector.broadcast %cst_433 : f32 to vector<8x1xf32>
    %947 = arith.divf %945, %946 : vector<8x1xf32>
    %948 = vector.broadcast %940 : vector<8x1xf32> to vector<8x32xf32>
    %949 = arith.subf %936, %948 : vector<8x32xf32>
    %cst_434 = arith.constant 9.99999974E-6 : f32
    %950 = vector.broadcast %cst_434 : f32 to vector<8x1xf32>
    %951 = arith.addf %947, %950 : vector<8x1xf32>
    %952 = math.rsqrt %951 : vector<8x1xf32>
    %953 = vector.broadcast %952 : vector<8x1xf32> to vector<8x32xf32>
    %954 = arith.mulf %949, %953 : vector<8x32xf32>
    %955 = vector.broadcast %933 : vector<1x32xf32> to vector<8x32xf32>
    %956 = arith.mulf %954, %955 : vector<8x32xf32>
    %957 = vector.broadcast %935 : vector<1x32xf32> to vector<8x32xf32>
    %958 = arith.addf %956, %957 : vector<8x32xf32>
    %c0_435 = arith.constant 0 : index
    %c0_436 = arith.constant 0 : index
    %959 = vector.load %arg37[%c0_435, %c0_436] : memref<32x128xf32, #tpu.memory_space<vmem>>, vector<32x128xf32>
    %cst_437 = arith.constant dense<0.000000e+00> : vector<8x128xf32>
    %960 = tpu.matmul %958, %959, %cst_437 {dimension_numbers = #tpu.dot_dimension_numbers<[1], [0], [0], [1], [0, 0, 1, 1], [], []>} : vector<8x32xf32>, vector<32x128xf32>, vector<8x128xf32> -> vector<8x128xf32>
    %c0_438 = arith.constant 0 : index
    %c0_439 = arith.constant 0 : index
    %961 = vector.load %arg38[%c0_438, %c0_439] : memref<1x128xf32, #tpu.memory_space<vmem>>, vector<1x128xf32>
    %962 = vector.broadcast %961 : vector<1x128xf32> to vector<8x128xf32>
    %963 = arith.addf %960, %962 : vector<8x128xf32>
    %c0_440 = arith.constant 0 : index
    %c0_441 = arith.constant 0 : index
    %c0_442 = arith.constant 0 : index
    %964 = vector.load %arg39[%c0_440, %c0_441, %c0_442] : memref<1x8x128xf32, #tpu.memory_space<vmem>>, vector<1x8x128xf32>
    %965 = vector.shape_cast %964 : vector<1x8x128xf32> to vector<8x128xf32>
    %966 = vector.shape_cast %963 : vector<8x128xf32> to vector<1x8x128xf32>
    tpu.vector_store %arg39[%c0_440, %c0_441, %c0_442], %966 {strides = array<i32>} : memref<1x8x128xf32, #tpu.memory_space<vmem>>, vector<1x8x128xf32>,
    return
  }
  func.func @transform_0(%arg0: i32) -> (i32, i32, i32) {
    %c0_i32 = arith.constant 0 : i32
    %c0_i32_0 = arith.constant 0 : i32
    %c0_i32_1 = arith.constant 0 : i32
    return %arg0, %c0_i32, %c0_i32_0 : i32, i32, i32
  }
  func.func @transform_1(%arg0: i32) -> (i32, i32, i32) {
    %c0_i32 = arith.constant 0 : i32
    %c0_i32_0 = arith.constant 0 : i32
    %c0_i32_1 = arith.constant 0 : i32
    return %arg0, %c0_i32, %c0_i32_0 : i32, i32, i32
  }
  func.func @transform_2(%arg0: i32) -> (i32, i32, i32) {
    %c0_i32 = arith.constant 0 : i32
    %c0_i32_0 = arith.constant 0 : i32
    %c0_i32_1 = arith.constant 0 : i32
    return %arg0, %c0_i32, %c0_i32_0 : i32, i32, i32
  }
  func.func @transform_3(%arg0: i32) -> (i32, i32, i32) {
    %c0_i32 = arith.constant 0 : i32
    %c0_i32_0 = arith.constant 0 : i32
    %c0_i32_1 = arith.constant 0 : i32
    %c0_i32_2 = arith.constant 0 : i32
    return %c0_i32, %c0_i32_0, %c0_i32_1 : i32, i32, i32
  }
  func.func @transform_4(%arg0: i32) -> (i32, i32, i32) {
    %c0_i32 = arith.constant 0 : i32
    %c0_i32_0 = arith.constant 0 : i32
    %c0_i32_1 = arith.constant 0 : i32
    %c0_i32_2 = arith.constant 0 : i32
    return %c0_i32, %c0_i32_0, %c0_i32_1 : i32, i32, i32
  }
  func.func @transform_5(%arg0: i32) -> (i32, i32, i32) {
    %c0_i32 = arith.constant 0 : i32
    %c0_i32_0 = arith.constant 0 : i32
    %c0_i32_1 = arith.constant 0 : i32
    %c0_i32_2 = arith.constant 0 : i32
    return %c0_i32, %c0_i32_0, %c0_i32_1 : i32, i32, i32
  }
  func.func @transform_6(%arg0: i32) -> (i32, i32, i32) {
    %c0_i32 = arith.constant 0 : i32
    %c0_i32_0 = arith.constant 0 : i32
    %c0_i32_1 = arith.constant 0 : i32
    %c0_i32_2 = arith.constant 0 : i32
    return %c0_i32, %c0_i32_0, %c0_i32_1 : i32, i32, i32
  }
  func.func @transform_7(%arg0: i32) -> (i32, i32, i32) {
    %c0_i32 = arith.constant 0 : i32
    %c0_i32_0 = arith.constant 0 : i32
    %c0_i32_1 = arith.constant 0 : i32
    %c0_i32_2 = arith.constant 0 : i32
    return %c0_i32, %c0_i32_0, %c0_i32_1 : i32, i32, i32
  }
  func.func @transform_8(%arg0: i32) -> (i32, i32, i32) {
    %c0_i32 = arith.constant 0 : i32
    %c0_i32_0 = arith.constant 0 : i32
    %c0_i32_1 = arith.constant 0 : i32
    %c0_i32_2 = arith.constant 0 : i32
    return %c0_i32, %c0_i32_0, %c0_i32_1 : i32, i32, i32
  }
  func.func @transform_9(%arg0: i32) -> (i32, i32, i32) {
    %c0_i32 = arith.constant 0 : i32
    %c0_i32_0 = arith.constant 0 : i32
    %c0_i32_1 = arith.constant 0 : i32
    %c0_i32_2 = arith.constant 0 : i32
    return %c0_i32, %c0_i32_0, %c0_i32_1 : i32, i32, i32
  }
  func.func @transform_10(%arg0: i32) -> (i32, i32, i32) {
    %c0_i32 = arith.constant 0 : i32
    %c0_i32_0 = arith.constant 0 : i32
    %c0_i32_1 = arith.constant 0 : i32
    %c0_i32_2 = arith.constant 0 : i32
    return %c0_i32, %c0_i32_0, %c0_i32_1 : i32, i32, i32
  }
  func.func @transform_11(%arg0: i32) -> (i32, i32, i32) {
    %c0_i32 = arith.constant 0 : i32
    %c0_i32_0 = arith.constant 0 : i32
    %c0_i32_1 = arith.constant 0 : i32
    %c0_i32_2 = arith.constant 0 : i32
    return %c0_i32, %c0_i32_0, %c0_i32_1 : i32, i32, i32
  }
  func.func @transform_12(%arg0: i32) -> (i32, i32, i32) {
    %c0_i32 = arith.constant 0 : i32
    %c0_i32_0 = arith.constant 0 : i32
    %c0_i32_1 = arith.constant 0 : i32
    %c0_i32_2 = arith.constant 0 : i32
    return %c0_i32, %c0_i32_0, %c0_i32_1 : i32, i32, i32
  }
  func.func @transform_13(%arg0: i32) -> (i32, i32, i32) {
    %c0_i32 = arith.constant 0 : i32
    %c0_i32_0 = arith.constant 0 : i32
    %c0_i32_1 = arith.constant 0 : i32
    %c0_i32_2 = arith.constant 0 : i32
    return %c0_i32, %c0_i32_0, %c0_i32_1 : i32, i32, i32
  }
  func.func @transform_14(%arg0: i32) -> (i32, i32, i32) {
    %c0_i32 = arith.constant 0 : i32
    %c0_i32_0 = arith.constant 0 : i32
    %c0_i32_1 = arith.constant 0 : i32
    %c0_i32_2 = arith.constant 0 : i32
    return %c0_i32, %c0_i32_0, %c0_i32_1 : i32, i32, i32
  }
  func.func @transform_15(%arg0: i32) -> (i32, i32, i32) {
    %c0_i32 = arith.constant 0 : i32
    %c0_i32_0 = arith.constant 0 : i32
    %c0_i32_1 = arith.constant 0 : i32
    %c0_i32_2 = arith.constant 0 : i32
    return %c0_i32, %c0_i32_0, %c0_i32_1 : i32, i32, i32
  }
  func.func @transform_16(%arg0: i32) -> (i32, i32, i32) {
    %c0_i32 = arith.constant 0 : i32
    %c0_i32_0 = arith.constant 0 : i32
    %c0_i32_1 = arith.constant 0 : i32
    %c0_i32_2 = arith.constant 0 : i32
    return %c0_i32, %c0_i32_0, %c0_i32_1 : i32, i32, i32
  }
  func.func @transform_17(%arg0: i32) -> (i32, i32, i32) {
    %c0_i32 = arith.constant 0 : i32
    %c0_i32_0 = arith.constant 0 : i32
    %c0_i32_1 = arith.constant 0 : i32
    %c0_i32_2 = arith.constant 0 : i32
    return %c0_i32, %c0_i32_0, %c0_i32_1 : i32, i32, i32
  }
  func.func @transform_18(%arg0: i32) -> (i32, i32, i32) {
    %c0_i32 = arith.constant 0 : i32
    %c0_i32_0 = arith.constant 0 : i32
    %c0_i32_1 = arith.constant 0 : i32
    %c0_i32_2 = arith.constant 0 : i32
    return %c0_i32, %c0_i32_0, %c0_i32_1 : i32, i32, i32
  }
  func.func @transform_19(%arg0: i32) -> (i32, i32, i32) {
    %c0_i32 = arith.constant 0 : i32
    %c0_i32_0 = arith.constant 0 : i32
    %c0_i32_1 = arith.constant 0 : i32
    %c0_i32_2 = arith.constant 0 : i32
    return %c0_i32, %c0_i32_0, %c0_i32_1 : i32, i32, i32
  }
  func.func @transform_20(%arg0: i32) -> (i32, i32, i32) {
    %c0_i32 = arith.constant 0 : i32
    %c0_i32_0 = arith.constant 0 : i32
    %c0_i32_1 = arith.constant 0 : i32
    %c0_i32_2 = arith.constant 0 : i32
    return %c0_i32, %c0_i32_0, %c0_i32_1 : i32, i32, i32
  }
  func.func @transform_21(%arg0: i32) -> (i32, i32, i32) {
    %c0_i32 = arith.constant 0 : i32
    %c0_i32_0 = arith.constant 0 : i32
    %c0_i32_1 = arith.constant 0 : i32
    %c0_i32_2 = arith.constant 0 : i32
    return %c0_i32, %c0_i32_0, %c0_i32_1 : i32, i32, i32
  }
  func.func @transform_22(%arg0: i32) -> (i32, i32, i32) {
    %c0_i32 = arith.constant 0 : i32
    %c0_i32_0 = arith.constant 0 : i32
    %c0_i32_1 = arith.constant 0 : i32
    %c0_i32_2 = arith.constant 0 : i32
    return %c0_i32, %c0_i32_0, %c0_i32_1 : i32, i32, i32
  }
  func.func @transform_23(%arg0: i32) -> (i32, i32, i32) {
    %c0_i32 = arith.constant 0 : i32
    %c0_i32_0 = arith.constant 0 : i32
    %c0_i32_1 = arith.constant 0 : i32
    %c0_i32_2 = arith.constant 0 : i32
    return %c0_i32, %c0_i32_0, %c0_i32_1 : i32, i32, i32
  }
  func.func @transform_24(%arg0: i32) -> (i32, i32, i32) {
    %c0_i32 = arith.constant 0 : i32
    %c0_i32_0 = arith.constant 0 : i32
    %c0_i32_1 = arith.constant 0 : i32
    %c0_i32_2 = arith.constant 0 : i32
    return %c0_i32, %c0_i32_0, %c0_i32_1 : i32, i32, i32
  }
  func.func @transform_25(%arg0: i32) -> (i32, i32, i32) {
    %c0_i32 = arith.constant 0 : i32
    %c0_i32_0 = arith.constant 0 : i32
    %c0_i32_1 = arith.constant 0 : i32
    %c0_i32_2 = arith.constant 0 : i32
    return %c0_i32, %c0_i32_0, %c0_i32_1 : i32, i32, i32
  }
  func.func @transform_26(%arg0: i32) -> (i32, i32, i32) {
    %c0_i32 = arith.constant 0 : i32
    %c0_i32_0 = arith.constant 0 : i32
    %c0_i32_1 = arith.constant 0 : i32
    %c0_i32_2 = arith.constant 0 : i32
    return %c0_i32, %c0_i32_0, %c0_i32_1 : i32, i32, i32
  }
  func.func @transform_27(%arg0: i32) -> (i32, i32, i32) {
    %c0_i32 = arith.constant 0 : i32
    %c0_i32_0 = arith.constant 0 : i32
    %c0_i32_1 = arith.constant 0 : i32
    %c0_i32_2 = arith.constant 0 : i32
    return %c0_i32, %c0_i32_0, %c0_i32_1 : i32, i32, i32
  }
  func.func @transform_28(%arg0: i32) -> (i32, i32, i32) {
    %c0_i32 = arith.constant 0 : i32
    %c0_i32_0 = arith.constant 0 : i32
    %c0_i32_1 = arith.constant 0 : i32
    %c0_i32_2 = arith.constant 0 : i32
    return %c0_i32, %c0_i32_0, %c0_i32_1 : i32, i32, i32
  }
  func.func @transform_29(%arg0: i32) -> (i32, i32, i32) {
    %c0_i32 = arith.constant 0 : i32
    %c0_i32_0 = arith.constant 0 : i32
    %c0_i32_1 = arith.constant 0 : i32
    %c0_i32_2 = arith.constant 0 : i32
    return %c0_i32, %c0_i32_0, %c0_i32_1 : i32, i32, i32
  }
  func.func @transform_30(%arg0: i32) -> (i32, i32, i32) {
    %c0_i32 = arith.constant 0 : i32
    %c0_i32_0 = arith.constant 0 : i32
    %c0_i32_1 = arith.constant 0 : i32
    %c0_i32_2 = arith.constant 0 : i32
    return %c0_i32, %c0_i32_0, %c0_i32_1 : i32, i32, i32
  }
  func.func @transform_31(%arg0: i32) -> (i32, i32, i32) {
    %c0_i32 = arith.constant 0 : i32
    %c0_i32_0 = arith.constant 0 : i32
    %c0_i32_1 = arith.constant 0 : i32
    %c0_i32_2 = arith.constant 0 : i32
    return %c0_i32, %c0_i32_0, %c0_i32_1 : i32, i32, i32
  }
  func.func @transform_32(%arg0: i32) -> (i32, i32, i32) {
    %c0_i32 = arith.constant 0 : i32
    %c0_i32_0 = arith.constant 0 : i32
    %c0_i32_1 = arith.constant 0 : i32
    %c0_i32_2 = arith.constant 0 : i32
    return %c0_i32, %c0_i32_0, %c0_i32_1 : i32, i32, i32
  }
  func.func @transform_33(%arg0: i32) -> (i32, i32, i32) {
    %c0_i32 = arith.constant 0 : i32
    %c0_i32_0 = arith.constant 0 : i32
    %c0_i32_1 = arith.constant 0 : i32
    %c0_i32_2 = arith.constant 0 : i32
    return %c0_i32, %c0_i32_0, %c0_i32_1 : i32, i32, i32
  }
  func.func @transform_34(%arg0: i32) -> (i32, i32, i32) {
    %c0_i32 = arith.constant 0 : i32
    %c0_i32_0 = arith.constant 0 : i32
    %c0_i32_1 = arith.constant 0 : i32
    %c0_i32_2 = arith.constant 0 : i32
    return %c0_i32, %c0_i32_0, %c0_i32_1 : i32, i32, i32
  }
  func.func @transform_35(%arg0: i32) -> (i32, i32, i32) {
    %c0_i32 = arith.constant 0 : i32
    %c0_i32_0 = arith.constant 0 : i32
    %c0_i32_1 = arith.constant 0 : i32
    %c0_i32_2 = arith.constant 0 : i32
    return %c0_i32, %c0_i32_0, %c0_i32_1 : i32, i32, i32
  }
  func.func @transform_36(%arg0: i32) -> (i32, i32) {
    %c0_i32 = arith.constant 0 : i32
    %c0_i32_0 = arith.constant 0 : i32
    %c0_i32_1 = arith.constant 0 : i32
    return %c0_i32, %c0_i32_0 : i32, i32
  }
  func.func @transform_37(%arg0: i32) -> (i32, i32) {
    %c0_i32 = arith.constant 0 : i32
    %c0_i32_0 = arith.constant 0 : i32
    %c0_i32_1 = arith.constant 0 : i32
    return %c0_i32, %c0_i32_0 : i32, i32
  }
  func.func @transform_38(%arg0: i32) -> (i32, i32, i32) {
    %c0_i32 = arith.constant 0 : i32
    %c0_i32_0 = arith.constant 0 : i32
    %c0_i32_1 = arith.constant 0 : i32
    return %arg0, %c0_i32, %c0_i32_0 : i32, i32, i32
  }
}

</mosaic_0001>

<bundles_post_ra>
// kernel: transformer_forward.1
= control target key start
LH: loop header
LB: loop body
LE: loop exit
PB: predicated region body
PF: predicated region fallthrough
CT: control target
= control target key end

     0   :  { %s4853_s6 = smov 1   ;;  %s4854_s10 = smov 2   ;;  %s5834_s0 = inlined_call_operand.smem [shape: u32[39], index: -1, kind: input, shape index: {}] }
   0x1   :  { %s4907_s5 = sld [smem:[%s5834_s0]]   ;;  %s4855_s14 = smov 3  }
   0x2   :  { %s4912_s9 = sld [smem:[%s5834_s0 + %s4853_s6]]   ;;  %s4856_s18 = smov 4  }
   0x3   :  { %s4917_s13 = sld [smem:[%s5834_s0 + %s4854_s10]]   ;;  %s4857_s22 = smov 5  }
   0x4   :  { %s4922_s17 = sld [smem:[%s5834_s0 + %s4855_s14]]   ;;  %s4858_s26 = smov 6  }
   0x5   :  { %s4927_s21 = sld [smem:[%s5834_s0 + %s4856_s18]]   ;;  %s4859_s30 = smov 7  }
   0x6   :  { %s4932_s25 = sld [smem:[%s5834_s0 + %s4857_s22]]   ;;  %s4860_s4 = smov 8  }
   0x7   :  { %5895 = sst [smem:[#allocation5_spill]] %s4907_s5  ;;  %s4861_s10 = smov 9  }
   0x8   :  { %5896 = sst [smem:[#allocation6_spill]] %s4912_s9  ;;  %s4862_s15 = smov 10  }
   0x9   :  { %5897 = sst [smem:[#allocation7_spill]] %s4917_s13  ;;  %s4863_s20 = smov 11  }
   0xa   :  { %5898 = sst [smem:[#allocation8_spill]] %s4922_s17  ;;  %s4865_s1 = smov 13  }
   0xb   :  { %5899 = sst [smem:[#allocation9_spill]] %s4927_s21  ;;  %s4866_s7 = smov 14  }
   0xc   :  { %5900 = sst [smem:[#allocation10_spill]] %s4932_s25  ;;  %s4868_s22 = smov 16  }
   0xd   :  { %s4937_s29 = sld [smem:[%s5834_s0 + %s4858_s26]]   ;;  %s4864_s26 = smov 12  }
   0xe   :  { %s4942_s3 = sld [smem:[%s5834_s0 + %s4859_s30]]   ;;  %s4869_s28 = smov 17  }
   0xf   :  { %s4947_s8 = sld [smem:[%s5834_s0 + %s4860_s4]]  }
  0x10   :  { %s4952_s14 = sld [smem:[%s5834_s0 + %s4861_s10]]  }
  0x11   :  { %s4957_s19 = sld [smem:[%s5834_s0 + %s4862_s15]]   ;;  %s4867_s15 = smov 15  }
  0x12   :  { %s4962_s24 = sld [smem:[%s5834_s0 + %s4863_s20]]  }
  0x13   :  { %5901 = sst [smem:[#allocation11_spill]] %s4937_s29 }
  0x14   :  { %5902 = sst [smem:[#allocation12_spill]] %s4942_s3 }
  0x15   :  { %5903 = sst [smem:[#allocation13_spill]] %s4947_s8 }
  0x16   :  { %5904 = sst [smem:[#allocation14_spill]] %s4952_s14 }
  0x17   :  { %5905 = sst [smem:[#allocation15_spill]] %s4957_s19 }
  0x18   :  { %5906 = sst [smem:[#allocation16_spill]] %s4962_s24 }
  0x19   :  { %s4967_s30 = sld [smem:[%s5834_s0 + %s4864_s26]]  }
  0x1a   :  { %s4972_s6 = sld [smem:[%s5834_s0 + %s4865_s1]]  }
  0x1b   :  { %s4977_s12 = sld [smem:[%s5834_s0 + %s4866_s7]]   ;;  %s4870_s7 = smov 18  }
  0x1c   :  { %s4982_s20 = sld [smem:[%s5834_s0 + %s4867_s15]]   ;;  %s4871_s15 = smov 19  }
  0x1d   :  { %s4987_s27 = sld [smem:[%s5834_s0 + %s4868_s22]]   ;;  %s4872_s22 = smov 20  }
  0x1e   :  { %s4992_s4 = sld [smem:[%s5834_s0 + %s4869_s28]]   ;;  %s4873_s28 = smov 21  }
  0x1f   :  { %5907 = sst [smem:[#allocation17_spill]] %s4967_s30 }
  0x20   :  { %5908 = sst [smem:[#allocation18_spill]] %s4972_s6 }
  0x21   :  { %5909 = sst [smem:[#allocation19_spill]] %s4977_s12 }
  0x22   :  { %5910 = sst [smem:[#allocation20_spill]] %s4982_s20 }
  0x23   :  { %5911 = sst [smem:[#allocation21_spill]] %s4987_s27 }
  0x24   :  { %5912 = sst [smem:[#allocation22_spill]] %s4992_s4 }
  0x25   :  { %s4997_s9 = sld [smem:[%s5834_s0 + %s4870_s7]]   ;;  %s4874_s7 = smov 22  }
  0x26   :  { %s5002_s24 = sld [smem:[%s5834_s0 + %s4871_s15]]   ;;  %s4875_s15 = smov 23  }
  0x27   :  { %s5007_s27 = sld [smem:[%s5834_s0 + %s4872_s22]]   ;;  %s4876_s22 = smov 24  }
  0x28   :  { %s5012_s4 = sld [smem:[%s5834_s0 + %s4873_s28]]   ;;  %s4877_s28 = smov 25  }
  0x2b   :  { %5913 = sst [smem:[#allocation23_spill]] %s4997_s9 }
  0x2c   :  { %5914 = sst [smem:[#allocation24_spill]] %s5002_s24 }
  0x2d   :  { %5915 = sst [smem:[#allocation25_spill]] %s5007_s27 }
  0x2e   :  { %5916 = sst [smem:[#allocation26_spill]] %s5012_s4 }
  0x2f   :  { %s5017_s9 = sld [smem:[%s5834_s0 + %s4874_s7]]   ;;  %s4878_s7 = smov 26  }
  0x30   :  { %s5022_s24 = sld [smem:[%s5834_s0 + %s4875_s15]]   ;;  %s4879_s15 = smov 27  }
  0x31   :  { %s5027_s27 = sld [smem:[%s5834_s0 + %s4876_s22]]   ;;  %s4880_s22 = smov 28  }
  0x32   :  { %s5032_s4 = sld [smem:[%s5834_s0 + %s4877_s28]]   ;;  %s4881_s28 = smov 29  }
  0x35   :  { %5917 = sst [smem:[#allocation27_spill]] %s5017_s9 }
  0x36   :  { %5918 = sst [smem:[#allocation28_spill]] %s5022_s24 }
  0x37   :  { %5919 = sst [smem:[#allocation29_spill]] %s5027_s27 }
  0x38   :  { %5920 = sst [smem:[#allocation30_spill]] %s5032_s4 }
  0x39   :  { %s5037_s9 = sld [smem:[%s5834_s0 + %s4878_s7]]   ;;  %s4882_s7 = smov 30  }
  0x3a   :  { %s5042_s24 = sld [smem:[%s5834_s0 + %s4879_s15]]   ;;  %s4883_s15 = smov 31  }
  0x3b   :  { %s5047_s27 = sld [smem:[%s5834_s0 + %s4880_s22]]   ;;  %s4884_s22 = smov 32  }
  0x3c   :  { %s5052_s4 = sld [smem:[%s5834_s0 + %s4881_s28]]   ;;  %s4885_s28 = smov 33  }
  0x3f   :  { %5921 = sst [smem:[#allocation31_spill]] %s5037_s9 }
  0x40   :  { %5922 = sst [smem:[#allocation32_spill]] %s5042_s24 }
  0x41   :  { %5923 = sst [smem:[#allocation33_spill]] %s5047_s27 }
  0x42   :  { %5924 = sst [smem:[#allocation34_spill]] %s5052_s4 }
  0x43   :  { %s5057_s9 = sld [smem:[%s5834_s0 + %s4882_s7]]   ;;  %s4886_s7 = smov 34  }
  0x44   :  { %s5062_s24 = sld [smem:[%s5834_s0 + %s4883_s15]]   ;;  %s4887_s15 = smov 35  }
  0x45   :  { %s5067_s27 = sld [smem:[%s5834_s0 + %s4884_s22]]   ;;  %s4888_s22 = smov 36  }
  0x46   :  { %s5072_s4 = sld [smem:[%s5834_s0 + %s4885_s28]]   ;;  %s4889_s28 = smov 37  }
  0x49   :  { %5925 = sst [smem:[#allocation35_spill]] %s5057_s9 }
  0x4a   :  { %5926 = sst [smem:[#allocation36_spill]] %s5062_s24 }
  0x4b   :  { %5927 = sst [smem:[#allocation37_spill]] %s5067_s27 }
  0x4c   :  { %5928 = sst [smem:[#allocation38_spill]] %s5072_s4 }
  0x4d   :  { %s5077_s9 = sld [smem:[%s5834_s0 + %s4886_s7]]   ;;  %s4890_s7 = smov 38  }
  0x4e   :  { %s5082_s24 = sld [smem:[%s5834_s0 + %s4887_s15]]  }
  0x4f   :  { %s5087_s27 = sld [smem:[%s5834_s0 + %s4888_s22]]  }
  0x50   :  { %s5092_s4 = sld [smem:[%s5834_s0 + %s4889_s28]]  }
  0x53   :  { %5929 = sst [smem:[#allocation39_spill]] %s5077_s9 }
  0x54   :  { %s5097_s9 = sld [smem:[%s5834_s0 + %s4890_s7]]  }
  0x56   :  { %5930 = sst [smem:[#allocation40_spill]] %s5092_s4 }
  0x5a   :  { %5931 = sst [smem:[#allocation41_spill]] %s5097_s9 }
  0x5b   :  { %82 = vsyncpa [#allocation3], 0 }
  0x5c   :  { %84 = vsyncpa [#allocation3 + $0x1], 0  ;;  %s5099_s15 = smov 0   ;;  %s5101_s16 = smov 0  }
  0x5d   :  { %s5103_s18 = smov 0   ;;  %s5105_s22 = smov 0  }
  0x5e LB: > { %s5932_s30 = sld [smem:[#allocation17_spill]]  ;;  %s5120_s0 = sadd.s32 4294967295, %s4851_s22   ;;  %s4851_s22 = sphi %s5105_s22, %s5996_s22   ;;  %s4847_s18 = sphi %s5103_s18, %s5998_s18   ;;  %s4843_s16 = sphi %s5101_s16, %s6000_s16   ;;  %s4839_s15 = sphi %s5099_s15, %s5999_s15  }
  0x5f   : > { %s5933_s29 = sld [smem:[#allocation11_spill]]  ;;  %s4334_s23 = sadd.s32 4294967294, %s4851_s22  }
  0x60   : > { %s5934_s20 = sld [smem:[#allocation20_spill]]  ;;  %s5124_s26 = sadd.s32 1, %s4851_s22  }
  0x61   : > { %s5935_s19 = sld [smem:[#allocation15_spill]]  ;;  %s910_s28 = sadd.s32 1, %s4847_s18 }
  0x62   : > { %s5936_s14 = sld [smem:[#allocation14_spill]]  ;;  %s907_s1 = ssub.s32 %s4851_s22, %s5124_s26 }
  0x63   : > { %s5937_s12 = sld [smem:[#allocation19_spill]]  ;;  %p920_p0 = scmp.ne.s32.totalorder %s4847_s18, %s4843_s16 }
  0x64   : > { %s5938_s8 = sld [smem:[#allocation13_spill]]  ;;  %p908_p1 = scmp.eq.s32.totalorder %s907_s1, 0 }
  0x65   : > { %s5939_s6 = sld [smem:[#allocation18_spill]]  ;;  %p921_p2 = scmp.eq.s32.totalorder %s5120_s0, 1 }
  0x66   : > { %s5940_s3 = sld [smem:[#allocation12_spill]]  ;;  %p926_p3 = scmp.ne.s32.totalorder %s4843_s16, %s4839_s15 }
  0x67   : > { %s5941_s25 = sld [smem:[#allocation10_spill]]  ;;  %p927_p4 = scmp.eq.s32.totalorder %s4334_s23, 1 }
  0x68   : > { %s5942_s21 = sld [smem:[#allocation9_spill]]  ;;  %p5137_p5 = por %p921_p2, %p920_p0 }
  0x69   : > { %s5943_s17 = sld [smem:[#allocation8_spill]]  ;;  %p5141_p6 = por %p927_p4, %p926_p3 }
  0x6a   : > { %5944 = sst [smem:[#allocation42_spill]] %s4839_s15  ;;  %p4337_p7 = scmp.ge.s32.totalorder %s4851_s22, 1 }
  0x6b   : > { %5945 = sst [smem:[#allocation43_spill]] %s4847_s18  ;;  %p1070_p8 = scmp.lt.s32.totalorder %s4851_s22, 3 }
  0x6c   : > { %5946 = sst [smem:[#allocation44_spill]] %s4851_s22 }
  0x6d   : > { %5947 = sst [smem:[#allocation45_spill]] %s5124_s26  ;;  %p1071_p9 = pnand %p4337_p7, %p1070_p8 }
  0x6e   : > { %s5135_s2 = scalar_select %p908_p1, %s4847_s18, %s910_s28  }
  0x6f   : > { %s5949_s7 = scalar_select %p5137_p5, 1, 0 }
  0x70   : > { %5948 = sst [smem:[#allocation46_spill]] %s5135_s2  ;;  %1074 = sbr.rel (%p1071_p9) target bundleno = 10845 (0x2a5d), region = 172 }
  0x71   : > { %5950 = sst [smem:[#allocation47_spill]] %s5949_s7  ;;  %p1170_p10 = scmp.lt.s32.totalorder (!%p1071_p9), %s5120_s0, 1 }
  0x72   : > { %s5951_s10 = scalar_select %p5141_p6, 1, 0 }
  0x73   : > { %s5953_s5 = sld [smem:[#allocation5_spill]] (!%p1071_p9)  ;;  %s5866_s1 = smov (!%p1071_p9), 120  }
  0x74   : > { %5952 = sst [smem:[#allocation48_spill]] %s5951_s10 }
  0x75   : > { %v1196_v0 = vld [vmem:[%s5942_s21 + $0x18] sm:$0xff]  ;;  %v1195_v1 = vld [vmem:[%s5942_s21 + $0x10] sm:$0xff]  ;;  %v1194_v4 = vld [vmem:[%s5942_s21 + $0x8] sm:$0xff]  ;;  %s5155_s11 = scalar_select %p1170_p10, %s5120_s0, 1  ;;  %vm1206_vm0 = vcmask 261120   ;;  %vm1270_vm1 = vcmask 64512  }
  0x76   : > { %v1192_v2 = vld [vmem:[%s5943_s17 + $0x18] sm:$0xff]  ;;  %1242 = vmatpush.msra.mxu1 %v1196_v0  ;;  %v1191_v3 = vld [vmem:[%s5943_s17 + $0x10] sm:$0xff]  ;;  %v1190_v5 = vld [vmem:[%s5943_s17 + $0x8] sm:$0xff]  ;;  %s5954_s13 = sld [smem:[#allocation7_spill]]  ;;  %v4894_v20 = vmov 0   ;;  %vm1551_vm4 = vcmask 130048  }
  0x77   : > { %1222 = vmatpush.msra.mxu0 %v1192_v2  ;;  %v1200_v6 = vld [vmem:[%s5941_s25 + $0x18] sm:$0xff]  ;;  %v1193_v7 = vld [vmem:[%s5942_s21] sm:$0xff]  ;;  %v1199_v8 = vld [vmem:[%s5941_s25 + $0x10] sm:$0xff]  ;;  %s5855_s23 = sshll.u32 %s5155_s11, 3  ;;  %vm1553_vm5 = vcmask 195584   ;;  %s5965_s2 = sld [smem:[#allocation6_spill]] }
  0x78   : > { %1243 = vmatpush.msra.mxu1 %v1195_v1  ;;  %v1189_v9 = vld [vmem:[%s5943_s17] sm:$0xff]  ;;  %1262 = vmatpush.msra.mxu2 %v1200_v6  ;;  %v1198_v11 = vld [vmem:[%s5941_s25 + $0x8] sm:$0xff]  ;;  %s5966_s18 = sshll.u32 %s5155_s11, 3  ;;  %s5983_s10 = sld [smem:[#allocation34_spill]] }
  0x79   : > { %1223 = vmatpush.msra.mxu0 %v1191_v3  ;;  %s1173_s28 = scalar_lea.vmem %s5953_s5, %s5855_s23  ;;  %v1197_v12 = vld [vmem:[%s5941_s25] sm:$0xff]  ;;  %s5856_s23 = smov 104  }
  0x7a   : > { %1244 = vmatpush.msra.mxu1 %v1194_v4  ;;  %v5165_v10 = vld [vmem:[%s1173_s28] sm:$0xff]  ;;  %1263 = vmatpush.msra.mxu2 %v1199_v8  ;;  %s5858_s28 = smov 112   ;;  %s5984_s15 = sld [smem:[#allocation38_spill]] }
  0x7b   : > { %1224 = vmatpush.msra.mxu0 %v1190_v5  ;;  %s5988_s22 = sld [smem:[#allocation36_spill]] }
  0x7c   : > { %1245 = vmatpush.msra.mxu1 %v1193_v7  ;;  %1264 = vmatpush.msra.mxu2 %v1198_v11  ;;  %s1180_s5 = scalar_lea.vmem %s5954_s13, %s5155_s11  ;;  %s5961_s13 = sld [smem:[#allocation22_spill]] }
  0x7d   : > { %1225 = vmatpush.msra.mxu0 %v1189_v9  ;;  %4342 = vmatmul.msk.f32.vlgmr.msra.gmra.mxu1 %vm1206_vm0, %v5165_v10  ;;  %v1181_v18 = vld [vmem:[%s1180_s5] sm:$0x1]  ;;  %s5864_s5 = smov 8   ;;  %s1177_s26 = scalar_lea.vmem %s5965_s2, %s5966_s18 }
  0x7e   : > { %4341 = vmatmul.msk.f32.vlgmr.msra.gmra.mxu0 %vm1206_vm0, %v5165_v10  ;;  %1265 = vmatpush.msra.mxu2 %v1197_v12  ;;  %vm1182_vm2 = vcmp.ne.f32.partialorder %v1181_v18, 0.0  ;;  %s5967_s18 = smov 120   ;;  %s5971_s2 = sld [smem:[#allocation24_spill]] }
  0x7f   : > { %4343 = vmatmul.msk.f32.vlgmr.msra.gmra.mxu2 %vm1206_vm0, %v5165_v10  ;;  %v1297_v21 = vsel %vm1182_vm2, 1, %v4894_v20  ;;  %v1203_v20 = vld [vmem:[%s5933_s29 + $0x10] sm:$0xff]  ;;  %s5972_s11 = sld [smem:[#allocation29_spill]] }
  0x80   : > { %v1298_v22 = vperm.slane %v1297_v21, 0  ;;  %v1202_v21 = vld [vmem:[%s5933_s29 + $0x8] sm:$0xff]  ;;  %s5985_s7 = smov %s5984_s15 }
  0x81   : > { %s5989_s9 = smov %s5988_s22 }
  0x82   : > { %vm5190_vm3 = vcmp.eq.s32.totalorder %v1298_v22, 1  ;;  %v1201_v22 = vld [vmem:[%s5933_s29] sm:$0xff] }
  0xfa   : > { %v1247_v13 = vpop.f32.mrf.mxu1 }
  0xfb   : > { %1338 = vrot.lane.b32.xlu2 %v1247_v13, %s5866_s1  ;;  %1406 = vrot.lane.b32.xlu1 %v1247_v13, %s5858_s28  ;;  %v1227_v14 = vpop.f32.mrf.mxu0 }
  0xfc   : > { %4344 = vmatpush.xpose.msk.msrb.mxu1 %vm1270_vm1, %v1247_v13 }
  0xff   : > { %4345 = vmatmul.msk.f32.vlgmr.msrb.gmra.mxu1 %vm1270_vm1, %v1227_v14 }
 0x102   : > { %v5182_v15 = vpop.f32.mrf.mxu2 }
 0x103   : > { %1336 = vrot.lane.b32.xlu2 %v1227_v14, %s5866_s1  ;;  %1404 = vrot.lane.b32.xlu1 %v1227_v14, %s5858_s28 }
 0x104   : > { %1331 = vmatpush.msrb.mxu2 %v5182_v15 }
 0x10b   : > { %1471 = vrot.lane.b32.xlu1 %v1227_v14, %s5856_s23 }
 0x155   : > { %v1339_v16 = vpop.permute.xlu2 %1338 }
 0x156   : > { %4347 = vmatpush.xpose.msk.msrb.mxu0 %vm1270_vm1, %v1339_v16 }
 0x15d   : > { %v1337_v17 = vpop.permute.xlu2 %1336 }
 0x15e   : > { %4348 = vmatmul.msk.f32.vlgmr.msrb.gmra.mxu0 %vm1270_vm1, %v1337_v17 }
 0x16d   : > { %v1407_v19 = vpop.permute.xlu1 %1406 }
 0x16e   : > { %4350 = vmatpush.xpose.msk.msra.mxu2 %vm1270_vm1, %v1407_v19  ;;  %v1204_v19 = vld [vmem:[%s5933_s29 + $0x18] sm:$0xff] }
 0x175   : > { %v1405_v45 = vpop.permute.xlu1 %1404 }
 0x17c   : > { %v1294_v24 = vpop.f32.mrf.mxu1 }
 0x17d   : > { %v1300_v25 = vsel %vm5190_vm3, %v1294_v24, -1e+20  ;;  %v1472_v47 = vpop.permute.xlu1 %1471 }
 0x17e   : > { %v1301_v26 = vmul.f32 0.17677669, %v1300_v25 }
 0x180   : > { %v1302_v27 = vsel %vm1270_vm1, %v1301_v26, -inf }
 0x181   : > { %1303 = vmax.xlane.f32.xlu0 %v1302_v27 }
 0x1db   : > { %v1361_v28 = vpop.f32.mrf.mxu0 }
 0x1dc   : > { %v1364_v29 = vsel %vm5190_vm3, %v1361_v28, -1e+20 }
 0x1dd   : > { %v1365_v30 = vmul.f32 0.17677669, %v1364_v29 }
 0x1df   : > { %v1366_v31 = vsel %vm1270_vm1, %v1365_v30, -inf }
 0x1e0   : > { %1367 = vmax.xlane.f32.xlu2 %v1366_v31 }
 0x1f4   : > { %v1304_v32 = vpop.xlane.xlu0 %1303 }
 0x1f5   : > { %v1305_v33 = vsub.f32 %v1301_v26, %v1304_v32 }
 0x1f7   : > { %v1306_v34 = vmul.f32 1.442695, %v1305_v33 }
 0x1f9   : > { %4671 = vpow2.f32 %v1306_v34 }
 0x1ff   : > { %v4672_v35 = vpop.eup %4671 }
 0x200   : > { %v1308_v36 = vsel %vm1270_vm1, %v4672_v35, 0.0 }
 0x201   : > { %1309 = vadd.xlane.f32.xlu0 %v1308_v36 }
 0x215   : > { %1473 = vrot.lane.b32.xlu0 %v1247_v13, %s5856_s23 }
 0x253   : > { %v1368_v37 = vpop.xlane.xlu2 %1367 }
 0x254   : > { %v1369_v38 = vsub.f32 %v1365_v30, %v1368_v37  ;;  %v4636_v30 = vld [vmem:[%s5940_s3] ss:$0 sm:$0xff] }
 0x256   : > { %v1370_v39 = vmul.f32 1.442695, %v1369_v38 }
 0x258   : > { %4673 = vpow2.f32 %v1370_v39 }
 0x25e   : > { %v4674_v40 = vpop.eup %4673 }
 0x25f   : > { %v1372_v41 = vsel %vm1270_vm1, %v4674_v40, 0.0 }
 0x260   : > { %1373 = vadd.xlane.f32.xlu2 %v1372_v41 }
 0x274   : > { %v1310_v42 = vpop.xlane.xlu0 %1309 }
 0x275   : > { %4675 = vrcp.f32 %v1310_v42 }
 0x27b   : > { %v4676_v43 = vpop.eup %4675 }
 0x27c   : > { %v1312_v44 = vmul.f32 %v4676_v43, %v4672_v35  ;;  %v4898_v35 = vmov 32.0  }
 0x27e   : > { %4346 = vmatmul.msk.f32.vlgmr.msrb.gmra.mxu2 %vm1270_vm1, %v1312_v44 }
 0x27f   : > { %1573 = vmatpush.msrb.mxu2 %v1204_v19 }
 0x281   : > { %1574 = vmatpush.msrb.mxu2 %v1203_v20 }
 0x283   : > { %1575 = vmatpush.msrb.mxu2 %v1202_v21 }
 0x285   : > { %1576 = vmatpush.msrb.mxu2 %v1201_v22  ;;  %v4640_v22 = vld [vmem:[%s5934_s20] ss:$0 sm:$0xff] }
 0x286   : > { %4351 = vmatmul.msk.f32.vlgmr.msra.gmra.mxu2 %vm1270_vm1, %v1405_v45 }
 0x287   : > { %v1474_v46 = vpop.permute.xlu0 %1473 }
 0x288   : > { %4353 = vmatpush.xpose.msk.msra.mxu0 %vm1270_vm1, %v1474_v46  ;;  %v1624_v46 = vld [vmem:[%s5932_s30 + $0x18] sm:$0xff] }
 0x28b   : > { %4354 = vmatmul.msk.f32.vlgmr.msra.gmra.mxu0 %vm1270_vm1, %v1472_v47  ;;  %v1623_v47 = vld [vmem:[%s5932_s30 + $0x10] sm:$0xff] }
 0x2d3   : > { %v1374_v3 = vpop.xlane.xlu2 %1373 }
 0x301   : > { %v5207_v48 = vpop.f32.mrf.mxu2 }
 0x308   : > { %v1496_v49 = vpop.f32.mrf.mxu0 }
 0x309   : > { %v1499_v50 = vsel %vm5190_vm3, %v1496_v49, -1e+20  ;;  %v1429_v51 = vpop.f32.mrf.mxu2  ;;  %v1621_v49 = vld [vmem:[%s5932_s30] sm:$0xff] }
 0x30a   : > { %v1500_v52 = vmul.f32 0.17677669, %v1499_v50  ;;  %v1432_v53 = vsel %vm5190_vm3, %v1429_v51, -1e+20  ;;  %v1641_v50 = vld [vmem:[%s5937_s12 + $0x78] sm:$0xff]  ;;  %v1640_v51 = vld [vmem:[%s5937_s12 + $0x70] sm:$0xff] }
 0x30b   : > { %v1433_v54 = vmul.f32 0.17677669, %v1432_v53  ;;  %1673 = vmatpush.msrb.mxu0 %v1641_v50 }
 0x30c   : > { %v1501_v55 = vsel %vm1270_vm1, %v1500_v52, -inf }
 0x30d   : > { %1502 = vmax.xlane.f32.xlu0 %v1501_v55  ;;  %v1434_v56 = vsel %vm1270_vm1, %v1433_v54, -inf  ;;  %1674 = vmatpush.msrb.mxu0 %v1640_v51  ;;  %v1638_v55 = vld [vmem:[%s5937_s12 + $0x60] sm:$0xff] }
 0x30e   : > { %1435 = vmax.xlane.f32.xlu1 %v1434_v56 }
 0x321   : > { %1512 = vrot.lane.b32.xlu0 %v5182_v15, %s5856_s23  ;;  %s5862_s23 = smov 24  }
 0x380   : > { %v1503_v57 = vpop.xlane.xlu0 %1502 }
 0x381   : > { %v1504_v58 = vsub.f32 %v1500_v52, %v1503_v57  ;;  %v1436_v59 = vpop.xlane.xlu1 %1435  ;;  %v1639_v52 = vld [vmem:[%s5937_s12 + $0x68] sm:$0xff]  ;;  %v1637_v57 = vld [vmem:[%s5937_s12 + $0x58] sm:$0xff] }
 0x382   : > { %v1437_v60 = vsub.f32 %v1433_v54, %v1436_v59  ;;  %1675 = vmatpush.msrb.mxu0 %v1639_v52  ;;  %v1635_v59 = vld [vmem:[%s5937_s12 + $0x48] sm:$0xff] }
 0x383   : > { %v1505_v61 = vmul.f32 1.442695, %v1504_v58  ;;  %v1636_v58 = vld [vmem:[%s5937_s12 + $0x50] sm:$0xff] }
 0x384   : > { %v1438_v62 = vmul.f32 1.442695, %v1437_v60  ;;  %1676 = vmatpush.msrb.mxu0 %v1638_v55  ;;  %v1634_v60 = vld [vmem:[%s5937_s12 + $0x40] sm:$0xff] }
 0x385   : > { %4677 = vpow2.f32 %v1505_v61 }
 0x386   : > { %4679 = vpow2.f32 %v1438_v62  ;;  %1677 = vmatpush.msrb.mxu0 %v1637_v57  ;;  %v1633_v62 = vld [vmem:[%s5937_s12 + $0x38] sm:$0xff] }
 0x387   : > { %4681 = vrcp.f32 %v1374_v3 }
 0x388   : > { %1678 = vmatpush.msrb.mxu0 %v1636_v58 }
 0x38a   : > { %1679 = vmatpush.msrb.mxu0 %v1635_v59 }
 0x38b   : > { %v4678_v63 = vpop.eup %4677 }
 0x38c   : > { %v4680_v0 = vpop.eup %4679  ;;  %v1507_v1 = vsel %vm1270_vm1, %v4678_v63, 0.0  ;;  %1680 = vmatpush.msrb.mxu0 %v1634_v60 }
 0x38d   : > { %1508 = vadd.xlane.f32.xlu1 %v1507_v1  ;;  %v1440_v2 = vsel %vm1270_vm1, %v4680_v0, 0.0  ;;  %v4682_v6 = vpop.eup %4681 }
 0x38e   : > { %1441 = vadd.xlane.f32.xlu2 %v1440_v2  ;;  %v1376_v7 = vmul.f32 %v4682_v6, %v4674_v40  ;;  %1681 = vmatpush.msrb.mxu0 %v1633_v62  ;;  %v1631_v2 = vld [vmem:[%s5937_s12 + $0x28] sm:$0xff]  ;;  %v1629_v6 = vld [vmem:[%s5937_s12 + $0x18] sm:$0xff] }
 0x393   : > { %v1513_v9 = vpop.permute.xlu0 %1512 }
 0x3a6   : > { %1378 = vrot.lane.b32.xlu2 %v5182_v15, %s5866_s1  ;;  %1445 = vrot.lane.b32.xlu1 %v5182_v15, %s5858_s28  ;;  %s5860_s28 = smov 16  }
 0x400   : > { %v1509_v5 = vpop.xlane.xlu1 %1508 }
 0x401   : > { %v1442_v4 = vpop.xlane.xlu2 %1441  ;;  %4683 = vrcp.f32 %v1509_v5 }
 0x402   : > { %4685 = vrcp.f32 %v1442_v4  ;;  %v1630_v4 = vld [vmem:[%s5937_s12 + $0x20] sm:$0xff] }
 0x403   : > { %4687 = vrcp.f32 %v4898_v35  ;;  %v4369_v35 = vld [vmem:[%s5941_s25 + $0x38] sm:$0xff] }
 0x407   : > { %v4684_v11 = vpop.eup %4683 }
 0x408   : > { %v1511_v12 = vmul.f32 %v4684_v11, %v4678_v63  ;;  %v4686_v13 = vpop.eup %4685 }
 0x409   : > { %v1379_v8 = vpop.permute.xlu2 %1378  ;;  %v1444_v15 = vmul.f32 %v4686_v13, %v4680_v0  ;;  %v4688_v36 = vpop.eup %4687  ;;  %v1632_v0 = vld [vmem:[%s5937_s12 + $0x30] sm:$0xff] }
 0x40a   : > { %1399 = vmatpush.msra.mxu1 %v1379_v8  ;;  %v1588_v37 = vmul.f32 32.0, %v4688_v36  ;;  %vm1592_vm6 = vweird.f32 %v4688_v36  ;;  %1682 = vmatpush.msrb.mxu0 %v1632_v0  ;;  %v4637_v8 = vld [vmem:[%s5938_s8] ss:$0 sm:$0xff] }
 0x40b   : > { %4349 = vmatmul.msk.f32.vlgmr.msra.gmra.mxu1 %vm1270_vm1, %v1376_v7 }
 0x40c   : > { %1533 = vmatpush.msrb.mxu1 %v1513_v9  ;;  %v1589_v38 = vsub.f32 1.0, %v1588_v37  ;;  %1683 = vmatpush.msrb.mxu0 %v1631_v2  ;;  %v4364_v37 = vld [vmem:[%s5942_s21 + $0x30] sm:$0xff] }
 0x40e   : > { %v1590_v39 = vmul.f32 %v4688_v36, %v1589_v38  ;;  %1684 = vmatpush.msrb.mxu0 %v1630_v4  ;;  %v4368_v38 = vld [vmem:[%s5941_s25 + $0x30] sm:$0xff] }
 0x410   : > { %v1591_v40 = vadd.f32 %v4688_v36, %v1590_v39  ;;  %1685 = vmatpush.msrb.mxu0 %v1629_v6  ;;  %v4359_v39 = vld [vmem:[%s5943_s17 + $0x28] sm:$0xff] }
 0x412   : > { %v5241_v41 = vsel %vm1592_vm6, %v4688_v36, %v1591_v40  ;;  %v4360_v36 = vld [vmem:[%s5943_s17 + $0x30] sm:$0xff]  ;;  %v4363_v40 = vld [vmem:[%s5942_s21 + $0x28] sm:$0xff] }
 0x413   : > { %4355 = vmatmul.msk.f32.vlgmr.msrb.gmra.mxu1 %vm1270_vm1, %v1511_v12  ;;  %v4638_v12 = vld [vmem:[%s5936_s14] ss:$0 sm:$0xff] }
 0x418   : > { %v1446_v14 = vpop.permute.xlu1 %1445 }
 0x419   : > { %1466 = vmatpush.msra.mxu3 %v1446_v14 }
 0x41a   : > { %4352 = vmatmul.msk.f32.vlgmr.msra.gmra.mxu3 %vm1270_vm1, %v1444_v15  ;;  %v1628_v15 = vld [vmem:[%s5937_s12 + $0x10] sm:$0xff] }
 0x41b   : > { %1661 = vmatpush.msrb.mxu3 %v1624_v46  ;;  %1686 = vmatpush.msrb.mxu0 %v1628_v15 }
 0x41d   : > { %1662 = vmatpush.msrb.mxu3 %v1623_v47 }
 0x488   : > { %v1401_v16 = vpop.f32.mrf.mxu1 }
 0x489   : > { %1539 = vrot.lane.b32.xlu2 %v1401_v16, %s5864_s5  ;;  %v1627_v16 = vld [vmem:[%s5937_s12 + $0x8] sm:$0xff]  ;;  %s5959_s5 = smov 104  }
 0x48a   : > { %1687 = vmatpush.msrb.mxu0 %v1627_v16 }
 0x490   : > { %v1535_v17 = vpop.f32.mrf.mxu1 }
 0x491   : > { %1547 = vrot.lane.b32.xlu1 %v1535_v17, %s5862_s23  ;;  %v1626_v17 = vld [vmem:[%s5937_s12] sm:$0xff]  ;;  %s5958_s23 = smov 112  }
 0x492   : > { %1688 = vmatpush.msrb.mxu0 %v1626_v17 }
 0x49d   : > { %v1468_v18 = vpop.f32.mrf.mxu3 }
 0x49e   : > { %1543 = vrot.lane.b32.xlu0 %v1468_v18, %s5860_s28  ;;  %v4639_v18 = vld [vmem:[%s5939_s6] ss:$0 sm:$0xff]  ;;  %s5957_s28 = sld [smem:[#allocation16_spill]] }
 0x4a4   : > { %v4642_v57 = vld [vmem:[%s5957_s28] ss:$0 sm:$0xff] }
 0x4e3   : > { %v1540_v24 = vpop.permute.xlu2 %1539 }
 0x4e4   : > { %v1550_v25 = vsel %vm1270_vm1, %v5207_v48, %v1540_v24  ;;  %v1622_v48 = vld [vmem:[%s5932_s30 + $0x8] sm:$0xff] }
 0x4e5   : > { %1663 = vmatpush.msrb.mxu3 %v1622_v48 }
 0x4e7   : > { %1664 = vmatpush.msrb.mxu3 %v1621_v49 }
 0x4e9   : > { %1803 = vmatpush.msra.mxu3 %v4369_v35 }
 0x4eb   : > { %1804 = vmatpush.msra.mxu3 %v4368_v38 }
 0x503   : > { %v1548_v27 = vpop.permute.xlu1 %1547 }
 0x510   : > { %v1544_v26 = vpop.permute.xlu0 %1543 }
 0x511   : > { %v1552_v28 = vsel %vm1551_vm4, %v1550_v25, %v1544_v26 }
 0x512   : > { %v1554_v29 = vsel %vm1553_vm5, %v1552_v28, %v1548_v27 }
 0x513   : > { %4356 = vmatmul.msk.f32.vlgmr.msrb.gmra.mxu2 %vm1206_vm0, %v1554_v29 }
 0x596   : > { %v1578_v31 = vpop.f32.mrf.mxu2 }
 0x597   : > { %v1579_v32 = vadd.f32 %v4636_v30, %v1578_v31 }
 0x599   : > { %v1583_v33 = vadd.f32 %v1579_v32, %v5165_v10 }
 0x59b   : > { %v1584_v34 = vsel %vm1206_vm0, %v1583_v33, 0.0 }
 0x59c   : > { %1585 = vadd.xlane.f32.xlu2 %v1584_v34  ;;  %v4365_v34 = vld [vmem:[%s5942_s21 + $0x38] sm:$0xff] }
 0x59d   : > { %1783 = vmatpush.msra.mxu2 %v4365_v34 }
 0x59f   : > { %1784 = vmatpush.msra.mxu2 %v4364_v37 }
 0x5a1   : > { %1785 = vmatpush.msra.mxu2 %v4363_v40 }
 0x60f   : > { %v1586_v10 = vpop.xlane.xlu2 %1585 }
 0x610   : > { %v1594_v42 = vmul.f32 %v5241_v41, %v1586_v10  ;;  %v4367_v10 = vld [vmem:[%s5941_s25 + $0x28] sm:$0xff] }
 0x611   : > { %1805 = vmatpush.msra.mxu3 %v4367_v10 }
 0x612   : > { %v1595_v43 = vsub.f32 %v1583_v33, %v1594_v42  ;;  %v4361_v33 = vld [vmem:[%s5943_s17 + $0x38] sm:$0xff]  ;;  %v4358_v42 = vld [vmem:[%s5943_s17 + $0x20] sm:$0xff]  ;;  %s5962_s17 = sld [smem:[#allocation21_spill]] }
 0x613   : > { %1763 = vmatpush.msra.mxu1 %v4361_v33 }
 0x614   : > { %v1596_v44 = vmul.f32 %v1595_v43, %v1595_v43 }
 0x615   : > { %1764 = vmatpush.msra.mxu1 %v4360_v36 }
 0x616   : > { %v1597_v45 = vsel %vm1206_vm0, %v1596_v44, 0.0  ;;  %v4366_v44 = vld [vmem:[%s5941_s25 + $0x20] sm:$0xff]  ;;  %s5964_s25 = smov 16  }
 0x617   : > { %1598 = vadd.xlane.f32.xlu0 %v1597_v45  ;;  %1765 = vmatpush.msra.mxu1 %v4359_v39 }
 0x618   : > { %1806 = vmatpush.msra.mxu3 %v4366_v44 }
 0x619   : > { %1766 = vmatpush.msra.mxu1 %v4358_v42 }
 0x68a   : > { %v1599_v53 = vpop.xlane.xlu0 %1598 }
 0x68b   : > { %v1600_v54 = vmul.f32 %v1599_v53, %v5241_v41 }
 0x68d   : > { %v1601_v56 = vadd.f32 1e-05, %v1600_v54  ;;  %v4641_v54 = vld [vmem:[%s5935_s19] ss:$0 sm:$0xff] }
 0x68f   : > { %4689 = vrsqrt.f32 %v1601_v56  ;;  %vm1608_vm8 = vweird.f32 %v1601_v56 }
 0x695   : > { %v4690_v61 = vpop.eup %4689 }
 0x696   : > { %v1603_v63 = vmul.f32 %v4690_v61, %v1601_v56  ;;  %vm1609_vm7 = vweird.f32 %v4690_v61 }
 0x697   : > { %vm1610_vm9 = vmor %vm1608_vm8, %vm1609_vm7 }
 0x698   : > { %v1604_v1 = vmul.f32 %v4690_v61, %v1603_v63 }
 0x69a   : > { %v1605_v3 = vmul.f32 0.5, %v1604_v1 }
 0x69c   : > { %v1606_v5 = vsub.f32 1.5, %v1605_v3 }
 0x69e   : > { %v1607_v7 = vmul.f32 %v4690_v61, %v1606_v5 }
 0x6a0   : > { %v1611_v9 = vsel %vm1610_vm9, %v4690_v61, %v1607_v7 }
 0x6a1   : > { %v1612_v11 = vmul.f32 %v1611_v9, %v1595_v43  ;;  %v4362_v43 = vld [vmem:[%s5942_s21 + $0x20] sm:$0xff]  ;;  %s5963_s21 = smov 24  }
 0x6a2   : > { %1786 = vmatpush.msra.mxu2 %v4362_v43 }
 0x6a3   : > { %v1616_v13 = vmul.f32 %v4637_v8, %v1612_v11 }
 0x6a5   : > { %v1620_v14 = vadd.f32 %v4638_v12, %v1616_v13 }
 0x6a7   : > { %4357 = vmatmul.msk.f32.vlgmr.msrb.gmra.mxu3 %vm1206_vm0, %v1620_v14 }
 0x72a   : > { %v1666_v19 = vpop.f32.mrf.mxu3 }
 0x72b   : > { %v1667_v20 = vadd.f32 %v4639_v18, %v1666_v19 }
 0x72d   : > { %v1669_v21 = vmax.f32 %v1667_v20, 0.0 }
 0x72f   : > { %1689 = vmatmul.f32.vlgmr.msrb.gmra.mxu0 %v1669_v21 }
 0x7ac   : > { %v1690_v24 = vpop.f32.mrf.mxu0 }
 0x7ad   : > { %v1691_v25 = vadd.f32 %v4640_v22, %v1690_v24 }
 0x7af   : > { %v1695_v26 = vadd.f32 %v1691_v25, %v1620_v14 }
 0x7b1   : > { %v1696_v27 = vsel %vm1206_vm0, %v1695_v26, 0.0 }
 0x7b2   : > { %1697 = vadd.xlane.f32.xlu1 %v1696_v27 }
 0x825   : > { %v1698_v28 = vpop.xlane.xlu1 %1697 }
 0x826   : > { %v1699_v29 = vmul.f32 %v1698_v28, %v5241_v41 }
 0x828   : > { %v1700_v30 = vsub.f32 %v1695_v26, %v1699_v29 }
 0x82a   : > { %v1701_v31 = vmul.f32 %v1700_v30, %v1700_v30 }
 0x82c   : > { %v1702_v32 = vsel %vm1206_vm0, %v1701_v31, 0.0 }
 0x82d   : > { %1703 = vadd.xlane.f32.xlu2 %v1702_v32 }
 0x8a0   : > { %v1704_v45 = vpop.xlane.xlu2 %1703 }
 0x8a1   : > { %v1705_v46 = vmul.f32 %v1704_v45, %v5241_v41 }
 0x8a3   : > { %v1706_v47 = vadd.f32 1e-05, %v1705_v46 }
 0x8a5   : > { %4691 = vrsqrt.f32 %v1706_v47  ;;  %vm1713_vm11 = vweird.f32 %v1706_v47 }
 0x8ab   : > { %v4692_v48 = vpop.eup %4691 }
 0x8ac   : > { %v1708_v49 = vmul.f32 %v4692_v48, %v1706_v47  ;;  %vm1714_vm10 = vweird.f32 %v4692_v48 }
 0x8ad   : > { %vm1715_vm12 = vmor %vm1713_vm11, %vm1714_vm10 }
 0x8ae   : > { %v1709_v50 = vmul.f32 %v4692_v48, %v1708_v49 }
 0x8b0   : > { %v1710_v51 = vmul.f32 0.5, %v1709_v50 }
 0x8b2   : > { %v1711_v52 = vsub.f32 1.5, %v1710_v51 }
 0x8b4   : > { %v1712_v53 = vmul.f32 %v4692_v48, %v1711_v52 }
 0x8b6   : > { %v1716_v55 = vsel %vm1715_vm12, %v4692_v48, %v1712_v53 }
 0x8b7   : > { %v1717_v56 = vmul.f32 %v1716_v55, %v1700_v30 }
 0x8b9   : > { %v1721_v58 = vmul.f32 %v4641_v54, %v1717_v56 }
 0x8bb   : > { %v5289_v59 = vadd.f32 %v4642_v57, %v1721_v58 }
 0x8bd   : > { %4375 = vmatmul.msk.f32.vlgmr.msra.gmra.mxu1 %vm1206_vm0, %v5289_v59  ;;  %4376 = vmatmul.msk.f32.vlgmr.msra.gmra.mxu2 %vm1206_vm0, %v5289_v59 }
 0x8be   : > { %4377 = vmatmul.msk.f32.vlgmr.msra.gmra.mxu3 %vm1206_vm0, %v5289_v59 }
 0x93a   : > { %v1768_v60 = vpop.f32.mrf.mxu1 }
 0x93b   : > { %1873 = vrot.lane.b32.xlu1 %v1768_v60, %s5866_s1 }
 0x940   : > { %v1788_v61 = vpop.f32.mrf.mxu2 }
 0x941   : > { %v5298_v62 = vpop.f32.mrf.mxu3  ;;  %1875 = vrot.lane.b32.xlu0 %v1788_v61, %s5866_s1  ;;  %4378 = vmatpush.xpose.msk.msrb.mxu1 %vm1270_vm1, %v1788_v61 }
 0x942   : > { %1868 = vmatpush.msrb.mxu2 %v5298_v62 }
 0x943   : > { %1943 = vrot.lane.b32.xlu1 %v1788_v61, %s5958_s23 }
 0x944   : > { %4379 = vmatmul.msk.f32.vlgmr.msrb.gmra.mxu1 %vm1270_vm1, %v1768_v60 }
 0x94b   : > { %1941 = vrot.lane.b32.xlu1 %v1768_v60, %s5958_s23 }
 0x953   : > { %2010 = vrot.lane.b32.xlu1 %v1788_v61, %s5959_s5 }
 0x95b   : > { %2008 = vrot.lane.b32.xlu1 %v1768_v60, %s5959_s5 }
 0x9ad   : > { %v1874_v63 = vpop.permute.xlu1 %1873 }
 0x9b3   : > { %v1876_v0 = vpop.permute.xlu0 %1875 }
 0x9b4   : > { %4381 = vmatpush.xpose.msk.msrb.mxu3 %vm1270_vm1, %v1876_v0  ;;  %v4372_v0 = vld [vmem:[%s5933_s29 + $0x30] sm:$0xff] }
 0x9b5   : > { %v1944_v1 = vpop.permute.xlu1 %1943 }
 0x9b6   : > { %4384 = vmatpush.xpose.msk.msra.mxu2 %vm1270_vm1, %v1944_v1  ;;  %v4371_v1 = vld [vmem:[%s5933_s29 + $0x28] sm:$0xff] }
 0x9b7   : > { %4382 = vmatmul.msk.f32.vlgmr.msrb.gmra.mxu3 %vm1270_vm1, %v1874_v63  ;;  %v4373_v63 = vld [vmem:[%s5933_s29 + $0x38] sm:$0xff] }
 0x9bd   : > { %v1942_v25 = vpop.permute.xlu1 %1941 }
 0x9c1   : > { %v1834_v2 = vpop.f32.mrf.mxu1 }
 0x9c2   : > { %v1837_v3 = vsel %vm5190_vm3, %v1834_v2, -1e+20  ;;  %v4370_v2 = vld [vmem:[%s5933_s29 + $0x20] sm:$0xff]  ;;  %s5981_s29 = sld [smem:[#allocation39_spill]] }
 0x9c3   : > { %v1838_v4 = vmul.f32 0.17677669, %v1837_v3  ;;  %v2270_v3 = vld [vmem:[%s5961_s13 + $0x18] sm:$0xff] }
 0x9c5   : > { %v1839_v5 = vsel %vm1270_vm1, %v1838_v4, -inf  ;;  %v2011_v28 = vpop.permute.xlu1 %2010 }
 0x9c6   : > { %1840 = vmax.xlane.f32.xlu2 %v1839_v5  ;;  %v2266_v5 = vld [vmem:[%s5962_s17 + $0x18] sm:$0xff] }
 0x9cd   : > { %v2009_v31 = vpop.permute.xlu1 %2008 }
 0xa39   : > { %v1841_v6 = vpop.xlane.xlu2 %1840 }
 0xa3a   : > { %v1842_v7 = vsub.f32 %v1838_v4, %v1841_v6  ;;  %v1898_v8 = vpop.f32.mrf.mxu3  ;;  %v2269_v4 = vld [vmem:[%s5961_s13 + $0x10] sm:$0xff] }
 0xa3b   : > { %v1901_v9 = vsel %vm5190_vm3, %v1898_v8, -1e+20  ;;  %v2265_v6 = vld [vmem:[%s5962_s17 + $0x10] sm:$0xff]  ;;  %v2264_v8 = vld [vmem:[%s5962_s17 + $0x8] sm:$0xff] }
 0xa3c   : > { %v1843_v11 = vmul.f32 1.442695, %v1842_v7  ;;  %v1902_v12 = vmul.f32 0.17677669, %v1901_v9  ;;  %v2268_v7 = vld [vmem:[%s5961_s13 + $0x8] sm:$0xff]  ;;  %v2267_v9 = vld [vmem:[%s5961_s13] sm:$0xff] }
 0xa3e   : > { %4693 = vpow2.f32 %v1843_v11  ;;  %v1903_v13 = vsel %vm1270_vm1, %v1902_v12, -inf  ;;  %v2263_v11 = vld [vmem:[%s5962_s17] sm:$0xff] }
 0xa3f   : > { %1904 = vmax.xlane.f32.xlu2 %v1903_v13 }
 0xa44   : > { %v4694_v14 = vpop.eup %4693 }
 0xa45   : > { %v1845_v15 = vsel %vm1270_vm1, %v4694_v14, 0.0 }
 0xa46   : > { %1846 = vadd.xlane.f32.xlu0 %v1845_v15 }
 0xab2   : > { %v1905_v16 = vpop.xlane.xlu2 %1904 }
 0xab3   : > { %v1906_v17 = vsub.f32 %v1902_v12, %v1905_v16  ;;  %v5360_v12 = vld [vmem:[%s1177_s26] sm:$0xff]  ;;  %s5968_s26 = sld [smem:[#allocation23_spill]] }
 0xab5   : > { %v1907_v18 = vmul.f32 1.442695, %v1906_v17 }
 0xab7   : > { %4695 = vpow2.f32 %v1907_v18 }
 0xab9   : > { %v1847_v19 = vpop.xlane.xlu0 %1846 }
 0xaba   : > { %4697 = vrcp.f32 %v1847_v19  ;;  %v4643_v19 = vld [vmem:[%s5940_s3 + $0x1] ss:$0 sm:$0xff]  ;;  %s5973_s3 = sld [smem:[#allocation30_spill]] }
 0xabd   : > { %v4696_v20 = vpop.eup %4695 }
 0xabe   : > { %v1909_v21 = vsel %vm1270_vm1, %v4696_v20, 0.0 }
 0xabf   : > { %1910 = vadd.xlane.f32.xlu2 %v1909_v21 }
 0xac0   : > { %v4698_v22 = vpop.eup %4697 }
 0xac1   : > { %v1849_v24 = vmul.f32 %v4698_v22, %v4694_v14 }
 0xac3   : > { %4380 = vmatmul.msk.f32.vlgmr.msrb.gmra.mxu2 %vm1270_vm1, %v1849_v24 }
 0xacb   : > { %4385 = vmatmul.msk.f32.vlgmr.msra.gmra.mxu2 %vm1270_vm1, %v1942_v25 }
 0xad7   : > { %1915 = vrot.lane.b32.xlu2 %v5298_v62, %s5866_s1  ;;  %s5960_s1 = smov 8  }
 0xb32   : > { %v1911_v26 = vpop.xlane.xlu2 %1910 }
 0xb33   : > { %4699 = vrcp.f32 %v1911_v26 }
 0xb39   : > { %v4700_v27 = vpop.eup %4699 }
 0xb3a   : > { %v1913_v29 = vmul.f32 %v4700_v27, %v4696_v20  ;;  %v1916_v30 = vpop.permute.xlu2 %1915 }
 0xb3b   : > { %1936 = vmatpush.msra.mxu1 %v1916_v30 }
 0xb3c   : > { %4383 = vmatmul.msk.f32.vlgmr.msra.gmra.mxu1 %vm1270_vm1, %v1913_v29 }
 0xb3d   : > { %4387 = vmatpush.xpose.msk.msrb.mxu1 %vm1270_vm1, %v2011_v28 }
 0xb44   : > { %4388 = vmatmul.msk.f32.vlgmr.msrb.gmra.mxu1 %vm1270_vm1, %v2009_v31  ;;  %v1183_v31 = vlaneseq }
 0xb46   : > { %v5326_v32 = vpop.f32.mrf.mxu2 }
 0xb4e   : > { %v1966_v33 = vpop.f32.mrf.mxu2 }
 0xb4f   : > { %v1969_v34 = vsel %vm5190_vm3, %v1966_v33, -1e+20  ;;  %v1186_v33 = vand.u32 127, %v1183_v31 }
 0xb50   : > { %v1970_v35 = vmul.f32 0.17677669, %v1969_v34 }
 0xb52   : > { %v1971_v36 = vsel %vm1270_vm1, %v1970_v35, -inf }
 0xb53   : > { %1972 = vmax.xlane.f32.xlu2 %v1971_v36 }
 0xb6b   : > { %2049 = vrot.lane.b32.xlu2 %v5298_v62, %s5959_s5 }
 0xbb9   : > { %v1938_v37 = vpop.f32.mrf.mxu1 }
 0xbc1   : > { %v2033_v38 = vpop.f32.mrf.mxu1 }
 0xbc2   : > { %v2036_v39 = vsel %vm5190_vm3, %v2033_v38, -1e+20 }
 0xbc3   : > { %v2037_v40 = vmul.f32 0.17677669, %v2036_v39  ;;  %v4396_v39 = vld [vmem:[%s5932_s30 + $0x38] sm:$0xff] }
 0xbc4   : > { %2195 = vmatpush.msra.mxu0 %v4396_v39 }
 0xbc5   : > { %v2038_v10 = vsel %vm1270_vm1, %v2037_v40, -inf }
 0xbc6   : > { %2039 = vmax.xlane.f32.xlu1 %v2038_v10  ;;  %v1973_v42 = vpop.xlane.xlu2 %1972  ;;  %v4394_v10 = vld [vmem:[%s5932_s30 + $0x28] sm:$0xff] }
 0xbc7   : > { %v1974_v43 = vsub.f32 %v1970_v35, %v1973_v42  ;;  %v4393_v42 = vld [vmem:[%s5932_s30 + $0x20] sm:$0xff] }
 0xbc9   : > { %v1975_v44 = vmul.f32 1.442695, %v1974_v43  ;;  %v2274_v43 = vld [vmem:[%s5968_s26 + $0x18] sm:$0xff] }
 0xbcb   : > { %4701 = vpow2.f32 %v1975_v44  ;;  %v2273_v44 = vld [vmem:[%s5968_s26 + $0x10] sm:$0xff] }
 0xbce   : > { %v2050_v45 = vpop.permute.xlu2 %2049 }
 0xbcf   : > { %2070 = vmatpush.msrb.mxu2 %v2050_v45 }
 0xbd1   : > { %v4702_v46 = vpop.eup %4701  ;;  %2295 = vmatpush.msra.mxu2 %v2266_v5 }
 0xbd2   : > { %v1977_v47 = vsel %vm1270_vm1, %v4702_v46, 0.0 }
 0xbd3   : > { %1978 = vadd.xlane.f32.xlu0 %v1977_v47  ;;  %2296 = vmatpush.msra.mxu2 %v2265_v6  ;;  %v4411_v6 = vld [vmem:[%s5937_s12 + $0xe8] sm:$0xff] }
 0xbd5   : > { %2297 = vmatpush.msra.mxu2 %v2264_v8  ;;  %v4410_v8 = vld [vmem:[%s5937_s12 + $0xe0] sm:$0xff] }
 0xbd7   : > { %2298 = vmatpush.msra.mxu2 %v2263_v11  ;;  %v4408_v11 = vld [vmem:[%s5937_s12 + $0xd0] sm:$0xff] }
 0xc39   : > { %v2040_v48 = vpop.xlane.xlu1 %2039 }
 0xc3a   : > { %v2041_v49 = vsub.f32 %v2037_v40, %v2040_v48  ;;  %v4395_v40 = vld [vmem:[%s5932_s30 + $0x30] sm:$0xff]  ;;  %v2271_v48 = vld [vmem:[%s5968_s26] sm:$0xff]  ;;  %s5982_s30 = sld [smem:[#allocation33_spill]] }
 0xc3b   : > { %2196 = vmatpush.msra.mxu0 %v4395_v40 }
 0xc3c   : > { %v2042_v50 = vmul.f32 1.442695, %v2041_v49 }
 0xc3d   : > { %2197 = vmatpush.msra.mxu0 %v4394_v10 }
 0xc3e   : > { %4703 = vpow2.f32 %v2042_v50 }
 0xc3f   : > { %2198 = vmatpush.msra.mxu0 %v4393_v42 }
 0xc41   : > { %2335 = vmatpush.msrb.mxu0 %v2274_v43 }
 0xc43   : > { %2336 = vmatpush.msrb.mxu0 %v2273_v44 }
 0xc44   : > { %v4704_v51 = vpop.eup %4703 }
 0xc45   : > { %v2044_v52 = vsel %vm1270_vm1, %v4704_v51, 0.0 }
 0xc46   : > { %2045 = vadd.xlane.f32.xlu0 %v2044_v52  ;;  %v1979_v53 = vpop.xlane.xlu0 %1978 }
 0xc5a   : > { %1982 = vrot.lane.b32.xlu0 %v5298_v62, %s5958_s23 }
 0xc62   : > { %2076 = vrot.lane.b32.xlu0 %v1938_v37, %s5960_s1 }
 0xcb9   : > { %v2046_v54 = vpop.xlane.xlu0 %2045 }
 0xcba   : > { %4705 = vrcp.f32 %v2046_v54 }
 0xcbb   : > { %4707 = vrcp.f32 %v1979_v53 }
 0xcc0   : > { %v4706_v55 = vpop.eup %4705 }
 0xcc1   : > { %v2048_v56 = vmul.f32 %v4706_v55, %v4704_v51  ;;  %v4708_v57 = vpop.eup %4707 }
 0xcc2   : > { %v1981_v58 = vmul.f32 %v4708_v57, %v4702_v46  ;;  %v2272_v46 = vld [vmem:[%s5968_s26 + $0x8] sm:$0xff] }
 0xcc3   : > { %4389 = vmatmul.msk.f32.vlgmr.msrb.gmra.mxu2 %vm1270_vm1, %v2048_v56  ;;  %2337 = vmatpush.msrb.mxu0 %v2272_v46 }
 0xcc5   : > { %2338 = vmatpush.msrb.mxu0 %v2271_v48 }
 0xccb   : > { %4418 = vmatmul.msk.f32.vlgmr.msra.gmra.mxu2 %vm1206_vm0, %v5360_v12 }
 0xccc   : > { %v1983_v60 = vpop.permute.xlu0 %1982 }
 0xccd   : > { %2003 = vmatpush.msra.mxu3 %v1983_v60 }
 0xcce   : > { %4386 = vmatmul.msk.f32.vlgmr.msra.gmra.mxu3 %vm1270_vm1, %v1981_v58  ;;  %v4644_v58 = vld [vmem:[%s5938_s8 + $0x1] ss:$0 sm:$0xff]  ;;  %s5975_s8 = sld [smem:[#allocation25_spill]] }
 0xccf   : > { %2108 = vmatpush.msrb.mxu3 %v4373_v63  ;;  %v4645_v63 = vld [vmem:[%s5936_s14 + $0x1] ss:$0 sm:$0xff]  ;;  %s5977_s14 = sld [smem:[#allocation27_spill]] }
 0xcd1   : > { %2109 = vmatpush.msrb.mxu3 %v4372_v0 }
 0xcd3   : > { %2110 = vmatpush.msrb.mxu3 %v4371_v1 }
 0xcd4   : > { %v2077_v13 = vpop.permute.xlu0 %2076 }
 0xcd5   : > { %2111 = vmatpush.msrb.mxu3 %v4370_v2  ;;  %v2087_v14 = vsel %vm1270_vm1, %v5326_v32, %v2077_v13  ;;  %v1184_v32 = vshrl.u32 %v1183_v31, 7  ;;  %v4407_v13 = vld [vmem:[%s5937_s12 + $0xc8] sm:$0xff] }
 0xcd7   : > { %2315 = vmatpush.msra.mxu3 %v2270_v3  ;;  %vm5388_vm13 = vcmp.le.s32.totalorder %v1186_v33, %v1184_v32  ;;  %v4413_v3 = vld [vmem:[%s5937_s12 + $0xf8] sm:$0xff] }
 0xcd8   : > { %2207 = vmatpush.msra.mxu1 %v4413_v3 }
 0xcd9   : > { %2316 = vmatpush.msra.mxu3 %v2269_v4  ;;  %v4412_v4 = vld [vmem:[%s5937_s12 + $0xf0] sm:$0xff] }
 0xcda   : > { %2208 = vmatpush.msra.mxu1 %v4412_v4 }
 0xcdb   : > { %2317 = vmatpush.msra.mxu3 %v2268_v7 }
 0xcdc   : > { %2209 = vmatpush.msra.mxu1 %v4411_v6 }
 0xcdd   : > { %2318 = vmatpush.msra.mxu3 %v2267_v9  ;;  %v4409_v9 = vld [vmem:[%s5937_s12 + $0xd8] sm:$0xff] }
 0xcde   : > { %2210 = vmatpush.msra.mxu1 %v4410_v8 }
 0xce0   : > { %2211 = vmatpush.msra.mxu1 %v4409_v9  ;;  %v4647_v9 = vld [vmem:[%s5934_s20 + $0x1] ss:$0 sm:$0xff]  ;;  %s5979_s20 = sld [smem:[#allocation32_spill]] }
 0xce2   : > { %2212 = vmatpush.msra.mxu1 %v4408_v11 }
 0xce4   : > { %2213 = vmatpush.msra.mxu1 %v4407_v13 }
 0xd46   : > { %v2072_v61 = vpop.f32.mrf.mxu2 }
 0xd47   : > { %2084 = vrot.lane.b32.xlu0 %v2072_v61, %s5963_s21 }
 0xd4e   : > { %v5378_v26 = vpop.f32.mrf.mxu2 }
 0xd51   : > { %v2005_v62 = vpop.f32.mrf.mxu3 }
 0xd52   : > { %2080 = vrot.lane.b32.xlu1 %v2005_v62, %s5964_s25 }
 0xdb9   : > { %v2085_v16 = vpop.permute.xlu0 %2084 }
 0xdc4   : > { %v2081_v15 = vpop.permute.xlu1 %2080 }
 0xdc5   : > { %v2088_v17 = vsel %vm1551_vm4, %v2087_v14, %v2081_v15  ;;  %v4406_v14 = vld [vmem:[%s5937_s12 + $0xc0] sm:$0xff] }
 0xdc6   : > { %v2089_v18 = vsel %vm1553_vm5, %v2088_v17, %v2085_v16  ;;  %v4405_v16 = vld [vmem:[%s5937_s12 + $0xb8] sm:$0xff]  ;;  %2214 = vmatpush.msra.mxu1 %v4406_v14  ;;  %v4404_v17 = vld [vmem:[%s5937_s12 + $0xb0] sm:$0xff] }
 0xdc7   : > { %4390 = vmatmul.msk.f32.vlgmr.msrb.gmra.mxu3 %vm1206_vm0, %v2089_v18  ;;  %v4403_v18 = vld [vmem:[%s5937_s12 + $0xa8] sm:$0xff] }
 0xdc8   : > { %2215 = vmatpush.msra.mxu1 %v4405_v16 }
 0xdca   : > { %2216 = vmatpush.msra.mxu1 %v4404_v17 }
 0xdcc   : > { %2217 = vmatpush.msra.mxu1 %v4403_v18 }
 0xdcf   : > { %4419 = vmatmul.msk.f32.vlgmr.msra.gmra.mxu3 %vm1206_vm0, %v5360_v12 }
 0xe4a   : > { %v2113_v20 = vpop.f32.mrf.mxu3 }
 0xe4b   : > { %v2114_v21 = vadd.f32 %v4643_v19, %v2113_v20  ;;  %v4402_v19 = vld [vmem:[%s5937_s12 + $0xa0] sm:$0xff]  ;;  %v4401_v20 = vld [vmem:[%s5937_s12 + $0x98] sm:$0xff] }
 0xe4c   : > { %2218 = vmatpush.msra.mxu1 %v4402_v19 }
 0xe4d   : > { %v2120_v22 = vadd.f32 %v2114_v21, %v5289_v59  ;;  %v4400_v21 = vld [vmem:[%s5937_s12 + $0x90] sm:$0xff] }
 0xe4e   : > { %2219 = vmatpush.msra.mxu1 %v4401_v20 }
 0xe4f   : > { %v2121_v24 = vsel %vm1206_vm0, %v2120_v22, 0.0 }
 0xe50   : > { %2122 = vadd.xlane.f32.xlu0 %v2121_v24  ;;  %2220 = vmatpush.msra.mxu1 %v4400_v21  ;;  %v4398_v24 = vld [vmem:[%s5937_s12 + $0x80] sm:$0xff] }
 0xe52   : > { %v5374_v25 = vpop.f32.mrf.mxu3 }
 0xe53   : > { %4421 = vmatpush.xpose.msk.msrb.mxu2 %vm1270_vm1, %v5374_v25  ;;  %2407 = vrot.lane.b32.xlu1 %v5374_v25, %s5967_s18 }
 0xe56   : > { %4422 = vmatmul.msk.f32.vlgmr.msrb.gmra.mxu2 %vm1270_vm1, %v5378_v26 }
 0xe5b   : > { %2405 = vrot.lane.b32.xlu1 %v5378_v26, %s5967_s18 }
 0xec3   : > { %v2123_v59 = vpop.xlane.xlu0 %2122 }
 0xec4   : > { %v2124_v27 = vmul.f32 %v2123_v59, %v5241_v41 }
 0xec5   : > { %v2408_v2 = vpop.permute.xlu1 %2407 }
 0xec6   : > { %v2125_v28 = vsub.f32 %v2120_v22, %v2124_v27  ;;  %v4399_v22 = vld [vmem:[%s5937_s12 + $0x88] sm:$0xff]  ;;  %v4646_v27 = vld [vmem:[%s5939_s6 + $0x1] ss:$0 sm:$0xff]  ;;  %s5974_s6 = sld [smem:[#allocation28_spill]] }
 0xec7   : > { %2221 = vmatpush.msra.mxu1 %v4399_v22  ;;  %s5976_s12 = sld [smem:[#allocation26_spill]] }
 0xec8   : > { %v2126_v29 = vmul.f32 %v2125_v28, %v2125_v28 }
 0xec9   : > { %2222 = vmatpush.msra.mxu1 %v4398_v24 }
 0xeca   : > { %v2127_v30 = vsel %vm1206_vm0, %v2126_v29, 0.0 }
 0xecb   : > { %2128 = vadd.xlane.f32.xlu2 %v2127_v30 }
 0xecd   : > { %v2406_v15 = vpop.permute.xlu1 %2405 }
 0xed9   : > { %v2366_v35 = vpop.f32.mrf.mxu2 }
 0xeda   : > { %v2369_v36 = vsel %vm5388_vm13, %v2366_v35, -1e+20 }
 0xedb   : > { %v2370_v37 = vmul.f32 0.17677669, %v2369_v36 }
 0xedd   : > { %v2371_v38 = vsel %vm1270_vm1, %v2370_v37, -inf }
 0xede   : > { %2372 = vmax.xlane.f32.xlu0 %v2371_v38 }
 0xf3e   : > { %v2129_v45 = vpop.xlane.xlu2 %2128 }
 0xf3f   : > { %v2130_v47 = vmul.f32 %v2129_v45, %v5241_v41 }
 0xf41   : > { %v2131_v49 = vadd.f32 1e-05, %v2130_v47 }
 0xf43   : > { %4709 = vrsqrt.f32 %v2131_v49  ;;  %vm2138_vm15 = vweird.f32 %v2131_v49 }
 0xf49   : > { %v4710_v50 = vpop.eup %4709 }
 0xf4a   : > { %v2133_v51 = vmul.f32 %v4710_v50, %v2131_v49  ;;  %vm2139_vm14 = vweird.f32 %v4710_v50 }
 0xf4b   : > { %vm2140_vm2 = vmor %vm2138_vm15, %vm2139_vm14 }
 0xf4c   : > { %v2134_v52 = vmul.f32 %v4710_v50, %v2133_v51 }
 0xf4e   : > { %v2135_v53 = vmul.f32 0.5, %v2134_v52 }
 0xf50   : > { %v2136_v54 = vsub.f32 1.5, %v2135_v53 }
 0xf51   : > { %v2373_v55 = vpop.xlane.xlu0 %2372 }
 0xf52   : > { %v2137_v56 = vmul.f32 %v4710_v50, %v2136_v54  ;;  %v2374_v57 = vsub.f32 %v2370_v37, %v2373_v55 }
 0xf54   : > { %v2141_v60 = vsel %vm2140_vm2, %v4710_v50, %v2137_v56  ;;  %v2375_v61 = vmul.f32 1.442695, %v2374_v57 }
 0xf55   : > { %v2142_v62 = vmul.f32 %v2141_v60, %v2125_v28 }
 0xf56   : > { %4711 = vpow2.f32 %v2375_v61 }
 0xf57   : > { %v2146_v0 = vmul.f32 %v4644_v58, %v2142_v62 }
 0xf59   : > { %v5406_v1 = vadd.f32 %v4645_v63, %v2146_v0 }
 0xf5b   : > { %4415 = vmatmul.msk.f32.vlgmr.msra.gmra.mxu0 %vm1206_vm0, %v5406_v1 }
 0xf5c   : > { %v4712_v5 = vpop.eup %4711  ;;  %4424 = vmatpush.xpose.msk.msra.mxu0 %vm1270_vm1, %v2408_v2 }
 0xf5d   : > { %v2377_v7 = vsel %vm1270_vm1, %v4712_v5, 0.0 }
 0xf5e   : > { %2378 = vadd.xlane.f32.xlu0 %v2377_v7 }
 0xf63   : > { %4420 = vmatmul.msk.f32.vlgmr.msrb.gmra.mxu0 %vm1206_vm0, %v5360_v12 }
 0xf6b   : > { %4425 = vmatmul.msk.f32.vlgmr.msra.gmra.mxu0 %vm1270_vm1, %v2406_v15 }
 0xf72   : > { %2542 = vrot.lane.b32.xlu0 %v5374_v25, %s5959_s5 }
 0xf7a   : > { %2475 = vrot.lane.b32.xlu0 %v5374_v25, %s5958_s23 }
 0xfd1   : > { %v2379_v59 = vpop.xlane.xlu0 %2378 }
 0xfd2   : > { %4713 = vrcp.f32 %v2379_v59 }
 0xfd8   : > { %v2200_v28 = vpop.f32.mrf.mxu0  ;;  %v4714_v31 = vpop.eup %4713 }
 0xfd9   : > { %v2201_v29 = vadd.f32 %v4646_v27, %v2200_v28  ;;  %v2381_v25 = vmul.f32 %v4714_v31, %v4712_v5  ;;  %v2278_v31 = vld [vmem:[%s5971_s2 + $0x18] sm:$0xff] }
 0xfdb   : > { %v2203_v30 = vmax.f32 %v2201_v29, 0.0 }
 0xfdd   : > { %2223 = vmatmul.f32.vlgmr.msra.gmra.mxu1 %v2203_v30 }
 0xfe0   : > { %v2340_v32 = vpop.f32.mrf.mxu0 }
 0xfe1   : > { %2447 = vrot.lane.b32.xlu2 %v2340_v32, %s5967_s18  ;;  %2400 = vmatpush.msrb.mxu3 %v2340_v32 }
 0xfe2   : > { %4423 = vmatmul.msk.f32.vlgmr.msrb.gmra.mxu3 %vm1270_vm1, %v2381_v25  ;;  %v2277_v25 = vld [vmem:[%s5971_s2 + $0x10] sm:$0xff] }
 0xfe4   : > { %v2543_v33 = vpop.permute.xlu0 %2542 }
 0xfe8   : > { %v2430_v35 = vpop.f32.mrf.mxu0 }
 0xfe9   : > { %v2433_v36 = vsel %vm5388_vm13, %v2430_v35, -1e+20 }
 0xfea   : > { %v2434_v37 = vmul.f32 0.17677669, %v2433_v36 }
 0xfec   : > { %v2476_v38 = vpop.permute.xlu0 %2475  ;;  %v2435_v39 = vsel %vm1270_vm1, %v2434_v37, -inf }
 0xfed   : > { %2436 = vmax.xlane.f32.xlu1 %v2435_v39  ;;  %4427 = vmatpush.xpose.msk.msra.mxu3 %vm1270_vm1, %v2476_v38 }
0x1006   : > { %2540 = vrot.lane.b32.xlu1 %v5378_v26, %s5959_s5 }
0x103b   : > { %v2448_v40 = vpop.permute.xlu2 %2447 }
0x103c   : > { %2468 = vmatpush.msra.mxu2 %v2448_v40 }
0x103e   : > { %4430 = vmatpush.xpose.msk.msrb.mxu2 %vm1270_vm1, %v2543_v33  ;;  %v2275_v33 = vld [vmem:[%s5971_s2] sm:$0xff] }
0x105a   : > { %v2224_v11 = vpop.f32.mrf.mxu1 }
0x105b   : > { %v2225_v13 = vadd.f32 %v4647_v9, %v2224_v11 }
0x105d   : > { %v2231_v14 = vadd.f32 %v2225_v13, %v5406_v1 }
0x105f   : > { %v2232_v15 = vsel %vm1206_vm0, %v2231_v14, 0.0 }
0x1060   : > { %v2437_v10 = vpop.xlane.xlu1 %2436 }
0x1061   : > { %v2438_v42 = vsub.f32 %v2434_v37, %v2437_v10  ;;  %v2688_v10 = vld [vmem:[%s5972_s11 + $0x18] sm:$0xff] }
0x1063   : > { %v2439_v43 = vmul.f32 1.442695, %v2438_v42  ;;  %v2692_v42 = vld [vmem:[%s5973_s3 + $0x18] sm:$0xff] }
0x1065   : > { %4715 = vpow2.f32 %v2439_v43  ;;  %v5451_v51 = vpop.f32.mrf.mxu3  ;;  %v2687_v43 = vld [vmem:[%s5972_s11 + $0x10] sm:$0xff] }
0x106b   : > { %v4716_v44 = vpop.eup %4715 }
0x106c   : > { %v2441_v45 = vsel %vm1270_vm1, %v4716_v44, 0.0 }
0x106d   : > { %2442 = vadd.xlane.f32.xlu2 %v2441_v45  ;;  %v2686_v45 = vld [vmem:[%s5972_s11 + $0x8] sm:$0xff] }
0x1078   : > { %v2541_v50 = vpop.permute.xlu1 %2540 }
0x1085   : > { %2473 = vrot.lane.b32.xlu2 %v5378_v26, %s5958_s23 }
0x10e0   : > { %v2443_v46 = vpop.xlane.xlu2 %2442 }
0x10e1   : > { %4717 = vrcp.f32 %v2443_v46  ;;  %v2690_v46 = vld [vmem:[%s5973_s3 + $0x8] sm:$0xff] }
0x10e7   : > { %v4718_v47 = vpop.eup %4717 }
0x10e8   : > { %v2445_v48 = vmul.f32 %v4718_v47, %v4716_v44  ;;  %v2474_v49 = vpop.permute.xlu2 %2473  ;;  %v2691_v44 = vld [vmem:[%s5973_s3 + $0x10] sm:$0xff]  ;;  %v2685_v47 = vld [vmem:[%s5972_s11] sm:$0xff] }
0x10e9   : > { %4428 = vmatmul.msk.f32.vlgmr.msra.gmra.mxu3 %vm1270_vm1, %v2474_v49 }
0x10ea   : > { %4426 = vmatmul.msk.f32.vlgmr.msra.gmra.mxu2 %vm1270_vm1, %v2445_v48  ;;  %v2689_v48 = vld [vmem:[%s5973_s3] sm:$0xff] }
0x10eb   : > { %2736 = vmatpush.msra.mxu2 %v2688_v10 }
0x10ed   : > { %2737 = vmatpush.msra.mxu2 %v2687_v43 }
0x10ef   : > { %2738 = vmatpush.msra.mxu2 %v2686_v45 }
0x10f1   : > { %2739 = vmatpush.msra.mxu2 %v2685_v47 }
0x10f2   : > { %4431 = vmatmul.msk.f32.vlgmr.msrb.gmra.mxu2 %vm1270_vm1, %v2541_v50 }
0x116c   : > { %v2498_v52 = vpop.f32.mrf.mxu3 }
0x116d   : > { %v2501_v53 = vsel %vm5388_vm13, %v2498_v52, -1e+20  ;;  %v2470_v54 = vpop.f32.mrf.mxu2 }
0x116e   : > { %v2502_v26 = vmul.f32 0.17677669, %v2501_v53 }
0x1170   : > { %v2503_v55 = vsel %vm1270_vm1, %v2502_v26, -inf }
0x1171   : > { %2504 = vmax.xlane.f32.xlu2 %v2503_v55 }
0x1175   : > { %v2565_v56 = vpop.f32.mrf.mxu2 }
0x1176   : > { %v2568_v57 = vsel %vm5388_vm13, %v2565_v56, -1e+20 }
0x1177   : > { %v2569_v58 = vmul.f32 0.17677669, %v2568_v57  ;;  %v4648_v57 = vld [vmem:[%s5935_s19 + $0x1] ss:$0 sm:$0xff]  ;;  %s5978_s19 = sld [smem:[#allocation31_spill]] }
0x1179   : > { %v2570_v60 = vsel %vm1270_vm1, %v2569_v58, -inf }
0x117a   : > { %2571 = vmax.xlane.f32.xlu0 %v2570_v60 }
0x118e   : > { %2581 = vrot.lane.b32.xlu0 %v2340_v32, %s5959_s5 }
0x11e4   : > { %v2505_v61 = vpop.xlane.xlu2 %2504 }
0x11e5   : > { %v2506_v62 = vsub.f32 %v2502_v26, %v2505_v61  ;;  %v4649_v61 = vld [vmem:[%s5957_s28 + $0x1] ss:$0 sm:$0xff]  ;;  %s5980_s28 = sld [smem:[#allocation37_spill]] }
0x11e7   : > { %v2507_v63 = vmul.f32 1.442695, %v2506_v62 }
0x11e9   : > { %4719 = vpow2.f32 %v2507_v63 }
0x11ed   : > { %v2572_v0 = vpop.xlane.xlu0 %2571 }
0x11ee   : > { %v2573_v2 = vsub.f32 %v2569_v58, %v2572_v0  ;;  %v2684_v0 = vld [vmem:[%s5974_s6 + $0x18] sm:$0xff] }
0x11ef   : > { %v4720_v3 = vpop.eup %4719  ;;  %2713 = vmatpush.msrb.mxu1 %v2684_v0 }
0x11f0   : > { %v2574_v4 = vmul.f32 1.442695, %v2573_v2  ;;  %v2509_v5 = vsel %vm1270_vm1, %v4720_v3, 0.0  ;;  %v2683_v2 = vld [vmem:[%s5974_s6 + $0x10] sm:$0xff] }
0x11f1   : > { %2510 = vadd.xlane.f32.xlu2 %v2509_v5  ;;  %2714 = vmatpush.msrb.mxu1 %v2683_v2  ;;  %v4650_v5 = vld [vmem:[%s5975_s8] ss:$0 sm:$0xff] }
0x11f2   : > { %4721 = vpow2.f32 %v2574_v4  ;;  %v2681_v4 = vld [vmem:[%s5974_s6] sm:$0xff] }
0x11f8   : > { %v4722_v6 = vpop.eup %4721 }
0x11f9   : > { %v2576_v7 = vsel %vm1270_vm1, %v4722_v6, 0.0 }
0x11fa   : > { %2577 = vadd.xlane.f32.xlu1 %v2576_v7 }
0x1200   : > { %v2582_v8 = vpop.permute.xlu0 %2581 }
0x1201   : > { %2602 = vmatpush.msrb.mxu3 %v2582_v8 }
0x1203   : > { %2756 = vmatpush.msra.mxu3 %v2692_v42 }
0x1205   : > { %2757 = vmatpush.msra.mxu3 %v2691_v44 }
0x1207   : > { %2758 = vmatpush.msra.mxu3 %v2690_v46 }
0x1209   : > { %2514 = vrot.lane.b32.xlu2 %v2340_v32, %s5958_s23  ;;  %v2276_v32 = vld [vmem:[%s5971_s2 + $0x8] sm:$0xff]  ;;  %2759 = vmatpush.msra.mxu3 %v2689_v48 }
0x1213   : > { %2608 = vrot.lane.b32.xlu1 %v2470_v54, %s5960_s1 }
0x1232   : > { %2233 = vadd.xlane.f32.xlu2 %v2232_v15 }
0x1264   : > { %v2511_v16 = vpop.xlane.xlu2 %2510 }
0x1265   : > { %4723 = vrcp.f32 %v2511_v16 }
0x126b   : > { %v4724_v17 = vpop.eup %4723 }
0x126c   : > { %v2513_v18 = vmul.f32 %v4724_v17, %v4720_v3  ;;  %v2515_v19 = vpop.permute.xlu2 %2514  ;;  %v2682_v3 = vld [vmem:[%s5974_s6 + $0x8] sm:$0xff] }
0x126d   : > { %2535 = vmatpush.msrb.mxu0 %v2515_v19  ;;  %v2578_v20 = vpop.xlane.xlu1 %2577  ;;  %2715 = vmatpush.msrb.mxu1 %v2682_v3 }
0x126e   : > { %4725 = vrcp.f32 %v2578_v20  ;;  %4429 = vmatmul.msk.f32.vlgmr.msrb.gmra.mxu0 %vm1270_vm1, %v2513_v18 }
0x126f   : > { %2640 = vmatpush.msra.mxu0 %v2278_v31  ;;  %2716 = vmatpush.msrb.mxu1 %v2681_v4  ;;  %v4651_v31 = vld [vmem:[%s5976_s12] ss:$0 sm:$0xff] }
0x1271   : > { %2641 = vmatpush.msra.mxu0 %v2277_v25 }
0x1273   : > { %2642 = vmatpush.msra.mxu0 %v2276_v32 }
0x1274   : > { %v4726_v21 = vpop.eup %4725 }
0x1275   : > { %v2580_v22 = vmul.f32 %v4726_v21, %v4722_v6  ;;  %2643 = vmatpush.msra.mxu0 %v2275_v33  ;;  %v4652_v33 = vld [vmem:[%s5977_s14] ss:$0 sm:$0xff] }
0x1277   : > { %4432 = vmatmul.msk.f32.vlgmr.msrb.gmra.mxu3 %vm1270_vm1, %v2580_v22 }
0x1285   : > { %v2609_v36 = vpop.permute.xlu1 %2608 }
0x1286   : > { %v2619_v37 = vsel %vm1270_vm1, %v5451_v51, %v2609_v36 }
0x12a5   : > { %v2234_v59 = vpop.xlane.xlu2 %2233 }
0x12a6   : > { %v2235_v27 = vmul.f32 %v2234_v59, %v5241_v41 }
0x12a8   : > { %v2236_v28 = vsub.f32 %v2231_v14, %v2235_v27 }
0x12aa   : > { %v2237_v29 = vmul.f32 %v2236_v28, %v2236_v28 }
0x12ac   : > { %v2238_v30 = vsel %vm1206_vm0, %v2237_v29, 0.0 }
0x12eb   : > { %v2537_v1 = vpop.f32.mrf.mxu0 }
0x12ec   : > { %2612 = vrot.lane.b32.xlu0 %v2537_v1, %s5964_s25 }
0x12fa   : > { %v2604_v24 = vpop.f32.mrf.mxu3 }
0x12fb   : > { %2616 = vrot.lane.b32.xlu0 %v2604_v24, %s5963_s21 }
0x1325   : > { %2239 = vadd.xlane.f32.xlu0 %v2238_v30 }
0x135e   : > { %v2613_v35 = vpop.permute.xlu0 %2612 }
0x135f   : > { %v2620_v38 = vsel %vm1551_vm4, %v2619_v37, %v2613_v35 }
0x136d   : > { %v2617_v39 = vpop.permute.xlu0 %2616 }
0x136e   : > { %v2621_v40 = vsel %vm1553_vm5, %v2620_v38, %v2617_v39 }
0x136f   : > { %4433 = vmatmul.msk.f32.vlgmr.msra.gmra.mxu0 %vm1206_vm0, %v2621_v40 }
0x1398   : > { %v2240_v49 = vpop.xlane.xlu0 %2239 }
0x1399   : > { %v2241_v50 = vmul.f32 %v2240_v49, %v5241_v41 }
0x139b   : > { %v2242_v51 = vadd.f32 1e-05, %v2241_v50 }
0x139d   : > { %4727 = vrsqrt.f32 %v2242_v51  ;;  %vm2249_vm7 = vweird.f32 %v2242_v51 }
0x13a3   : > { %v4728_v52 = vpop.eup %4727 }
0x13a4   : > { %v2244_v53 = vmul.f32 %v4728_v52, %v2242_v51  ;;  %vm2250_vm6 = vweird.f32 %v4728_v52 }
0x13a5   : > { %vm2251_vm8 = vmor %vm2249_vm7, %vm2250_vm6 }
0x13a6   : > { %v2245_v54 = vmul.f32 %v4728_v52, %v2244_v53 }
0x13a8   : > { %v2246_v26 = vmul.f32 0.5, %v2245_v54 }
0x13aa   : > { %v2247_v55 = vsub.f32 1.5, %v2246_v26 }
0x13ac   : > { %v2248_v56 = vmul.f32 %v4728_v52, %v2247_v55 }
0x13ae   : > { %v2252_v58 = vsel %vm2251_vm8, %v4728_v52, %v2248_v56 }
0x13af   : > { %v2253_v60 = vmul.f32 %v2252_v58, %v2236_v28 }
0x13b1   : > { %v2257_v62 = vmul.f32 %v4648_v57, %v2253_v60 }
0x13b3   : > { %v5493_v63 = vadd.f32 %v4649_v61, %v2257_v62 }
0x13b5   : > { %4435 = vmatmul.msk.f32.vlgmr.msra.gmra.mxu2 %vm1206_vm0, %v5493_v63  ;;  %4436 = vmatmul.msk.f32.vlgmr.msra.gmra.mxu3 %vm1206_vm0, %v5493_v63 }
0x13ec   : > { %v2645_v6 = vpop.f32.mrf.mxu0 }
0x13ed   : > { %v2646_v7 = vadd.f32 %v4650_v5, %v2645_v6 }
0x13ef   : > { %v2650_v8 = vadd.f32 %v2646_v7, %v5360_v12 }
0x13f1   : > { %v2651_v9 = vsel %vm1206_vm0, %v2650_v8, 0.0 }
0x13f2   : > { %2652 = vadd.xlane.f32.xlu1 %v2651_v9 }
0x1438   : > { %v2741_v11 = vpop.f32.mrf.mxu2  ;;  %v5506_v13 = vpop.f32.mrf.mxu3 }
0x1439   : > { %2821 = vmatpush.msra.mxu1 %v5506_v13  ;;  %2828 = vrot.lane.b32.xlu1 %v2741_v11, %s5967_s18 }
0x143a   : > { %4437 = vmatpush.xpose.msk.msrb.mxu0 %vm1270_vm1, %v2741_v11 }
0x1441   : > { %2896 = vrot.lane.b32.xlu1 %v2741_v11, %s5958_s23 }
0x1465   : > { %v2653_v14 = vpop.xlane.xlu1 %2652 }
0x1466   : > { %v2654_v15 = vmul.f32 %v2653_v14, %v5241_v41 }
0x1468   : > { %v2655_v16 = vsub.f32 %v2650_v8, %v2654_v15 }
0x146a   : > { %v2656_v17 = vmul.f32 %v2655_v16, %v2655_v16 }
0x146c   : > { %v2657_v12 = vsel %vm1206_vm0, %v2656_v17, 0.0 }
0x146d   : > { %2658 = vadd.xlane.f32.xlu2 %v2657_v12 }
0x1485   : > { %2963 = vrot.lane.b32.xlu2 %v2741_v11, %s5959_s5 }
0x14ab   : > { %v2829_v18 = vpop.permute.xlu1 %2828 }
0x14ac   : > { %4440 = vmatpush.xpose.msk.msrb.mxu2 %vm1270_vm1, %v2829_v18 }
0x14b3   : > { %v2897_v19 = vpop.permute.xlu1 %2896 }
0x14b4   : > { %4443 = vmatpush.xpose.msk.msra.mxu0 %vm1270_vm1, %v2897_v19 }
0x14e0   : > { %v2659_v20 = vpop.xlane.xlu2 %2658 }
0x14e1   : > { %v2660_v21 = vmul.f32 %v2659_v20, %v5241_v41 }
0x14e3   : > { %v2661_v22 = vadd.f32 1e-05, %v2660_v21 }
0x14e5   : > { %4729 = vrsqrt.f32 %v2661_v22  ;;  %vm2668_vm10 = vweird.f32 %v2661_v22 }
0x14e8   : > { %v2964_v1 = vpop.permute.xlu2 %2963 }
0x14e9   : > { %4446 = vmatpush.xpose.msk.msra.mxu2 %vm1270_vm1, %v2964_v1 }
0x14eb   : > { %v4730_v24 = vpop.eup %4729 }
0x14ec   : > { %v2663_v59 = vmul.f32 %v4730_v24, %v2661_v22  ;;  %vm2669_vm9 = vweird.f32 %v4730_v24 }
0x14ed   : > { %vm2670_vm11 = vmor %vm2668_vm10, %vm2669_vm9 }
0x14ee   : > { %v2664_v27 = vmul.f32 %v4730_v24, %v2663_v59 }
0x14f0   : > { %v2665_v28 = vmul.f32 0.5, %v2664_v27 }
0x14f2   : > { %v2666_v29 = vsub.f32 1.5, %v2665_v28 }
0x14f4   : > { %v2667_v30 = vmul.f32 %v4730_v24, %v2666_v29 }
0x14f6   : > { %v2671_v25 = vsel %vm2670_vm11, %v4730_v24, %v2667_v30 }
0x14f7   : > { %v2672_v32 = vmul.f32 %v2671_v25, %v2655_v16 }
0x14f9   : > { %v2676_v35 = vmul.f32 %v4651_v31, %v2672_v32 }
0x14fb   : > { %v5521_v36 = vadd.f32 %v4652_v33, %v2676_v35 }
0x14fd   : > { %4434 = vmatmul.msk.f32.vlgmr.msrb.gmra.mxu1 %vm1206_vm0, %v5521_v36 }
0x157a   : > { %v2718_v37 = vpop.f32.mrf.mxu1 }
0x157b   : > { %2826 = vrot.lane.b32.xlu0 %v2718_v37, %s5967_s18  ;;  %2894 = vrot.lane.b32.xlu2 %v2718_v37, %s5958_s23 }
0x157c   : > { %4438 = vmatmul.msk.f32.vlgmr.msrb.gmra.mxu0 %vm1270_vm1, %v2718_v37 }
0x1583   : > { %2961 = vrot.lane.b32.xlu0 %v2718_v37, %s5959_s5  ;;  %v2696_v37 = vld [vmem:[%s5978_s19 + $0x18] sm:$0xff] }
0x1584   : > { %3061 = vmatpush.msrb.mxu0 %v2696_v37 }
0x15d5   : > { %v2895_v38 = vpop.permute.xlu2 %2894 }
0x15d6   : > { %4444 = vmatmul.msk.f32.vlgmr.msra.gmra.mxu0 %vm1270_vm1, %v2895_v38  ;;  %v2695_v38 = vld [vmem:[%s5978_s19 + $0x10] sm:$0xff] }
0x15d7   : > { %3062 = vmatpush.msrb.mxu0 %v2695_v38 }
0x15ed   : > { %v2827_v39 = vpop.permute.xlu0 %2826 }
0x15ee   : > { %4441 = vmatmul.msk.f32.vlgmr.msrb.gmra.mxu2 %vm1270_vm1, %v2827_v39  ;;  %v2694_v39 = vld [vmem:[%s5978_s19 + $0x8] sm:$0xff] }
0x15ef   : > { %3063 = vmatpush.msrb.mxu0 %v2694_v39 }
0x15f5   : > { %v2962_v40 = vpop.permute.xlu0 %2961 }
0x15f6   : > { %4447 = vmatmul.msk.f32.vlgmr.msra.gmra.mxu2 %vm1270_vm1, %v2962_v40  ;;  %v2693_v40 = vld [vmem:[%s5978_s19] sm:$0xff] }
0x15f7   : > { %3064 = vmatpush.msrb.mxu0 %v2693_v40 }
0x15f9   : > { %v2787_v10 = vpop.f32.mrf.mxu0 }
0x15fa   : > { %v2790_v42 = vsel %vm5190_vm3, %v2787_v10, -1e+20 }
0x15fb   : > { %v2791_v43 = vmul.f32 0.17677669, %v2790_v42 }
0x15fd   : > { %v2792_v44 = vsel %vm1270_vm1, %v2791_v43, -inf }
0x15fe   : > { %2793 = vmax.xlane.f32.xlu1 %v2792_v44 }
0x1653   : > { %v2919_v48 = vpop.f32.mrf.mxu0 }
0x1654   : > { %v2922_v52 = vsel %vm5190_vm3, %v2919_v48, -1e+20 }
0x1655   : > { %v2923_v54 = vmul.f32 0.17677669, %v2922_v52 }
0x1657   : > { %v2924_v57 = vsel %vm1270_vm1, %v2923_v54, -inf }
0x1671   : > { %v2794_v45 = vpop.xlane.xlu1 %2793  ;;  %v2851_v46 = vpop.f32.mrf.mxu2 }
0x1672   : > { %v2854_v47 = vsel %vm5190_vm3, %v2851_v46, -1e+20  ;;  %v2795_v50 = vsub.f32 %v2791_v43, %v2794_v45 }
0x1673   : > { %v2855_v49 = vmul.f32 0.17677669, %v2854_v47  ;;  %v4653_v47 = vld [vmem:[%s5979_s20] ss:$0 sm:$0xff] }
0x1674   : > { %v2796_v53 = vmul.f32 1.442695, %v2795_v50 }
0x1675   : > { %v2856_v51 = vsel %vm1270_vm1, %v2855_v49, -inf }
0x1676   : > { %2857 = vmax.xlane.f32.xlu0 %v2856_v51  ;;  %4731 = vpow2.f32 %v2796_v53 }
0x1679   : > { %v2986_v26 = vpop.f32.mrf.mxu2 }
0x167a   : > { %v2989_v55 = vsel %vm5190_vm3, %v2986_v26, -1e+20 }
0x167b   : > { %v2990_v56 = vmul.f32 0.17677669, %v2989_v55 }
0x167c   : > { %v4732_v60 = vpop.eup %4731 }
0x167d   : > { %v2991_v58 = vsel %vm1270_vm1, %v2990_v56, -inf  ;;  %v2798_v61 = vsel %vm1270_vm1, %v4732_v60, 0.0 }
0x167e   : > { %2925 = vmax.xlane.f32.xlu0 %v2924_v57  ;;  %2992 = vmax.xlane.f32.xlu2 %v2991_v58  ;;  %v3104_v57 = vld [vmem:[%s5980_s28 + $0x10] sm:$0xff]  ;;  %v3102_v58 = vld [vmem:[%s5980_s28] sm:$0xff] }
0x1686   : > { %2799 = vadd.xlane.f32.xlu2 %v2798_v61  ;;  %v3121_v61 = vld [vmem:[%s5981_s29 + $0x70] sm:$0xff] }
0x16e9   : > { %v2858_v62 = vpop.xlane.xlu0 %2857 }
0x16ea   : > { %v2859_v0 = vsub.f32 %v2855_v49, %v2858_v62  ;;  %v3120_v62 = vld [vmem:[%s5981_s29 + $0x68] sm:$0xff] }
0x16ec   : > { %v2860_v2 = vmul.f32 1.442695, %v2859_v0 }
0x16ee   : > { %4733 = vpow2.f32 %v2860_v2 }
0x16f1   : > { %v2993_v3 = vpop.xlane.xlu2 %2992  ;;  %v2926_v4 = vpop.xlane.xlu0 %2925 }
0x16f2   : > { %v2994_v5 = vsub.f32 %v2990_v56, %v2993_v3  ;;  %v2927_v6 = vsub.f32 %v2923_v54, %v2926_v4  ;;  %v3105_v56 = vld [vmem:[%s5980_s28 + $0x18] sm:$0xff]  ;;  %v3119_v3 = vld [vmem:[%s5981_s29 + $0x60] sm:$0xff] }
0x16f4   : > { %v4734_v7 = vpop.eup %4733  ;;  %v2995_v8 = vmul.f32 1.442695, %v2994_v5  ;;  %v2928_v9 = vmul.f32 1.442695, %v2927_v6  ;;  %v3118_v5 = vld [vmem:[%s5981_s29 + $0x58] sm:$0xff]  ;;  %v3117_v6 = vld [vmem:[%s5981_s29 + $0x50] sm:$0xff] }
0x16f5   : > { %v2862_v11 = vsel %vm1270_vm1, %v4734_v7, 0.0 }
0x16f6   : > { %4735 = vpow2.f32 %v2995_v8  ;;  %2863 = vadd.xlane.f32.xlu1 %v2862_v11  ;;  %v3115_v8 = vld [vmem:[%s5981_s29 + $0x40] sm:$0xff]  ;;  %v3114_v11 = vld [vmem:[%s5981_s29 + $0x38] sm:$0xff] }
0x16f7   : > { %4737 = vpow2.f32 %v2928_v9 }
0x16f9   : > { %v2800_v14 = vpop.xlane.xlu2 %2799 }
0x16fa   : > { %4739 = vrcp.f32 %v2800_v14 }
0x16fc   : > { %v4736_v15 = vpop.eup %4735 }
0x16fd   : > { %v4738_v16 = vpop.eup %4737  ;;  %v2997_v17 = vsel %vm1270_vm1, %v4736_v15, 0.0 }
0x16fe   : > { %2998 = vadd.xlane.f32.xlu0 %v2997_v17  ;;  %v2930_v12 = vsel %vm1270_vm1, %v4738_v16, 0.0  ;;  %v3112_v17 = vld [vmem:[%s5981_s29 + $0x28] sm:$0xff] }
0x16ff   : > { %2931 = vadd.xlane.f32.xlu2 %v2930_v12 }
0x1700   : > { %v4740_v18 = vpop.eup %4739 }
0x1701   : > { %v2802_v19 = vmul.f32 %v4740_v18, %v4732_v60  ;;  %v3122_v60 = vld [vmem:[%s5981_s29 + $0x78] sm:$0xff]  ;;  %v3111_v18 = vld [vmem:[%s5981_s29 + $0x20] sm:$0xff] }
0x1702   : > { %3154 = vmatpush.msrb.mxu2 %v3122_v60 }
0x1703   : > { %4439 = vmatmul.msk.f32.vlgmr.msra.gmra.mxu1 %vm1270_vm1, %v2802_v19 }
0x1704   : > { %3155 = vmatpush.msrb.mxu2 %v3121_v61 }
0x1706   : > { %3156 = vmatpush.msrb.mxu2 %v3120_v62 }
0x1708   : > { %3157 = vmatpush.msrb.mxu2 %v3119_v3 }
0x170a   : > { %3158 = vmatpush.msrb.mxu2 %v3118_v5 }
0x170c   : > { %3159 = vmatpush.msrb.mxu2 %v3117_v6 }
0x170f   : > { %2868 = vrot.lane.b32.xlu1 %v5506_v13, %s5967_s18 }
0x1712   : > { %3002 = vrot.lane.b32.xlu0 %v5506_v13, %s5959_s5 }
0x1717   : > { %2935 = vrot.lane.b32.xlu2 %v5506_v13, %s5958_s23 }
0x1769   : > { %v2864_v21 = vpop.xlane.xlu1 %2863 }
0x1771   : > { %v2999_v59 = vpop.xlane.xlu0 %2998 }
0x1772   : > { %v2932_v20 = vpop.xlane.xlu2 %2931 }
0x1773   : > { %4741 = vrcp.f32 %v2932_v20  ;;  %v3110_v20 = vld [vmem:[%s5981_s29 + $0x18] sm:$0xff] }
0x1774   : > { %4743 = vrcp.f32 %v2864_v21 }
0x1775   : > { %4745 = vrcp.f32 %v2999_v59  ;;  %v4655_v59 = vld [vmem:[%s5983_s10] ss:$0 sm:$0xff] }
0x1779   : > { %v4742_v22 = vpop.eup %4741 }
0x177a   : > { %v2934_v1 = vmul.f32 %v4742_v22, %v4738_v16  ;;  %v2936_v24 = vpop.permute.xlu2 %2935  ;;  %v4744_v27 = vpop.eup %4743  ;;  %v4654_v22 = vld [vmem:[%s5982_s30] ss:$0 sm:$0xff] }
0x177b   : > { %2956 = vmatpush.msrb.mxu1 %v2936_v24  ;;  %v2866_v28 = vmul.f32 %v4744_v27, %v4734_v7  ;;  %v4746_v30 = vpop.eup %4745  ;;  %v3116_v7 = vld [vmem:[%s5981_s29 + $0x48] sm:$0xff] }
0x177c   : > { %4445 = vmatmul.msk.f32.vlgmr.msrb.gmra.mxu1 %vm1270_vm1, %v2934_v1  ;;  %v3001_v31 = vmul.f32 %v4746_v30, %v4736_v15  ;;  %3160 = vmatpush.msrb.mxu2 %v3116_v7  ;;  %v3113_v15 = vld [vmem:[%s5981_s29 + $0x30] sm:$0xff]  ;;  %v3107_v30 = vld [vmem:[%s5981_s29] sm:$0xff] }
0x177d   : > { %3142 = vmatpush.msra.mxu1 %v3105_v56  ;;  %v4459_v56 = vld [vmem:[%s5968_s26 + $0x20] sm:$0xff] }
0x177e   : > { %3161 = vmatpush.msrb.mxu2 %v3115_v8  ;;  %v4659_v7 = vld [vmem:[%s5988_s22] ss:$0 sm:$0xff]  ;;  %s1167_s22 = sand.u32 1, %s4843_s16  }
0x177f   : > { %3143 = vmatpush.msra.mxu1 %v3104_v57 }
0x1780   : > { %v2823_v25 = vpop.f32.mrf.mxu1  ;;  %3162 = vmatpush.msrb.mxu2 %v3114_v11 }
0x1781   : > { %v2869_v29 = vpop.permute.xlu1 %2868 }
0x1782   : > { %2889 = vmatpush.msrb.mxu3 %v2869_v29  ;;  %3163 = vmatpush.msrb.mxu2 %v3113_v15  ;;  %v3109_v29 = vld [vmem:[%s5981_s29 + $0x10] sm:$0xff] }
0x1783   : > { %4442 = vmatmul.msk.f32.vlgmr.msrb.gmra.mxu3 %vm1270_vm1, %v2866_v28 }
0x1784   : > { %v3003_v13 = vpop.permute.xlu0 %3002  ;;  %3164 = vmatpush.msrb.mxu2 %v3112_v17 }
0x1785   : > { %3023 = vmatpush.msra.mxu3 %v3003_v13  ;;  %v3108_v13 = vld [vmem:[%s5981_s29 + $0x8] sm:$0xff] }
0x1786   : > { %3165 = vmatpush.msrb.mxu2 %v3111_v18 }
0x1788   : > { %3166 = vmatpush.msrb.mxu2 %v3110_v20 }
0x178a   : > { %3167 = vmatpush.msrb.mxu2 %v3109_v29 }
0x178b   : > { %4448 = vmatmul.msk.f32.vlgmr.msra.gmra.mxu3 %vm1270_vm1, %v3001_v31  ;;  %v4656_v31 = vld [vmem:[%s5984_s15] ss:$0 sm:$0xff]  ;;  %s5986_s15 = sld [smem:[#allocation35_spill]] }
0x178c   : > { %3168 = vmatpush.msrb.mxu2 %v3108_v13 }
0x178e   : > { %3169 = vmatpush.msrb.mxu2 %v3107_v30 }
0x1791   : > { %s5987_s4 = smov %s5986_s15 }
0x17f9   : > { %v2958_v32 = vpop.f32.mrf.mxu1 }
0x17fa   : > { %3033 = vrot.lane.b32.xlu0 %v2958_v32, %s5964_s25 }
0x1806   : > { %v2891_v33 = vpop.f32.mrf.mxu3 }
0x1807   : > { %3029 = vrot.lane.b32.xlu1 %v2891_v33, %s5960_s1 }
0x180e   : > { %v3025_v35 = vpop.f32.mrf.mxu3 }
0x180f   : > { %3037 = vrot.lane.b32.xlu1 %v3025_v35, %s5963_s21  ;;  %v4657_v35 = vld [vmem:[%s5082_s24] ss:$0 sm:$0xff] }
0x186c   : > { %v3034_v43 = vpop.permute.xlu0 %3033 }
0x1879   : > { %v3030_v10 = vpop.permute.xlu1 %3029 }
0x187a   : > { %v3040_v42 = vsel %vm1270_vm1, %v2823_v25, %v3030_v10 }
0x187b   : > { %v3041_v45 = vsel %vm1551_vm4, %v3040_v42, %v3034_v43 }
0x1881   : > { %v3038_v44 = vpop.permute.xlu1 %3037 }
0x1882   : > { %v3042_v46 = vsel %vm1553_vm5, %v3041_v45, %v3038_v44 }
0x1883   : > { %4449 = vmatmul.msk.f32.vlgmr.msrb.gmra.mxu0 %vm1206_vm0, %v3042_v46  ;;  %v4454_v46 = vld [vmem:[%s5962_s17 + $0x38] sm:$0xff] }
0x1884   : > { %3244 = vmatpush.msrb.mxu3 %v4454_v46  ;;  %v4493_v46 = vld [vmem:[%s5972_s11 + $0x38] sm:$0xff] }
0x1900   : > { %v3066_v48 = vpop.f32.mrf.mxu0 }
0x1901   : > { %v3067_v49 = vadd.f32 %v4653_v47, %v3066_v48  ;;  %v4458_v47 = vld [vmem:[%s5961_s13 + $0x38] sm:$0xff] }
0x1902   : > { %v4462_v48 = vld [vmem:[%s5968_s26 + $0x38] sm:$0xff]  ;;  %3264 = vmatpush.msra.mxu0 %v4458_v47  ;;  %v4492_v47 = vld [vmem:[%s5972_s11 + $0x30] sm:$0xff] }
0x1903   : > { %v3071_v50 = vadd.f32 %v3067_v49, %v5521_v36  ;;  %v3103_v36 = vld [vmem:[%s5980_s28 + $0x8] sm:$0xff]  ;;  %v4453_v49 = vld [vmem:[%s5962_s17 + $0x30] sm:$0xff] }
0x1904   : > { %3144 = vmatpush.msra.mxu1 %v3103_v36  ;;  %3245 = vmatpush.msrb.mxu3 %v4453_v49  ;;  %v4490_v49 = vld [vmem:[%s5972_s11 + $0x20] sm:$0xff] }
0x1905   : > { %v3072_v51 = vsel %vm1206_vm0, %v3071_v50, 0.0 }
0x1906   : > { %3073 = vadd.xlane.f32.xlu0 %v3072_v51  ;;  %3145 = vmatpush.msra.mxu1 %v3102_v58  ;;  %v4461_v51 = vld [vmem:[%s5968_s26 + $0x30] sm:$0xff] }
0x1908   : > { %3284 = vmatpush.msrb.mxu1 %v4462_v48  ;;  %v4491_v48 = vld [vmem:[%s5972_s11 + $0x28] sm:$0xff] }
0x190a   : > { %3285 = vmatpush.msrb.mxu1 %v4461_v51 }
0x1979   : > { %v3074_v52 = vpop.xlane.xlu0 %3073 }
0x197a   : > { %v3075_v53 = vmul.f32 %v3074_v52, %v5241_v41  ;;  %v4452_v52 = vld [vmem:[%s5962_s17 + $0x28] sm:$0xff] }
0x197b   : > { %3246 = vmatpush.msrb.mxu3 %v4452_v52 }
0x197c   : > { %v3076_v54 = vsub.f32 %v3071_v50, %v3075_v53  ;;  %v4457_v50 = vld [vmem:[%s5961_s13 + $0x30] sm:$0xff]  ;;  %v4456_v53 = vld [vmem:[%s5961_s13 + $0x28] sm:$0xff] }
0x197d   : > { %3265 = vmatpush.msra.mxu0 %v4457_v50 }
0x197e   : > { %v3077_v26 = vmul.f32 %v3076_v54, %v3076_v54 }
0x197f   : > { %3266 = vmatpush.msra.mxu0 %v4456_v53 }
0x1980   : > { %v3078_v55 = vsel %vm1206_vm0, %v3077_v26, 0.0  ;;  %v4451_v26 = vld [vmem:[%s5962_s17 + $0x20] sm:$0xff] }
0x1981   : > { %3079 = vadd.xlane.f32.xlu2 %v3078_v55  ;;  %v4455_v55 = vld [vmem:[%s5961_s13 + $0x20] sm:$0xff]  ;;  %3247 = vmatpush.msrb.mxu3 %v4451_v26 }
0x1982   : > { %3267 = vmatpush.msra.mxu0 %v4455_v55 }
0x19f4   : > { %v3080_v0 = vpop.xlane.xlu2 %3079 }
0x19f5   : > { %v3081_v2 = vmul.f32 %v3080_v0, %v5241_v41 }
0x19f7   : > { %v3082_v4 = vadd.f32 1e-05, %v3081_v2 }
0x19f9   : > { %4747 = vrsqrt.f32 %v3082_v4  ;;  %vm3089_vm14 = vweird.f32 %v3082_v4 }
0x19ff   : > { %v4748_v9 = vpop.eup %4747 }
0x1a00   : > { %v3084_v14 = vmul.f32 %v4748_v9, %v3082_v4  ;;  %vm3090_vm12 = vweird.f32 %v4748_v9  ;;  %v4658_v4 = vld [vmem:[%s5986_s15] ss:$0 sm:$0xff] }
0x1a01   : > { %vm3091_vm15 = vmor %vm3089_vm14, %vm3090_vm12 }
0x1a02   : > { %v3085_v16 = vmul.f32 %v4748_v9, %v3084_v14 }
0x1a04   : > { %v3086_v12 = vmul.f32 0.5, %v3085_v16 }
0x1a06   : > { %v3087_v19 = vsub.f32 1.5, %v3086_v12 }
0x1a08   : > { %v3088_v21 = vmul.f32 %v4748_v9, %v3087_v19 }
0x1a0a   : > { %v3092_v1 = vsel %vm3091_vm15, %v4748_v9, %v3088_v21 }
0x1a0b   : > { %v3093_v24 = vmul.f32 %v3092_v1, %v3076_v54  ;;  %v4460_v54 = vld [vmem:[%s5968_s26 + $0x28] sm:$0xff] }
0x1a0c   : > { %3286 = vmatpush.msrb.mxu1 %v4460_v54 }
0x1a0d   : > { %v3097_v27 = vmul.f32 %v4654_v22, %v3093_v24 }
0x1a0e   : > { %3287 = vmatpush.msrb.mxu1 %v4459_v56 }
0x1a0f   : > { %v3101_v28 = vadd.f32 %v4655_v59, %v3097_v27 }
0x1a11   : > { %4450 = vmatmul.msk.f32.vlgmr.msra.gmra.mxu1 %vm1206_vm0, %v3101_v28 }
0x1a8e   : > { %v3147_v25 = vpop.f32.mrf.mxu1 }
0x1a8f   : > { %v3148_v32 = vadd.f32 %v4656_v31, %v3147_v25 }
0x1a91   : > { %v3150_v33 = vmax.f32 %v3148_v32, 0.0 }
0x1a93   : > { %3170 = vmatmul.f32.vlgmr.msrb.gmra.mxu2 %v3150_v33 }
0x1b16   : > { %v3171_v37 = vpop.f32.mrf.mxu2 }
0x1b17   : > { %v3172_v38 = vadd.f32 %v4657_v35, %v3171_v37 }
0x1b19   : > { %v3176_v39 = vadd.f32 %v3172_v38, %v3101_v28 }
0x1b1b   : > { %v3177_v40 = vsel %vm1206_vm0, %v3176_v39, 0.0 }
0x1b1c   : > { %3178 = vadd.xlane.f32.xlu1 %v3177_v40 }
0x1b8f   : > { %v3179_v10 = vpop.xlane.xlu1 %3178 }
0x1b90   : > { %v3180_v42 = vmul.f32 %v3179_v10, %v5241_v41 }
0x1b92   : > { %v3181_v43 = vsub.f32 %v3176_v39, %v3180_v42 }
0x1b94   : > { %v3182_v44 = vmul.f32 %v3181_v43, %v3181_v43 }
0x1b96   : > { %v3183_v45 = vsel %vm1206_vm0, %v3182_v44, 0.0 }
0x1b97   : > { %3184 = vadd.xlane.f32.xlu0 %v3183_v45 }
0x1c0a   : > { %v3185_v57 = vpop.xlane.xlu0 %3184 }
0x1c0b   : > { %v3186_v36 = vmul.f32 %v3185_v57, %v5241_v41 }
0x1c0d   : > { %v3187_v58 = vadd.f32 1e-05, %v3186_v36 }
0x1c0f   : > { %4749 = vrsqrt.f32 %v3187_v58  ;;  %vm3194_vm6 = vweird.f32 %v3187_v58 }
0x1c15   : > { %v4750_v60 = vpop.eup %4749 }
0x1c16   : > { %v3189_v61 = vmul.f32 %v4750_v60, %v3187_v58  ;;  %vm3195_vm2 = vweird.f32 %v4750_v60 }
0x1c17   : > { %vm3196_vm7 = vmor %vm3194_vm6, %vm3195_vm2 }
0x1c18   : > { %v3190_v62 = vmul.f32 %v4750_v60, %v3189_v61 }
0x1c1a   : > { %v3191_v0 = vmul.f32 0.5, %v3190_v62 }
0x1c1c   : > { %v3192_v2 = vsub.f32 1.5, %v3191_v0 }
0x1c1e   : > { %v3193_v3 = vmul.f32 %v4750_v60, %v3192_v2 }
0x1c20   : > { %v3197_v5 = vsel %vm3196_vm7, %v4750_v60, %v3193_v3 }
0x1c21   : > { %v3198_v6 = vmul.f32 %v3197_v5, %v3181_v43 }
0x1c23   : > { %v3202_v8 = vmul.f32 %v4658_v4, %v3198_v6 }
0x1c25   : > { %v5618_v9 = vadd.f32 %v4659_v7, %v3202_v8 }
0x1c27   : > { %4468 = vmatmul.msk.f32.vlgmr.msrb.gmra.mxu3 %vm1206_vm0, %v5618_v9  ;;  %4469 = vmatmul.msk.f32.vlgmr.msra.gmra.mxu0 %vm1206_vm0, %v5618_v9 }
0x1c28   : > { %4470 = vmatmul.msk.f32.vlgmr.msrb.gmra.mxu1 %vm1206_vm0, %v5618_v9 }
0x1ca4   : > { %v3269_v11 = vpop.f32.mrf.mxu0 }
0x1ca5   : > { %v5626_v14 = vpop.f32.mrf.mxu1  ;;  %3356 = vrot.lane.b32.xlu2 %v3269_v11, %s5967_s18  ;;  %4471 = vmatpush.xpose.msk.msra.mxu3 %vm1270_vm1, %v3269_v11 }
0x1ca6   : > { %3349 = vmatpush.msrb.mxu0 %v5626_v14 }
0x1caa   : > { %v3249_v15 = vpop.f32.mrf.mxu3 }
0x1cab   : > { %3354 = vrot.lane.b32.xlu1 %v3249_v15, %s5967_s18  ;;  %4472 = vmatmul.msk.f32.vlgmr.msra.gmra.mxu3 %vm1270_vm1, %v3249_v15 }
0x1cb3   : > { %3491 = vrot.lane.b32.xlu1 %v3269_v11, %s5959_s5 }
0x1cbb   : > { %3489 = vrot.lane.b32.xlu1 %v3249_v15, %s5959_s5 }
0x1cc3   : > { %3424 = vrot.lane.b32.xlu1 %v3269_v11, %s5958_s23 }
0x1cff   : > { %v3357_v16 = vpop.permute.xlu2 %3356 }
0x1d00   : > { %4474 = vmatpush.xpose.msk.msra.mxu1 %vm1270_vm1, %v3357_v16 }
0x1d1d   : > { %v3355_v17 = vpop.permute.xlu1 %3354 }
0x1d1e   : > { %4475 = vmatmul.msk.f32.vlgmr.msra.gmra.mxu1 %vm1270_vm1, %v3355_v17  ;;  %v4497_v17 = vld [vmem:[%s5973_s3 + $0x38] sm:$0xff] }
0x1d25   : > { %v3492_v12 = vpop.permute.xlu1 %3491 }
0x1d2d   : > { %v3490_v18 = vpop.permute.xlu1 %3489 }
0x1d2e   : > { %v3315_v19 = vpop.f32.mrf.mxu3 }
0x1d2f   : > { %v3318_v20 = vsel %vm5388_vm13, %v3315_v19, -1e+20  ;;  %v4494_v19 = vld [vmem:[%s5973_s3 + $0x20] sm:$0xff] }
0x1d30   : > { %v3319_v21 = vmul.f32 0.17677669, %v3318_v20 }
0x1d32   : > { %v3320_v22 = vsel %vm1270_vm1, %v3319_v21, -inf }
0x1d33   : > { %3321 = vmax.xlane.f32.xlu0 %v3320_v22 }
0x1d35   : > { %v3425_v1 = vpop.permute.xlu1 %3424 }
0x1d36   : > { %4477 = vmatpush.xpose.msk.msra.mxu0 %vm1270_vm1, %v3425_v1 }
0x1d9b   : > { %v3379_v24 = vpop.f32.mrf.mxu1 }
0x1d9c   : > { %v3382_v59 = vsel %vm5388_vm13, %v3379_v24, -1e+20 }
0x1d9d   : > { %v3383_v27 = vmul.f32 0.17677669, %v3382_v59 }
0x1d9f   : > { %v3384_v28 = vsel %vm1270_vm1, %v3383_v27, -inf }
0x1da0   : > { %3385 = vmax.xlane.f32.xlu0 %v3384_v28  ;;  %v4465_v28 = vld [vmem:[%s5971_s2 + $0x30] sm:$0xff] }
0x1da6   : > { %v3322_v29 = vpop.xlane.xlu0 %3321 }
0x1da7   : > { %v3323_v13 = vsub.f32 %v3319_v21, %v3322_v29  ;;  %v4464_v29 = vld [vmem:[%s5971_s2 + $0x28] sm:$0xff] }
0x1da9   : > { %v3324_v30 = vmul.f32 1.442695, %v3323_v13  ;;  %v4463_v13 = vld [vmem:[%s5971_s2 + $0x20] sm:$0xff] }
0x1dab   : > { %4751 = vpow2.f32 %v3324_v30  ;;  %v4489_v30 = vld [vmem:[%s5974_s6 + $0x38] sm:$0xff] }
0x1dac   : > { %3669 = vmatpush.msra.mxu2 %v4489_v30 }
0x1db1   : > { %v4752_v31 = vpop.eup %4751 }
0x1db2   : > { %v3326_v25 = vsel %vm1270_vm1, %v4752_v31, 0.0 }
0x1db3   : > { %3327 = vadd.xlane.f32.xlu2 %v3326_v25  ;;  %v4487_v25 = vld [vmem:[%s5974_s6 + $0x28] sm:$0xff] }
0x1db4   : > { %3396 = vrot.lane.b32.xlu0 %v5626_v14, %s5967_s18 }
0x1e13   : > { %v3386_v32 = vpop.xlane.xlu0 %3385 }
0x1e14   : > { %v3387_v33 = vsub.f32 %v3383_v27, %v3386_v32  ;;  %v4466_v27 = vld [vmem:[%s5971_s2 + $0x38] sm:$0xff]  ;;  %v4486_v32 = vld [vmem:[%s5974_s6 + $0x20] sm:$0xff] }
0x1e16   : > { %v3388_v35 = vmul.f32 1.442695, %v3387_v33 }
0x1e18   : > { %4753 = vpow2.f32 %v3388_v35 }
0x1e1e   : > { %v4754_v37 = vpop.eup %4753 }
0x1e1f   : > { %v3390_v38 = vsel %vm1270_vm1, %v4754_v37, 0.0 }
0x1e20   : > { %3391 = vadd.xlane.f32.xlu0 %v3390_v38 }
0x1e26   : > { %v3328_v39 = vpop.xlane.xlu2 %3327  ;;  %v3397_v40 = vpop.permute.xlu0 %3396 }
0x1e27   : > { %4755 = vrcp.f32 %v3328_v39  ;;  %3417 = vmatpush.msrb.mxu3 %v3397_v40 }
0x1e29   : > { %4480 = vmatpush.xpose.msk.msra.mxu3 %vm1270_vm1, %v3492_v12  ;;  %v4496_v12 = vld [vmem:[%s5973_s3 + $0x30] sm:$0xff] }
0x1e2d   : > { %v4756_v10 = vpop.eup %4755 }
0x1e2e   : > { %v3330_v42 = vmul.f32 %v4756_v10, %v4752_v31  ;;  %v4488_v31 = vld [vmem:[%s5974_s6 + $0x30] sm:$0xff] }
0x1e2f   : > { %3670 = vmatpush.msra.mxu2 %v4488_v31 }
0x1e30   : > { %4473 = vmatmul.msk.f32.vlgmr.msrb.gmra.mxu0 %vm1270_vm1, %v3330_v42 }
0x1e31   : > { %3671 = vmatpush.msra.mxu2 %v4487_v25 }
0x1e33   : > { %3672 = vmatpush.msra.mxu2 %v4486_v32 }
0x1e34   : > { %3422 = vrot.lane.b32.xlu0 %v3249_v15, %s5958_s23 }
0x1e93   : > { %v3392_v43 = vpop.xlane.xlu0 %3391 }
0x1e94   : > { %4757 = vrcp.f32 %v3392_v43  ;;  %v4660_v43 = vld [vmem:[%s5975_s8 + $0x1] ss:$0 sm:$0xff] }
0x1e9a   : > { %v4758_v44 = vpop.eup %4757 }
0x1e9b   : > { %v3394_v45 = vmul.f32 %v4758_v44, %v4754_v37 }
0x1e9d   : > { %4476 = vmatmul.msk.f32.vlgmr.msrb.gmra.mxu3 %vm1270_vm1, %v3394_v45 }
0x1e9e   : > { %3689 = vmatpush.msrb.mxu3 %v4493_v46 }
0x1ea0   : > { %3690 = vmatpush.msrb.mxu3 %v4492_v47 }
0x1ea2   : > { %3691 = vmatpush.msrb.mxu3 %v4491_v48 }
0x1ea4   : > { %3692 = vmatpush.msrb.mxu3 %v4490_v49 }
0x1ea5   : > { %4481 = vmatmul.msk.f32.vlgmr.msra.gmra.mxu3 %vm1270_vm1, %v3490_v18  ;;  %v4495_v18 = vld [vmem:[%s5973_s3 + $0x28] sm:$0xff] }
0x1ea6   : > { %v3423_v50 = vpop.permute.xlu0 %3422 }
0x1ea7   : > { %4478 = vmatmul.msk.f32.vlgmr.msra.gmra.mxu0 %vm1270_vm1, %v3423_v50 }
0x1ead   : > { %4504 = vmatmul.msk.f32.vlgmr.msrb.gmra.mxu3 %vm1206_vm0, %v5493_v63  ;;  %v5661_v51 = vpop.f32.mrf.mxu0 }
0x1f20   : > { %v3419_v52 = vpop.f32.mrf.mxu3 }
0x1f24   : > { %v3447_v53 = vpop.f32.mrf.mxu0 }
0x1f25   : > { %v3450_v54 = vsel %vm5388_vm13, %v3447_v53, -1e+20 }
0x1f26   : > { %v3451_v26 = vmul.f32 0.17677669, %v3450_v54 }
0x1f28   : > { %v3514_v55 = vpop.f32.mrf.mxu3  ;;  %v3452_v56 = vsel %vm1270_vm1, %v3451_v26, -inf }
0x1f29   : > { %v3517_v57 = vsel %vm5388_vm13, %v3514_v55, -1e+20  ;;  %3453 = vmax.xlane.f32.xlu1 %v3452_v56 }
0x1f2a   : > { %v3518_v36 = vmul.f32 0.17677669, %v3517_v57 }
0x1f2c   : > { %v3519_v58 = vsel %vm1270_vm1, %v3518_v36, -inf }
0x1f2d   : > { %3520 = vmax.xlane.f32.xlu0 %v3519_v58 }
0x1f30   : > { %v3694_v60 = vpop.f32.mrf.mxu3 }
0x1f41   : > { %3557 = vrot.lane.b32.xlu0 %v3419_v52, %s5960_s1 }
0x1f42   : > { %3530 = vrot.lane.b32.xlu1 %v5626_v14, %s5959_s5 }
0x1f4a   : > { %3781 = vrot.lane.b32.xlu1 %v3694_v60, %s5967_s18 }
0x1f52   : > { %3849 = vrot.lane.b32.xlu1 %v3694_v60, %s5958_s23 }
0x1f5a   : > { %3916 = vrot.lane.b32.xlu1 %v3694_v60, %s5959_s5 }
0x1f9c   : > { %v3454_v61 = vpop.xlane.xlu1 %3453 }
0x1f9d   : > { %v3455_v34 = vsub.f32 %v3451_v26, %v3454_v61 }
0x1f9f   : > { %v3456_v62 = vmul.f32 1.442695, %v3455_v34 }
0x1fa0   : > { %v3521_v0 = vpop.xlane.xlu0 %3520 }
0x1fa1   : > { %4759 = vpow2.f32 %v3456_v62  ;;  %v3522_v2 = vsub.f32 %v3518_v36, %v3521_v0  ;;  %v4662_v62 = vld [vmem:[%s5977_s14 + $0x1] ss:$0 sm:$0xff] }
0x1fa3   : > { %v3523_v3 = vmul.f32 1.442695, %v3522_v2 }
0x1fa5   : > { %4761 = vpow2.f32 %v3523_v3 }
0x1fa7   : > { %v4760_v4 = vpop.eup %4759 }
0x1fa8   : > { %v3458_v5 = vsel %vm1270_vm1, %v4760_v4, 0.0 }
0x1fa9   : > { %3459 = vadd.xlane.f32.xlu2 %v3458_v5 }
0x1fab   : > { %v4762_v6 = vpop.eup %4761 }
0x1fac   : > { %v3525_v7 = vsel %vm1270_vm1, %v4762_v6, 0.0 }
0x1fb1   : > { %3526 = vadd.xlane.f32.xlu2 %v3525_v7 }
0x1fb3   : > { %v3558_v38 = vpop.permute.xlu0 %3557 }
0x1fb4   : > { %v3531_v8 = vpop.permute.xlu1 %3530  ;;  %v3568_v39 = vsel %vm1270_vm1, %v5661_v51, %v3558_v38 }
0x1fb5   : > { %3551 = vmatpush.msrb.mxu0 %v3531_v8 }
0x1fb7   : > { %3709 = vmatpush.msra.mxu0 %v4497_v17 }
0x1fb9   : > { %3710 = vmatpush.msra.mxu0 %v4496_v12 }
0x1fbb   : > { %3711 = vmatpush.msra.mxu0 %v4495_v18 }
0x1fbc   : > { %v3782_v11 = vpop.permute.xlu1 %3781 }
0x1fbd   : > { %4509 = vmatpush.xpose.msk.msra.mxu3 %vm1270_vm1, %v3782_v11  ;;  %3712 = vmatpush.msra.mxu0 %v4494_v19 }
0x1fc4   : > { %v3850_v15 = vpop.permute.xlu1 %3849 }
0x1fc9   : > { %3463 = vrot.lane.b32.xlu2 %v5626_v14, %s5958_s23 }
0x1fcc   : > { %v3917_v16 = vpop.permute.xlu1 %3916 }
0x1fcd   : > { %4515 = vmatpush.xpose.msk.msrb.mxu3 %vm1270_vm1, %v3917_v16 }
0x201c   : > { %v3460_v20 = vpop.xlane.xlu2 %3459 }
0x201d   : > { %4763 = vrcp.f32 %v3460_v20 }
0x2023   : > { %v4764_v14 = vpop.eup %4763 }
0x2024   : > { %v3527_v21 = vpop.xlane.xlu2 %3526  ;;  %v3462_v1 = vmul.f32 %v4764_v14, %v4760_v4 }
0x2025   : > { %4765 = vrcp.f32 %v3527_v21 }
0x202b   : > { %v4766_v22 = vpop.eup %4765 }
0x202c   : > { %v3529_v24 = vmul.f32 %v4766_v22, %v4762_v6  ;;  %v3464_v59 = vpop.permute.xlu2 %3463 }
0x202d   : > { %3484 = vmatpush.msrb.mxu1 %v3464_v59 }
0x202e   : > { %4479 = vmatmul.msk.f32.vlgmr.msrb.gmra.mxu1 %vm1270_vm1, %v3462_v1  ;;  %4482 = vmatmul.msk.f32.vlgmr.msrb.gmra.mxu0 %vm1270_vm1, %v3529_v24 }
0x202f   : > { %3589 = vmatpush.msra.mxu1 %v4466_v27 }
0x2031   : > { %3590 = vmatpush.msra.mxu1 %v4465_v28 }
0x2033   : > { %3591 = vmatpush.msra.mxu1 %v4464_v29 }
0x2035   : > { %3592 = vmatpush.msra.mxu1 %v4463_v13 }
0x2036   : > { %4505 = vmatmul.msk.f32.vlgmr.msra.gmra.mxu0 %vm1206_vm0, %v5493_v63 }
0x2037   : > { %4506 = vmatpush.xpose.msk.msrb.mxu1 %vm1270_vm1, %v3694_v60  ;;  %v4661_v60 = vld [vmem:[%s5976_s12 + $0x1] ss:$0 sm:$0xff] }
0x20ab   : > { %v3486_v33 = vpop.f32.mrf.mxu1  ;;  %v3553_v35 = vpop.f32.mrf.mxu0 }
0x20ac   : > { %3561 = vrot.lane.b32.xlu2 %v3486_v33, %s5964_s25 }
0x20b3   : > { %v5699_v37 = vpop.f32.mrf.mxu0 }
0x20b4   : > { %3774 = vmatpush.msrb.mxu2 %v5699_v37  ;;  %3565 = vrot.lane.b32.xlu2 %v3553_v35, %s5963_s21 }
0x2106   : > { %v3562_v63 = vpop.permute.xlu2 %3561 }
0x2107   : > { %v3569_v40 = vsel %vm1551_vm4, %v3568_v39, %v3562_v63 }
0x210e   : > { %v3566_v10 = vpop.permute.xlu2 %3565 }
0x210f   : > { %v3570_v42 = vsel %vm1553_vm5, %v3569_v40, %v3566_v10 }
0x2110   : > { %4483 = vmatmul.msk.f32.vlgmr.msra.gmra.mxu1 %vm1206_vm0, %v3570_v42 }
0x2111   : > { %4512 = vmatpush.xpose.msk.msra.mxu1 %vm1270_vm1, %v3850_v15 }
0x218d   : > { %v3594_v44 = vpop.f32.mrf.mxu1 }
0x218e   : > { %v3595_v45 = vadd.f32 %v4660_v43, %v3594_v44 }
0x2190   : > { %v3601_v46 = vadd.f32 %v3595_v45, %v5618_v9 }
0x2192   : > { %v3602_v47 = vsel %vm1206_vm0, %v3601_v46, 0.0 }
0x2193   : > { %3603 = vadd.xlane.f32.xlu2 %v3602_v47 }
0x2206   : > { %v3604_v48 = vpop.xlane.xlu2 %3603 }
0x2207   : > { %v3605_v49 = vmul.f32 %v3604_v48, %v5241_v41 }
0x2209   : > { %v3606_v50 = vsub.f32 %v3601_v46, %v3605_v49 }
0x220b   : > { %v3607_v51 = vmul.f32 %v3606_v50, %v3606_v50 }
0x220d   : > { %v3608_v52 = vsel %vm1206_vm0, %v3607_v51, 0.0 }
0x220e   : > { %3609 = vadd.xlane.f32.xlu0 %v3608_v52 }
0x2281   : > { %v3610_v53 = vpop.xlane.xlu0 %3609 }
0x2282   : > { %v3611_v54 = vmul.f32 %v3610_v53, %v5241_v41 }
0x2284   : > { %v3612_v26 = vadd.f32 1e-05, %v3611_v54 }
0x2286   : > { %4767 = vrsqrt.f32 %v3612_v26  ;;  %vm3619_vm8 = vweird.f32 %v3612_v26 }
0x228c   : > { %v4768_v55 = vpop.eup %4767 }
0x228d   : > { %v3614_v9 = vmul.f32 %v4768_v55, %v3612_v26  ;;  %vm3620_vm13 = vweird.f32 %v4768_v55 }
0x228e   : > { %vm3621_vm9 = vmor %vm3619_vm8, %vm3620_vm13 }
0x228f   : > { %v3615_v56 = vmul.f32 %v4768_v55, %v3614_v9 }
0x2291   : > { %v3616_v57 = vmul.f32 0.5, %v3615_v56 }
0x2293   : > { %v3617_v36 = vsub.f32 1.5, %v3616_v57 }
0x2295   : > { %v3618_v58 = vmul.f32 %v4768_v55, %v3617_v36 }
0x2297   : > { %v3622_v61 = vsel %vm3621_vm9, %v4768_v55, %v3618_v58 }
0x2298   : > { %v3623_v34 = vmul.f32 %v3622_v61, %v3606_v50 }
0x229a   : > { %v3627_v0 = vmul.f32 %v4661_v60, %v3623_v34  ;;  %v4501_v34 = vld [vmem:[%s5978_s19 + $0x38] sm:$0xff] }
0x229c   : > { %v5717_v2 = vadd.f32 %v4662_v62, %v3627_v0  ;;  %v4500_v62 = vld [vmem:[%s5978_s19 + $0x30] sm:$0xff]  ;;  %v4499_v0 = vld [vmem:[%s5978_s19 + $0x28] sm:$0xff] }
0x229e   : > { %4503 = vmatmul.msk.f32.vlgmr.msra.gmra.mxu2 %vm1206_vm0, %v5717_v2 }
0x2321   : > { %v3674_v3 = vpop.f32.mrf.mxu2 }
0x2322   : > { %3914 = vrot.lane.b32.xlu2 %v3674_v3, %s5959_s5  ;;  %3779 = vrot.lane.b32.xlu1 %v3674_v3, %s5967_s18 }
0x2323   : > { %4507 = vmatmul.msk.f32.vlgmr.msrb.gmra.mxu1 %vm1270_vm1, %v3674_v3 }
0x2324   : > { %4014 = vmatpush.msrb.mxu1 %v4501_v34 }
0x2326   : > { %4015 = vmatpush.msrb.mxu1 %v4500_v62 }
0x2328   : > { %4016 = vmatpush.msrb.mxu1 %v4499_v0 }
0x232a   : > { %3847 = vrot.lane.b32.xlu1 %v3674_v3, %s5958_s23  ;;  %v4498_v3 = vld [vmem:[%s5978_s19 + $0x20] sm:$0xff] }
0x232b   : > { %4017 = vmatpush.msrb.mxu1 %v4498_v3 }
0x237c   : > { %v3915_v5 = vpop.permute.xlu2 %3914 }
0x2394   : > { %v3780_v4 = vpop.permute.xlu1 %3779 }
0x2395   : > { %4510 = vmatmul.msk.f32.vlgmr.msra.gmra.mxu3 %vm1270_vm1, %v3780_v4 }
0x239c   : > { %v3848_v6 = vpop.permute.xlu1 %3847 }
0x239d   : > { %4513 = vmatmul.msk.f32.vlgmr.msra.gmra.mxu1 %vm1270_vm1, %v3848_v6  ;;  %4516 = vmatmul.msk.f32.vlgmr.msrb.gmra.mxu3 %vm1270_vm1, %v3915_v5 }
0x23a0   : > { %v3740_v7 = vpop.f32.mrf.mxu1 }
0x23a1   : > { %v3743_v8 = vsel %vm5190_vm3, %v3740_v7, -1e+20 }
0x23a2   : > { %v3744_v11 = vmul.f32 0.17677669, %v3743_v8 }
0x23a4   : > { %v3745_v15 = vsel %vm1270_vm1, %v3744_v11, -inf }
0x23a5   : > { %3746 = vmax.xlane.f32.xlu1 %v3745_v15  ;;  %v4663_v15 = vld [vmem:[%s5979_s20 + $0x1] ss:$0 sm:$0xff] }
0x23be   : > { %3821 = vrot.lane.b32.xlu1 %v5699_v37, %s5967_s18 }
0x2418   : > { %v3747_v16 = vpop.xlane.xlu1 %3746  ;;  %v3804_v12 = vpop.f32.mrf.mxu3 }
0x2419   : > { %v3748_v17 = vsub.f32 %v3744_v11, %v3747_v16  ;;  %v3807_v22 = vsel %vm5190_vm3, %v3804_v12, -1e+20 }
0x241a   : > { %v3872_v18 = vpop.f32.mrf.mxu1  ;;  %v3808_v1 = vmul.f32 0.17677669, %v3807_v22 }
0x241b   : > { %v3749_v19 = vmul.f32 1.442695, %v3748_v17  ;;  %v3875_v20 = vsel %vm5190_vm3, %v3872_v18, -1e+20 }
0x241c   : > { %v3876_v21 = vmul.f32 0.17677669, %v3875_v20  ;;  %v3809_v28 = vsel %vm1270_vm1, %v3808_v1, -inf }
0x241d   : > { %4769 = vpow2.f32 %v3749_v19 }
0x241e   : > { %v3877_v14 = vsel %vm1270_vm1, %v3876_v21, -inf }
0x241f   : > { %3878 = vmax.xlane.f32.xlu0 %v3877_v14 }
0x2420   : > { %v3939_v59 = vpop.f32.mrf.mxu3 }
0x2421   : > { %v3942_v29 = vsel %vm5190_vm3, %v3939_v59, -1e+20  ;;  %v4521_v59 = vld [vmem:[%s5980_s28 + $0x20] sm:$0xff] }
0x2422   : > { %v3943_v13 = vmul.f32 0.17677669, %v3942_v29  ;;  %v4539_v29 = vld [vmem:[%s5981_s29 + $0xe8] sm:$0xff] }
0x2423   : > { %v4770_v24 = vpop.eup %4769 }
0x2424   : > { %v3751_v27 = vsel %vm1270_vm1, %v4770_v24, 0.0  ;;  %v3944_v30 = vsel %vm1270_vm1, %v3943_v13, -inf }
0x2425   : > { %3752 = vadd.xlane.f32.xlu2 %v3751_v27  ;;  %v4541_v27 = vld [vmem:[%s5981_s29 + $0xf8] sm:$0xff] }
0x2426   : > { %4113 = vmatpush.msra.mxu3 %v4541_v27 }
0x2427   : > { %3810 = vmax.xlane.f32.xlu0 %v3809_v28  ;;  %v4540_v28 = vld [vmem:[%s5981_s29 + $0xf0] sm:$0xff] }
0x2428   : > { %4114 = vmatpush.msra.mxu3 %v4540_v28 }
0x242a   : > { %4115 = vmatpush.msra.mxu3 %v4539_v29 }
0x242f   : > { %3945 = vmax.xlane.f32.xlu0 %v3944_v30 }
0x2430   : > { %v3822_v31 = vpop.permute.xlu1 %3821 }
0x2431   : > { %3842 = vmatpush.msrb.mxu0 %v3822_v31  ;;  %v4538_v31 = vld [vmem:[%s5981_s29 + $0xe0] sm:$0xff] }
0x2432   : > { %4116 = vmatpush.msra.mxu3 %v4538_v31 }
0x243d   : > { %3955 = vrot.lane.b32.xlu2 %v5699_v37, %s5959_s5 }
0x2492   : > { %v3879_v25 = vpop.xlane.xlu0 %3878 }
0x2493   : > { %v3880_v32 = vsub.f32 %v3876_v21, %v3879_v25 }
0x2495   : > { %v3881_v33 = vmul.f32 1.442695, %v3880_v32  ;;  %v4537_v32 = vld [vmem:[%s5981_s29 + $0xd8] sm:$0xff] }
0x2496   : > { %4117 = vmatpush.msra.mxu3 %v4537_v32 }
0x2497   : > { %4771 = vpow2.f32 %v3881_v33  ;;  %v4536_v33 = vld [vmem:[%s5981_s29 + $0xd0] sm:$0xff] }
0x2498   : > { %v3753_v35 = vpop.xlane.xlu2 %3752  ;;  %4118 = vmatpush.msra.mxu3 %v4536_v33 }
0x2499   : > { %4773 = vrcp.f32 %v3753_v35  ;;  %v4535_v35 = vld [vmem:[%s5981_s29 + $0xc8] sm:$0xff] }
0x249a   : > { %v3811_v63 = vpop.xlane.xlu0 %3810  ;;  %4119 = vmatpush.msra.mxu3 %v4535_v35 }
0x249b   : > { %v3812_v38 = vsub.f32 %v3808_v1, %v3811_v63  ;;  %v4524_v1 = vld [vmem:[%s5980_s28 + $0x38] sm:$0xff]  ;;  %v4534_v63 = vld [vmem:[%s5981_s29 + $0xc0] sm:$0xff] }
0x249c   : > { %4120 = vmatpush.msra.mxu3 %v4534_v63 }
0x249d   : > { %v4772_v23 = vpop.eup %4771  ;;  %v3813_v39 = vmul.f32 1.442695, %v3812_v38 }
0x249e   : > { %v3883_v40 = vsel %vm1270_vm1, %v4772_v23, 0.0 }
0x249f   : > { %v4774_v10 = vpop.eup %4773  ;;  %4775 = vpow2.f32 %v3813_v39  ;;  %3884 = vadd.xlane.f32.xlu0 %v3883_v40  ;;  %v4532_v40 = vld [vmem:[%s5981_s29 + $0xb0] sm:$0xff] }
0x24a0   : > { %v3755_v42 = vmul.f32 %v4774_v10, %v4770_v24  ;;  %v3956_v43 = vpop.permute.xlu2 %3955  ;;  %v4523_v24 = vld [vmem:[%s5980_s28 + $0x30] sm:$0xff] }
0x24a1   : > { %3976 = vmatpush.msra.mxu0 %v3956_v43 }
0x24a2   : > { %4508 = vmatmul.msk.f32.vlgmr.msrb.gmra.mxu2 %vm1270_vm1, %v3755_v42  ;;  %v3946_v44 = vpop.xlane.xlu0 %3945  ;;  %v4531_v42 = vld [vmem:[%s5981_s29 + $0xa8] sm:$0xff] }
0x24a3   : > { %v3947_v45 = vsub.f32 %v3943_v13, %v3946_v44  ;;  %v4530_v44 = vld [vmem:[%s5981_s29 + $0xa0] sm:$0xff] }
0x24a5   : > { %v4776_v46 = vpop.eup %4775  ;;  %v3948_v47 = vmul.f32 1.442695, %v3947_v45 }
0x24a6   : > { %v3815_v48 = vsel %vm1270_vm1, %v4776_v46, 0.0 }
0x24a7   : > { %4777 = vpow2.f32 %v3948_v47  ;;  %3816 = vadd.xlane.f32.xlu0 %v3815_v48  ;;  %v4664_v48 = vld [vmem:[%s5982_s30 + $0x1] ss:$0 sm:$0xff] }
0x24ad   : > { %v4778_v49 = vpop.eup %4777 }
0x24ae   : > { %v3950_v50 = vsel %vm1270_vm1, %v4778_v49, 0.0 }
0x24af   : > { %3951 = vadd.xlane.f32.xlu0 %v3950_v50 }
0x24c3   : > { %3888 = vrot.lane.b32.xlu0 %v5699_v37, %s5958_s23  ;;  %s4338_s23 = sshll.u32 %s1167_s22, 3 }
0x24c4   : > { %s1169_s15 = scalar_lea.vmem [#allocation2], %s4338_s23 }
0x24c5   : > { %s4213_s2 = sshll.u32 %s1169_s15, 4  ;;  %s4214_s2 = int_to_ptr.vmem [resolvable:$true] %s4213_s2 }
0x2512   : > { %v3885_v51 = vpop.xlane.xlu0 %3884 }
0x251a   : > { %v3817_v52 = vpop.xlane.xlu0 %3816 }
0x251b   : > { %4779 = vrcp.f32 %v3817_v52 }
0x2521   : > { %v4780_v53 = vpop.eup %4779 }
0x2522   : > { %v3819_v54 = vmul.f32 %v4780_v53, %v4776_v46  ;;  %v3952_v26 = vpop.xlane.xlu0 %3951  ;;  %v4529_v46 = vld [vmem:[%s5981_s29 + $0x98] sm:$0xff] }
0x2523   : > { %4781 = vrcp.f32 %v3952_v26  ;;  %v4527_v26 = vld [vmem:[%s5981_s29 + $0x88] sm:$0xff] }
0x2524   : > { %4511 = vmatmul.msk.f32.vlgmr.msrb.gmra.mxu0 %vm1270_vm1, %v3819_v54  ;;  %4783 = vrcp.f32 %v3885_v51  ;;  %v4665_v51 = vld [vmem:[%s5983_s10 + $0x1] ss:$0 sm:$0xff]  ;;  %v4528_v54 = vld [vmem:[%s5981_s29 + $0x90] sm:$0xff] }
0x2525   : > { %v3776_v60 = vpop.f32.mrf.mxu2 }
0x2529   : > { %v4782_v55 = vpop.eup %4781 }
0x252a   : > { %v3954_v9 = vmul.f32 %v4782_v55, %v4778_v49  ;;  %v4784_v56 = vpop.eup %4783  ;;  %v4526_v55 = vld [vmem:[%s5981_s29 + $0x80] sm:$0xff] }
0x252b   : > { %v3887_v57 = vmul.f32 %v4784_v56, %v4772_v23  ;;  %v4533_v23 = vld [vmem:[%s5981_s29 + $0xb8] sm:$0xff] }
0x252c   : > { %4517 = vmatmul.msk.f32.vlgmr.msra.gmra.mxu0 %vm1270_vm1, %v3954_v9  ;;  %4121 = vmatpush.msra.mxu3 %v4533_v23  ;;  %v4666_v9 = vld [vmem:[%s5985_s7 + $0x1] ss:$0 sm:$0xff] }
0x252e   : > { %4122 = vmatpush.msra.mxu3 %v4532_v40 }
0x2530   : > { %4123 = vmatpush.msra.mxu3 %v4531_v42 }
0x2532   : > { %4124 = vmatpush.msra.mxu3 %v4530_v44 }
0x2534   : > { %4125 = vmatpush.msra.mxu3 %v4529_v46 }
0x2535   : > { %v3889_v37 = vpop.permute.xlu0 %3888 }
0x2536   : > { %3909 = vmatpush.msra.mxu2 %v3889_v37  ;;  %4126 = vmatpush.msra.mxu3 %v4528_v54 }
0x2537   : > { %4514 = vmatmul.msk.f32.vlgmr.msra.gmra.mxu2 %vm1270_vm1, %v3887_v57 }
0x2538   : > { %4101 = vmatpush.msrb.mxu2 %v4524_v1  ;;  %4127 = vmatpush.msra.mxu3 %v4527_v26 }
0x253a   : > { %4102 = vmatpush.msrb.mxu2 %v4523_v24  ;;  %4128 = vmatpush.msra.mxu3 %v4526_v55 }
0x25a1   : > { %v3844_v36 = vpop.f32.mrf.mxu0 }
0x25a2   : > { %3982 = vrot.lane.b32.xlu1 %v3844_v36, %s5960_s1  ;;  %v4667_v36 = vld [vmem:[%s5082_s24 + $0x1] ss:$0 sm:$0xff]  ;;  %s4548_s1 = sshll.u32 %s5120_s0, 3 }
0x25a9   : > { %v3978_v58 = vpop.f32.mrf.mxu0 }
0x25aa   : > { %3990 = vrot.lane.b32.xlu1 %v3978_v58, %s5963_s21  ;;  %s5990_s21 = sld [smem:[#allocation41_spill]] }
0x25b0   : > { %s4211_s18 = scalar_lea.hbm %s5990_s21, %s4548_s1  ;;  %s4809_s0 = scalar_lea.hbm %s5990_s21, 16 }
0x25b1   : > { %s4215_s3 = sshll.u32 %s4211_s18, 4  ;;  %s4216_s3 = int_to_ptr.hbm [resolvable:$true] %s4215_s3 }
0x25b2   : > { %s4803_s6 = sshra.s32 %s4216_s3, 4  ;;  %s4804_s6 = int_to_ptr.hbm [resolvable:$true] %s4803_s6 }
0x25b3   : > { %s4805_s7 = scalar_lea.hbm %s4804_s6, 8  ;;  %p4810_p0 = scmp.lt.s32.totalorder %s4804_s6, %s5990_s21 }
0x25b4   : > { %p4806_p11 = scmp.ne.s32.totalorder %s4804_s6, %s4805_s7  ;;  %p4811_p1 = scmp.lt.s32.totalorder %s4809_s0, %s4805_s7 }
0x25b6   : > { %p4807_p12 = pnand %p4806_p11, %p5137_p5  ;;  %p4812_p2 = por %p4811_p1, %p4810_p0 }
0x25b8   : > { %p4808_p13 = pneg %p4807_p12 }
0x25ba   : > { %v3911_v61 = vpop.f32.mrf.mxu2  ;;  %p4813_p3 = pnand %p4812_p2, %p4808_p13 }
0x25bb   : > { %3986 = vrot.lane.b32.xlu0 %v3911_v61, %s5964_s25  ;;  %s5991_s25 = sld [smem:[#allocation40_spill]] }
0x25c1   : > { %v4670_v27 = vld [vmem:[%s5991_s25] ss:$0 sm:$0xff] }
0x2614   : > { %v3983_v4 = vpop.permute.xlu1 %3982 }
0x2615   : > { %v3993_v5 = vsel %vm1270_vm1, %v3776_v60, %v3983_v4 }
0x261c   : > { %v3991_v7 = vpop.permute.xlu1 %3990 }
0x262d   : > { %v3987_v6 = vpop.permute.xlu0 %3986 }
0x262e   : > { %v3994_v8 = vsel %vm1551_vm4, %v3993_v5, %v3987_v6  ;;  %v4171_v6 = vld [vmem:[%s5087_s27 + $0x18] sm:$0xff] }
0x262f   : > { %v3995_v11 = vsel %vm1553_vm5, %v3994_v8, %v3991_v7  ;;  %4191 = vmatpush.msrb.mxu0 %v4171_v6  ;;  %v4170_v7 = vld [vmem:[%s5087_s27 + $0x10] sm:$0xff]  ;;  %v4169_v8 = vld [vmem:[%s5087_s27 + $0x8] sm:$0xff] }
0x2630   : > { %4518 = vmatmul.msk.f32.vlgmr.msrb.gmra.mxu1 %vm1206_vm0, %v3995_v11  ;;  %v4168_v11 = vld [vmem:[%s5087_s27] sm:$0xff] }
0x2631   : > { %4192 = vmatpush.msrb.mxu0 %v4170_v7 }
0x2633   : > { %4193 = vmatpush.msrb.mxu0 %v4169_v8 }
0x2635   : > { %4194 = vmatpush.msrb.mxu0 %v4168_v11 }
0x26ad   : > { %v4019_v16 = vpop.f32.mrf.mxu1 }
0x26ae   : > { %v4020_v17 = vadd.f32 %v4663_v15, %v4019_v16 }
0x26b0   : > { %v4026_v12 = vadd.f32 %v4020_v17, %v5717_v2  ;;  %v4522_v2 = vld [vmem:[%s5980_s28 + $0x28] sm:$0xff] }
0x26b1   : > { %4103 = vmatpush.msrb.mxu2 %v4522_v2  ;;  %v4669_v2 = vld [vmem:[%s5989_s9 + $0x1] ss:$0 sm:$0xff] }
0x26b2   : > { %v4027_v18 = vsel %vm1206_vm0, %v4026_v12, 0.0 }
0x26b3   : > { %4028 = vadd.xlane.f32.xlu0 %v4027_v18  ;;  %4104 = vmatpush.msrb.mxu2 %v4521_v59 }
0x2726   : > { %v4029_v19 = vpop.xlane.xlu0 %4028 }
0x2727   : > { %v4030_v20 = vmul.f32 %v4029_v19, %v5241_v41 }
0x2729   : > { %v4031_v21 = vsub.f32 %v4026_v12, %v4030_v20 }
0x272b   : > { %v4032_v14 = vmul.f32 %v4031_v21, %v4031_v21 }
0x272d   : > { %v4033_v22 = vsel %vm1206_vm0, %v4032_v14, 0.0 }
0x272e   : > { %4034 = vadd.xlane.f32.xlu1 %v4033_v22  ;;  %v4668_v22 = vld [vmem:[%s5987_s4 + $0x1] ss:$0 sm:$0xff]  ;;  %s4201_s4 = scalar_lea.sflag [#allocation3], %s1167_s22 }
0x27a1   : > { %v4035_v13 = vpop.xlane.xlu1 %4034 }
0x27a2   : > { %v4036_v30 = vmul.f32 %v4035_v13, %v5241_v41 }
0x27a4   : > { %v4037_v25 = vadd.f32 1e-05, %v4036_v30 }
0x27a6   : > { %4785 = vrsqrt.f32 %v4037_v25  ;;  %vm4044_vm3 = vweird.f32 %v4037_v25 }
0x27ac   : > { %v4786_v38 = vpop.eup %4785 }
0x27ad   : > { %v4039_v39 = vmul.f32 %v4786_v38, %v4037_v25  ;;  %vm4045_vm1 = vweird.f32 %v4786_v38 }
0x27ae   : > { %vm4046_vm4 = vmor %vm4044_vm3, %vm4045_vm1 }
0x27af   : > { %v4040_v10 = vmul.f32 %v4786_v38, %v4039_v39 }
0x27b1   : > { %v4041_v43 = vmul.f32 0.5, %v4040_v10 }
0x27b3   : > { %v4042_v45 = vsub.f32 1.5, %v4041_v43 }
0x27b5   : > { %v4043_v47 = vmul.f32 %v4786_v38, %v4042_v45 }
0x27b7   : > { %v4047_v49 = vsel %vm4046_vm4, %v4786_v38, %v4043_v47 }
0x27b8   : > { %v4048_v50 = vmul.f32 %v4047_v49, %v4031_v21 }
0x27ba   : > { %v4052_v52 = vmul.f32 %v4664_v48, %v4048_v50 }
0x27bc   : > { %v4056_v53 = vadd.f32 %v4665_v51, %v4052_v52 }
0x27be   : > { %4543 = vmatmul.msk.f32.vlgmr.msrb.gmra.mxu2 %vm1206_vm0, %v4056_v53 }
0x2841   : > { %v4106_v56 = vpop.f32.mrf.mxu2 }
0x2842   : > { %v4107_v57 = vadd.f32 %v4666_v9, %v4106_v56 }
0x2844   : > { %v4109_v37 = vmax.f32 %v4107_v57, 0.0 }
0x2846   : > { %4129 = vmatmul.f32.vlgmr.msra.gmra.mxu3 %v4109_v37 }
0x28c9   : > { %v4130_v58 = vpop.f32.mrf.mxu3 }
0x28ca   : > { %v4131_v60 = vadd.f32 %v4667_v36, %v4130_v58 }
0x28cc   : > { %v4137_v61 = vadd.f32 %v4131_v60, %v4056_v53 }
0x28ce   : > { %v4138_v34 = vsel %vm1206_vm0, %v4137_v61, 0.0 }
0x28cf   : > { %4139 = vadd.xlane.f32.xlu2 %v4138_v34 }
0x2942   : > { %v4140_v62 = vpop.xlane.xlu2 %4139 }
0x2943   : > { %v4141_v0 = vmul.f32 %v4140_v62, %v5241_v41 }
0x2945   : > { %v4142_v3 = vsub.f32 %v4137_v61, %v4141_v0 }
0x2947   : > { %v4143_v4 = vmul.f32 %v4142_v3, %v4142_v3 }
0x2949   : > { %v4144_v5 = vsel %vm1206_vm0, %v4143_v4, 0.0 }
0x294a   : > { %4145 = vadd.xlane.f32.xlu0 %v4144_v5 }
0x29bd   : > { %v4146_v15 = vpop.xlane.xlu0 %4145 }
0x29be   : > { %v4147_v16 = vmul.f32 %v4146_v15, %v5241_v41 }
0x29c0   : > { %v4148_v17 = vadd.f32 1e-05, %v4147_v16 }
0x29c2   : > { %4787 = vrsqrt.f32 %v4148_v17  ;;  %vm4155_vm10 = vweird.f32 %v4148_v17 }
0x29c8   : > { %v4788_v12 = vpop.eup %4787 }
0x29c9   : > { %v4150_v18 = vmul.f32 %v4788_v12, %v4148_v17  ;;  %vm4156_vm5 = vweird.f32 %v4788_v12 }
0x29ca   : > { %vm4157_vm11 = vmor %vm4155_vm10, %vm4156_vm5 }
0x29cb   : > { %v4151_v19 = vmul.f32 %v4788_v12, %v4150_v18 }
0x29cd   : > { %v4152_v20 = vmul.f32 0.5, %v4151_v19 }
0x29cf   : > { %v4153_v21 = vsub.f32 1.5, %v4152_v20 }
0x29d1   : > { %v4154_v14 = vmul.f32 %v4788_v12, %v4153_v21 }
0x29d3   : > { %v4158_v1 = vsel %vm4157_vm11, %v4788_v12, %v4154_v14 }
0x29d4   : > { %v4159_v24 = vmul.f32 %v4158_v1, %v4142_v3 }
0x29d6   : > { %v4163_v41 = vmul.f32 %v4668_v22, %v4159_v24 }
0x29d8   : > { %v4167_v59 = vadd.f32 %v4669_v2, %v4163_v41 }
0x29da   : > { %4546 = vmatmul.msk.f32.vlgmr.msrb.gmra.mxu0 %vm1206_vm0, %v4167_v59 }
0x2a57   : > { %v4196_v28 = vpop.f32.mrf.mxu0 }
0x2a58   : > { %v4197_v29 = vadd.f32 %v4670_v27, %v4196_v28 }
0x2a5a   : > { %4199 = vst [vmem:[%s1169_s15] sm:$0xff] %v4197_v29 }
0x2a5b   : > { %4816 = shalt.err (!%p4813_p3)
}
0x2a5c   : > { %4551 = dma.vmem_to_hbm [thread:$0]  (%p5137_p5), %s4214_s2, 128, %s4216_s3, %s4201_s4  }
0x2a5d PF: > { %s5993_s25 = sld [smem:[#allocation44_spill]] }
0x2a5e   : > { %s5994_s23 = sld [smem:[#allocation42_spill]] }
0x2a63   : > { %p4557_p4 = scmp.ge.s32.totalorder %s5993_s25, 2 }
0x2a64   : > { %s4227_s1 = sand.u32 1, %s5994_s23  }
0x2a65   : > { %p4554_p7 = pnand %p4557_p4, %p5141_p6  ;;  %s4228_s18 = scalar_lea.sflag [#allocation3], %s4227_s1 }
0x2a67   : > { %p4555_p8 = pneg %p4554_p7 }
0x2a69   : > { %4834 = dma.done.wait (%p4555_p8), %s4228_s18, 128  }
0x2a6a   : > { %4836 = vsyncadd (%p4555_p8), %s4228_s18, 4294967168  ;;  %s5996_s22 = sld [smem:[#allocation45_spill]]  ;;  %s5999_s15 = smov %s4843_s16 }
0x2a6b   : > { %s5997_s6 = sld [smem:[#allocation43_spill]] }
0x2a6c   : > { %s5998_s18 = sld [smem:[#allocation46_spill]] }
0x2a70   : > { %p87_p9 = scmp.ge.s32.totalorder %s5996_s22, 4  }
0x2a71   : > { %s6000_s16 = smov %s5997_s6 }
0x2a72   :  { %89 = sbr.rel (!%p87_p9) target bundleno = 94 (0x5e), region = 284 }
0x2a77   :  { %4234 = vsyncpa [#allocation3], 1 }
0x2a78   :  { %4236 = vsyncpa [#allocation3 + $0x1], 1 }

</bundles_post_ra>
